<compile_context>
chip_gen: v7x
topology: tpu7x:2x2x1
jax: 0.10.0
libtpu: 0.0.40
codegen_flags: <defaults>
</compile_context>

<pallas_src>
import math
import functools

import jax
import jax.numpy as jnp
from jax.experimental import pallas as pl
from jax.experimental.pallas import tpu as pltpu


# ----------------------------------------------------------------------------
# In-kernel helpers
# ----------------------------------------------------------------------------
def _layer_norm(x, g, b, eps=1e-5):
    mu = jnp.mean(x, axis=-1, keepdims=True)
    var = jnp.mean((x - mu) ** 2, axis=-1, keepdims=True)
    return (x - mu) * jax.lax.rsqrt(var + eps) * g + b


def _mha(q, k, v, bias, B, Lq, S, nh, hd):
    """Fused multi-head attention on batch-folded activations.

    q: [B*Lq, nh*hd] f32, k/v: [B*S, nh*hd] f32, bias: [B, Lq, S] f32 or None.
    Returns merged heads [B*Lq, nh*hd] bf16 (input to the output projection).
    """
    # cast once on the full tensors; fold 1/sqrt(hd) into q (not into scores)
    qh = (q * (1.0 / math.sqrt(hd))).astype(jnp.bfloat16)
    kh = k.astype(jnp.bfloat16)
    vh = v.astype(jnp.bfloat16)

    def heads(t, rows):
        # [B*rows, H] -> [nh*B, rows, hd]  via static lane slices + leading-dim
        # reshapes only (whole lane-tiles when hd % 128 == 0).
        parts = [t[:, h * hd:(h + 1) * hd].reshape(B, rows, hd) for h in range(nh)]
        return jnp.stack(parts, axis=0).reshape(nh * B, rows, hd)

    q3 = heads(qh, Lq)                                         # [nh*B, Lq, hd]
    k3 = heads(kh, S)                                          # [nh*B, S,  hd]
    v3 = heads(vh, S)

    # scores for ALL heads/batches in one batched MXU contraction
    s = jnp.einsum('bld,bsd->bls', q3, k3,
                   preferred_element_type=jnp.float32)         # [nh*B, Lq, S]
    if bias is not None:
        s = (s.reshape(nh, B, Lq, S) + bias[None]).reshape(nh * B, Lq, S)
    s = s - jnp.max(s, axis=-1, keepdims=True)
    p = jnp.exp(s)
    p = p * pl.reciprocal(jnp.sum(p, axis=-1, keepdims=True), approx=True)

    o = jnp.einsum('bls,bsd->bld', p.astype(jnp.bfloat16), v3,
                   preferred_element_type=jnp.float32)         # [nh*B, Lq, hd]
    # merge heads back onto lanes -> [B*Lq, H]
    merged = jnp.concatenate(
        [o[h * B:(h + 1) * B].reshape(B * Lq, hd) for h in range(nh)], axis=-1)
    return merged.astype(jnp.bfloat16)


# ----------------------------------------------------------------------------
# Kernel 1: stack of decoder layers.  grid = (batch_chunks, num_layers)
# ----------------------------------------------------------------------------
def decoder_layers_kernel(
    # batch-chunk-resident inputs
    tgt_ref,      # (Bb, L, H)  f32   emb*sqrt(H)+pe
    mem_ref,      # (Bb, N, H)  bf16  flattened image features
    bias_ref,     # (Bb, L, L)  f32   additive causal+pad mask
    # current layer's weights (one slab per layer step, bf16)
    sa_w_ref, sa_ow_ref, ca_qw_ref, ca_kvw_ref, ca_ow_ref, ff1_w_ref, ff2_w_ref,
    # packed per-layer small vectors (biases + LN params), f32
    vec_ref,      # (1, 1, 15H + F)
    # output / layer-to-layer carry
    x_ref,        # (Bb, L, H)  f32
    *, num_heads):

    Bb, L, H = x_ref.shape
    N = mem_ref.shape[1]
    F = ff1_w_ref.shape[2]
    hd = H // num_heads
    M = Bb * L

    @pl.when(pl.program_id(1) == 0)
    def _():
        x_ref[...] = tgt_ref[...]

    # unpack the small-vector slab with static, lane-aligned slices
    _off = [0]
    def vec(width):
        a = _off[0]; _off[0] = a + width
        return vec_ref[0, :, a:a + width]            # (1, width) f32
    sa_b, sa_ob = vec(3 * H), vec(H)
    ca_qb, ca_kvb, ca_ob = vec(H), vec(2 * H), vec(H)
    ff1_b, ff2_b = vec(F), vec(H)
    ln1_w, ln1_b = vec(H), vec(H)
    ln2_w, ln2_b = vec(H), vec(H)
    ln3_w, ln3_b = vec(H), vec(H)

    x = x_ref[...].reshape(M, H)                     # [M, H] f32 (carried)
    bias = bias_ref[...]                             # [Bb, L, L] f32
    mem = mem_ref[...].reshape(Bb * N, H)            # [Bb*N, H] bf16

    # ---- self-attention block (post-norm, norm_first=False) ----
    qkv = (jnp.dot(x.astype(jnp.bfloat16), sa_w_ref[0],
                   preferred_element_type=jnp.float32) + sa_b)       # [M, 3H]
    sa_ctx = _mha(qkv[:, :H], qkv[:, H:2 * H], qkv[:, 2 * H:],
                  bias, Bb, L, L, num_heads, hd)                     # [M, H] bf16
    sa = (jnp.dot(sa_ctx, sa_ow_ref[0],
                  preferred_element_type=jnp.float32) + sa_ob)
    x = _layer_norm(x + sa, ln1_w, ln1_b)

    # ---- cross-attention block (memory = image features, no mask) ----
    q = (jnp.dot(x.astype(jnp.bfloat16), ca_qw_ref[0],
                 preferred_element_type=jnp.float32) + ca_qb)        # [M, H]
    kv = (jnp.dot(mem, ca_kvw_ref[0],
                  preferred_element_type=jnp.float32) + ca_kvb)      # [Bb*N, 2H]
    ca_ctx = _mha(q, kv[:, :H], kv[:, H:], None, Bb, L, N, num_heads, hd)
    ca = (jnp.dot(ca_ctx, ca_ow_ref[0],
                  preferred_element_type=jnp.float32) + ca_ob)
    x = _layer_norm(x + ca, ln2_w, ln2_b)

    # ---- feed-forward block (ReLU) ----
    h1 = jnp.maximum(
        jnp.dot(x.astype(jnp.bfloat16), ff1_w_ref[0],
                preferred_element_type=jnp.float32) + ff1_b, 0.0)
    h2 = (jnp.dot(h1.astype(jnp.bfloat16), ff2_w_ref[0],
                  preferred_element_type=jnp.float32) + ff2_b)
    x = _layer_norm(x + h2, ln3_w, ln3_b)

    x_ref[...] = x.reshape(Bb, L, H)


# ----------------------------------------------------------------------------
# Kernel 2: vocab projection, tiled over (M, vocab); bf16 cast done in-kernel
# ----------------------------------------------------------------------------
def output_proj_kernel(x_ref, w_ref, b_ref, out_ref):
    x = x_ref[...].astype(jnp.bfloat16)
    out_ref[...] = (jnp.dot(x, w_ref[...],
                            preferred_element_type=jnp.float32) + b_ref[...])


# ----------------------------------------------------------------------------
# JAX glue
# ----------------------------------------------------------------------------
def positional_encoding_table(max_len, d_model):
    position = jnp.arange(max_len, dtype=jnp.float32)[:, None]
    div_term = jnp.exp(jnp.arange(0, d_model, 2, dtype=jnp.float32)
                       * (-math.log(10000.0) / d_model))
    pe = jnp.zeros((max_len, d_model), jnp.float32)
    pe = pe.at[:, 0::2].set(jnp.sin(position * div_term))
    pe = pe.at[:, 1::2].set(jnp.cos(position * div_term))
    return pe


def init_params(key, *, hidden, vocab, num_layers, ff_size, max_pos, pad_token_id):
    ks = iter(jax.random.split(key, 32))
    H, F = hidden, ff_size

    def w(shape, scale=0.02):   # matmul weights: pre-transposed [in, out], bf16
        return (jax.random.normal(next(ks), shape, jnp.float32)
                * scale).astype(jnp.bfloat16)

    def b(shape, scale=0.02):   # biases: f32
        return jax.random.normal(next(ks), shape, jnp.float32) * scale

    emb = jax.random.normal(next(ks), (vocab, H), jnp.float32)
    emb = emb.at[pad_token_id].set(0.0)   # nn.Embedding padding_idx row is zero

    # pack all small per-layer vectors into one lane-aligned slab (order matters;
    # the kernel unpacks in exactly this order)
    vec_parts = [
        b((num_layers, 1, 3 * H)),                    # self-attn in-proj bias
        b((num_layers, 1, H)),                        # self-attn out-proj bias
        b((num_layers, 1, H)),                        # cross-attn q bias
        b((num_layers, 1, 2 * H)),                    # cross-attn kv bias
        b((num_layers, 1, H)),                        # cross-attn out-proj bias
        b((num_layers, 1, F)),                        # ff1 bias
        b((num_layers, 1, H)),                        # ff2 bias
        jnp.ones((num_layers, 1, H), jnp.float32),    # ln1 gamma
        jnp.zeros((num_layers, 1, H), jnp.float32),   # ln1 beta
        jnp.ones((num_layers, 1, H), jnp.float32),    # ln2 gamma
        jnp.zeros((num_layers, 1, H), jnp.float32),   # ln2 beta
        jnp.ones((num_layers, 1, H), jnp.float32),    # ln3 gamma
        jnp.zeros((num_layers, 1, H), jnp.float32),   # ln3 beta
    ]

    return {
        "embedding": emb,
        "pe": positional_encoding_table(max_pos, H),
        "sa_w":   w((num_layers, H, 3 * H)),
        "sa_ow":  w((num_layers, H, H)),
        "ca_qw":  w((num_layers, H, H)),
        "ca_kvw": w((num_layers, H, 2 * H)),
        "ca_ow":  w((num_layers, H, H)),
        "ff1_w":  w((num_layers, H, F)),
        "ff2_w":  w((num_layers, F, H)),
        "layer_vec": jnp.concatenate(vec_parts, axis=-1),   # (nl, 1, 15H+F)
        "out_w": w((H, vocab)),
        "out_b": b((1, vocab)),
    }


def _round_up(x, m):
    return ((x + m - 1) // m) * m


def caption_decoder_forward(params, decoder_input_ids, decoder_attention_mask,
                            image_local_feat, *, pad_token_id, num_layers,
                            num_heads, batch_chunks=1, tile_m=512, tile_v=2048):
    # Like the reference forward, decoder_attention_mask is never used; the pad
    # mask is derived from (ids == pad_token_id).
    del decoder_attention_mask

    B, L = decoder_input_ids.shape
    V, H = params["embedding"].shape
    assert H % num_heads == 0
    assert B % batch_chunks == 0
    Bb = B // batch_chunks

    # embedding gather + sqrt(H) scale + positional encoding (elementwise glue)
    emb = params["embedding"][decoder_input_ids]                    # [B, L, H]
    tgt = (emb * math.sqrt(H) + params["pe"][:L][None]).astype(jnp.float32)

    # image features: NCHW -> [B, N, H]; img_feat_proj == Identity here
    if image_local_feat.ndim == 4:
        Bf, C, Hh, Ww = image_local_feat.shape
        assert C == H
        mem = image_local_feat.reshape(Bf, C, Hh * Ww).transpose(0, 2, 1)
    else:
        mem = image_local_feat
    mem = mem.astype(jnp.bfloat16)
    N = mem.shape[1]

    # additive self-attention bias: causal + tgt key padding
    causal = jnp.tril(jnp.ones((L, L), dtype=bool))
    key_valid = (decoder_input_ids != pad_token_id)[:, None, :]     # [B, 1, L]
    bias = jnp.where(causal[None] & key_valid, 0.0, -1e9).astype(jnp.float32)

    # ------------- kernel 1: decoder layers, grid (batch_chunks, num_layers) -
    mats = [params[n] for n in
            ["sa_w", "sa_ow", "ca_qw", "ca_kvw", "ca_ow", "ff1_w", "ff2_w"]]
    vec = params["layer_vec"]

    in_specs = (
        [pl.BlockSpec((Bb, L, H), lambda c, l: (c, 0, 0)),
         pl.BlockSpec((Bb, N, H), lambda c, l: (c, 0, 0)),
         pl.BlockSpec((Bb, L, L), lambda c, l: (c, 0, 0))]
        + [pl.BlockSpec((1,) + tuple(m.shape[1:]), lambda c, l: (l, 0, 0))
           for m in mats]
        + [pl.BlockSpec((1, 1, vec.shape[-1]), lambda c, l: (l, 0, 0))])

    kernel1 = functools.partial(decoder_layers_kernel, num_heads=num_heads)

    hidden_out = pl.pallas_call(
        kernel1,
        out_shape=jax.ShapeDtypeStruct((B, L, H), jnp.float32),
        grid=(batch_chunks, num_layers),
        in_specs=in_specs,
        out_specs=pl.BlockSpec((Bb, L, H), lambda c, l: (c, 0, 0)),
        compiler_params=pltpu.CompilerParams(
            dimension_semantics=("parallel", "arbitrary"),
            # keep headroom under v7x's 64 MiB physical VMEM
            vmem_limit_bytes=48 * 1024 * 1024),
    )(tgt, mem, bias, *mats, vec)

    # ------------- kernel 2: vocab projection, tiled over (M, vocab) ---------
    M = B * L
    x2 = hidden_out.reshape(M, H)            # f32; bf16 cast happens in-kernel

    tm = min(tile_m, _round_up(M, 8))
    m_pad = _round_up(M, tm)
    tv = min(tile_v, _round_up(V, 128))
    v_pad = _round_up(V, tv)

    if m_pad != M:
        x2 = jnp.pad(x2, ((0, m_pad - M), (0, 0)))
    out_w, out_b = params["out_w"], params["out_b"]
    if v_pad != V:
        out_w = jnp.pad(out_w, ((0, 0), (0, v_pad - V)))
        out_b = jnp.pad(out_b, ((0, 0), (0, v_pad - V)))

    logits = pl.pallas_call(
        output_proj_kernel,
        out_shape=jax.ShapeDtypeStruct((m_pad, v_pad), jnp.float32),
        grid=(m_pad // tm, v_pad // tv),
        in_specs=[pl.BlockSpec((tm, H), lambda i, j: (i, 0)),
                  pl.BlockSpec((H, tv), lambda i, j: (0, j)),
                  pl.BlockSpec((1, tv), lambda i, j: (0, j))],
        out_specs=pl.BlockSpec((tm, tv), lambda i, j: (i, j)),
        compiler_params=pltpu.CompilerParams(
            dimension_semantics=("parallel", "parallel"),
            vmem_limit_bytes=48 * 1024 * 1024),
    )(x2, out_w, out_b)

    return logits[:M, :V].reshape(B, L, V)


# ----------------------------------------------------------------------------
# Demo
# ----------------------------------------------------------------------------
if __name__ == "__main__":
    # small but lane-dense demo shapes (head_dim = 128, all feature dims % 128 == 0)
    hidden_size = 256
    vocab_size = 512
    num_layers = 2
    num_heads = 2          # head_dim = 128
    ff_size = 512
    max_pos = 64
    pad_id, bos_id, eos_id = 0, 1, 2
    B, L = 2, 16
    Hs, Ws = 4, 4          # image feature grid -> N = 16 memory tokens

    key = jax.random.PRNGKey(0)
    k_params, k_ids, k_img = jax.random.split(key, 3)

    params = init_params(k_params, hidden=hidden_size, vocab=vocab_size,
                         num_layers=num_layers, ff_size=ff_size,
                         max_pos=max_pos, pad_token_id=pad_id)

    decoder_input_ids = jax.random.randint(k_ids, (B, L), 3, vocab_size)
    decoder_input_ids = decoder_input_ids.at[:, 0].set(bos_id)
    decoder_input_ids = decoder_input_ids.at[0, 12:].set(pad_id)   # some padding
    decoder_attention_mask = (decoder_input_ids != pad_id).astype(jnp.int32)

    # image_local_feat already projected to hidden_size channels (NCHW)
    image_local_feat = jax.random.normal(
        k_img, (B, hidden_size, Hs, Ws), dtype=jnp.float32)

    logits = caption_decoder_forward(
        params, decoder_input_ids, decoder_attention_mask, image_local_feat,
        pad_token_id=pad_id, num_layers=num_layers, num_heads=num_heads,
        batch_chunks=1)    # set to 2 on v7x to shard the batch across both TCs
    logits = jax.block_until_ready(logits)

    assert logits.shape == (B, L, vocab_size), logits.shape
    assert bool(jnp.all(jnp.isfinite(logits)))
    # TODO(synk): generate_beam (host-side autoregressive beam search + tokenizer
    # decode) is driver logic, not a kernel, and is intentionally not ported.
    print("KERNEL_OK")
</pallas_src>

<mosaic_0001>
module attributes {stable_mosaic.version = 11 : i64} {
  func.func @decoder_layers_kernel(%arg0: i32, %arg1: i32, %arg2: memref<2x16x256xf32, #tpu.memory_space<vmem>>, %arg3: memref<2x16x256xbf16, #tpu.memory_space<vmem>>, %arg4: memref<2x16x16xf32, #tpu.memory_space<vmem>>, %arg5: memref<1x256x768xbf16, #tpu.memory_space<vmem>>, %arg6: memref<1x256x256xbf16, #tpu.memory_space<vmem>>, %arg7: memref<1x256x256xbf16, #tpu.memory_space<vmem>>, %arg8: memref<1x256x512xbf16, #tpu.memory_space<vmem>>, %arg9: memref<1x256x256xbf16, #tpu.memory_space<vmem>>, %arg10: memref<1x256x512xbf16, #tpu.memory_space<vmem>>, %arg11: memref<1x512x256xbf16, #tpu.memory_space<vmem>>, %arg12: memref<1x1x4352xf32, #tpu.memory_space<vmem>>, %arg13: memref<2x16x256xf32, #tpu.memory_space<vmem>>) attributes {dimension_semantics = [#tpu.dimension_semantics<parallel>, #tpu.dimension_semantics<arbitrary>], iteration_bounds = array<i64: 1, 2>, scalar_prefetch = 0 : i64, scratch_operands = 0 : i64, tpu.core_type = #tpu.core_type<tc>, window_params = [{transform_indices = @transform_0, window_bounds = array<i64: 2, 16, 256>}, {transform_indices = @transform_1, window_bounds = array<i64: 2, 16, 256>}, {transform_indices = @transform_2, window_bounds = array<i64: 2, 16, 16>}, {transform_indices = @transform_3, window_bounds = array<i64: 1, 256, 768>}, {transform_indices = @transform_4, window_bounds = array<i64: 1, 256, 256>}, {transform_indices = @transform_5, window_bounds = array<i64: 1, 256, 256>}, {transform_indices = @transform_6, window_bounds = array<i64: 1, 256, 512>}, {transform_indices = @transform_7, window_bounds = array<i64: 1, 256, 256>}, {transform_indices = @transform_8, window_bounds = array<i64: 1, 256, 512>}, {transform_indices = @transform_9, window_bounds = array<i64: 1, 512, 256>}, {transform_indices = @transform_10, window_bounds = array<i64: 1, 1, 4352>}, {transform_indices = @transform_11, window_bounds = array<i64: 2, 16, 256>}]} {
    %c0_i32 = arith.constant 0 : i32
    %0 = arith.cmpi eq, %arg1, %c0_i32 : i32
    %1 = arith.extui %0 : i1 to i32
    %c0_i32_0 = arith.constant 0 : i32
    %2 = arith.cmpi ne, %1, %c0_i32_0 : i32
    scf.if %2 {
      %c0_92 = arith.constant 0 : index
      %c0_93 = arith.constant 0 : index
      %c0_94 = arith.constant 0 : index
      %252 = vector.load %arg2[%c0_92, %c0_93, %c0_94] : memref<2x16x256xf32, #tpu.memory_space<vmem>>, vector<2x16x256xf32>
      %c0_95 = arith.constant 0 : index
      %c0_96 = arith.constant 0 : index
      %c0_97 = arith.constant 0 : index
      %253 = vector.load %arg13[%c0_95, %c0_96, %c0_97] : memref<2x16x256xf32, #tpu.memory_space<vmem>>, vector<2x16x256xf32>
      tpu.vector_store %arg13[%c0_95, %c0_96, %c0_97], %252 {strides = array<i32>} : memref<2x16x256xf32, #tpu.memory_space<vmem>>, vector<2x16x256xf32>,
    } else {
    }
    %c0 = arith.constant 0 : index
    %c0_1 = arith.constant 0 : index
    %c0_2 = arith.constant 0 : index
    %3 = vector.load %arg12[%c0, %c0_1, %c0_2] : memref<1x1x4352xf32, #tpu.memory_space<vmem>>, vector<1x1x768xf32>
    %4 = vector.shape_cast %3 : vector<1x1x768xf32> to vector<1x768xf32>
    %c0_3 = arith.constant 0 : index
    %c0_4 = arith.constant 0 : index
    %c768 = arith.constant 768 : index
    %5 = vector.load %arg12[%c0_3, %c0_4, %c768] : memref<1x1x4352xf32, #tpu.memory_space<vmem>>, vector<1x1x256xf32>
    %6 = vector.shape_cast %5 : vector<1x1x256xf32> to vector<1x256xf32>
    %c0_5 = arith.constant 0 : index
    %c0_6 = arith.constant 0 : index
    %c1024 = arith.constant 1024 : index
    %7 = vector.load %arg12[%c0_5, %c0_6, %c1024] : memref<1x1x4352xf32, #tpu.memory_space<vmem>>, vector<1x1x256xf32>
    %8 = vector.shape_cast %7 : vector<1x1x256xf32> to vector<1x256xf32>
    %c0_7 = arith.constant 0 : index
    %c0_8 = arith.constant 0 : index
    %c1280 = arith.constant 1280 : index
    %9 = vector.load %arg12[%c0_7, %c0_8, %c1280] : memref<1x1x4352xf32, #tpu.memory_space<vmem>>, vector<1x1x512xf32>
    %10 = vector.shape_cast %9 : vector<1x1x512xf32> to vector<1x512xf32>
    %c0_9 = arith.constant 0 : index
    %c0_10 = arith.constant 0 : index
    %c1792 = arith.constant 1792 : index
    %11 = vector.load %arg12[%c0_9, %c0_10, %c1792] : memref<1x1x4352xf32, #tpu.memory_space<vmem>>, vector<1x1x256xf32>
    %12 = vector.shape_cast %11 : vector<1x1x256xf32> to vector<1x256xf32>
    %c0_11 = arith.constant 0 : index
    %c0_12 = arith.constant 0 : index
    %c2048 = arith.constant 2048 : index
    %13 = vector.load %arg12[%c0_11, %c0_12, %c2048] : memref<1x1x4352xf32, #tpu.memory_space<vmem>>, vector<1x1x512xf32>
    %14 = vector.shape_cast %13 : vector<1x1x512xf32> to vector<1x512xf32>
    %c0_13 = arith.constant 0 : index
    %c0_14 = arith.constant 0 : index
    %c2560 = arith.constant 2560 : index
    %15 = vector.load %arg12[%c0_13, %c0_14, %c2560] : memref<1x1x4352xf32, #tpu.memory_space<vmem>>, vector<1x1x256xf32>
    %16 = vector.shape_cast %15 : vector<1x1x256xf32> to vector<1x256xf32>
    %c0_15 = arith.constant 0 : index
    %c0_16 = arith.constant 0 : index
    %c2816 = arith.constant 2816 : index
    %17 = vector.load %arg12[%c0_15, %c0_16, %c2816] : memref<1x1x4352xf32, #tpu.memory_space<vmem>>, vector<1x1x256xf32>
    %18 = vector.shape_cast %17 : vector<1x1x256xf32> to vector<1x256xf32>
    %c0_17 = arith.constant 0 : index
    %c0_18 = arith.constant 0 : index
    %c3072 = arith.constant 3072 : index
    %19 = vector.load %arg12[%c0_17, %c0_18, %c3072] : memref<1x1x4352xf32, #tpu.memory_space<vmem>>, vector<1x1x256xf32>
    %20 = vector.shape_cast %19 : vector<1x1x256xf32> to vector<1x256xf32>
    %c0_19 = arith.constant 0 : index
    %c0_20 = arith.constant 0 : index
    %c3328 = arith.constant 3328 : index
    %21 = vector.load %arg12[%c0_19, %c0_20, %c3328] : memref<1x1x4352xf32, #tpu.memory_space<vmem>>, vector<1x1x256xf32>
    %22 = vector.shape_cast %21 : vector<1x1x256xf32> to vector<1x256xf32>
    %c0_21 = arith.constant 0 : index
    %c0_22 = arith.constant 0 : index
    %c3584 = arith.constant 3584 : index
    %23 = vector.load %arg12[%c0_21, %c0_22, %c3584] : memref<1x1x4352xf32, #tpu.memory_space<vmem>>, vector<1x1x256xf32>
    %24 = vector.shape_cast %23 : vector<1x1x256xf32> to vector<1x256xf32>
    %c0_23 = arith.constant 0 : index
    %c0_24 = arith.constant 0 : index
    %c3840 = arith.constant 3840 : index
    %25 = vector.load %arg12[%c0_23, %c0_24, %c3840] : memref<1x1x4352xf32, #tpu.memory_space<vmem>>, vector<1x1x256xf32>
    %26 = vector.shape_cast %25 : vector<1x1x256xf32> to vector<1x256xf32>
    %c0_25 = arith.constant 0 : index
    %c0_26 = arith.constant 0 : index
    %c4096 = arith.constant 4096 : index
    %27 = vector.load %arg12[%c0_25, %c0_26, %c4096] : memref<1x1x4352xf32, #tpu.memory_space<vmem>>, vector<1x1x256xf32>
    %28 = vector.shape_cast %27 : vector<1x1x256xf32> to vector<1x256xf32>
    %c0_27 = arith.constant 0 : index
    %c0_28 = arith.constant 0 : index
    %c0_29 = arith.constant 0 : index
    %29 = vector.load %arg13[%c0_27, %c0_28, %c0_29] : memref<2x16x256xf32, #tpu.memory_space<vmem>>, vector<2x16x256xf32>
    %30 = vector.shape_cast %29 : vector<2x16x256xf32> to vector<32x256xf32>
    %c0_30 = arith.constant 0 : index
    %c0_31 = arith.constant 0 : index
    %c0_32 = arith.constant 0 : index
    %31 = vector.load %arg4[%c0_30, %c0_31, %c0_32] : memref<2x16x16xf32, #tpu.memory_space<vmem>>, vector<2x16x16xf32>
    %c0_33 = arith.constant 0 : index
    %c0_34 = arith.constant 0 : index
    %c0_35 = arith.constant 0 : index
    %32 = vector.load %arg3[%c0_33, %c0_34, %c0_35] : memref<2x16x256xbf16, #tpu.memory_space<vmem>>, vector<2x16x256xbf16>
    %33 = vector.shape_cast %32 : vector<2x16x256xbf16> to vector<32x256xbf16>
    %34 = arith.truncf %30 : vector<32x256xf32> to vector<32x256xbf16>
    %c0_36 = arith.constant 0 : index
    %c0_37 = arith.constant 0 : index
    %c0_38 = arith.constant 0 : index
    %35 = vector.load %arg5[%c0_36, %c0_37, %c0_38] : memref<1x256x768xbf16, #tpu.memory_space<vmem>>, vector<1x256x768xbf16>
    %36 = vector.shape_cast %35 : vector<1x256x768xbf16> to vector<256x768xbf16>
    %cst = arith.constant dense<0.000000e+00> : vector<32x768xf32>
    %37 = tpu.matmul %34, %36, %cst {dimension_numbers = #tpu.dot_dimension_numbers<[1], [0], [0], [1], [0, 0, 1, 1], [], []>} : vector<32x256xbf16>, vector<256x768xbf16>, vector<32x768xf32> -> vector<32x768xf32>
    %38 = vector.broadcast %4 : vector<1x768xf32> to vector<32x768xf32>
    %39 = arith.addf %37, %38 : vector<32x768xf32>
    %40 = vector.extract_strided_slice %39 {offsets = [0, 0], sizes = [32, 256], strides = [1, 1]} : vector<32x768xf32> to vector<32x256xf32>
    %41 = vector.extract_strided_slice %39 {offsets = [0, 256], sizes = [32, 256], strides = [1, 1]} : vector<32x768xf32> to vector<32x256xf32>
    %42 = vector.extract_strided_slice %39 {offsets = [0, 512], sizes = [32, 256], strides = [1, 1]} : vector<32x768xf32> to vector<32x256xf32>
    %cst_39 = arith.constant 0.0883883461 : f32
    %43 = vector.broadcast %cst_39 : f32 to vector<32x256xf32>
    %44 = arith.mulf %40, %43 : vector<32x256xf32>
    %45 = arith.truncf %44 : vector<32x256xf32> to vector<32x256xbf16>
    %46 = arith.truncf %41 : vector<32x256xf32> to vector<32x256xbf16>
    %47 = arith.truncf %42 : vector<32x256xf32> to vector<32x256xbf16>
    %48 = vector.extract_strided_slice %45 {offsets = [0, 0], sizes = [32, 128], strides = [1, 1]} : vector<32x256xbf16> to vector<32x128xbf16>
    %49 = vector.shape_cast %48 : vector<32x128xbf16> to vector<2x16x128xbf16>
    %50 = vector.extract_strided_slice %45 {offsets = [0, 128], sizes = [32, 128], strides = [1, 1]} : vector<32x256xbf16> to vector<32x128xbf16>
    %51 = vector.shape_cast %50 : vector<32x128xbf16> to vector<2x16x128xbf16>
    %52 = vector.shape_cast %49 : vector<2x16x128xbf16> to vector<1x2x16x128xbf16>
    %53 = vector.shape_cast %51 : vector<2x16x128xbf16> to vector<1x2x16x128xbf16>
    %54 = tpu.concatenate %52, %53 in 0 : vector<1x2x16x128xbf16>, vector<1x2x16x128xbf16> -> vector<2x2x16x128xbf16>
    %55 = vector.shape_cast %54 : vector<2x2x16x128xbf16> to vector<4x16x128xbf16>
    %56 = vector.extract_strided_slice %46 {offsets = [0, 0], sizes = [32, 128], strides = [1, 1]} : vector<32x256xbf16> to vector<32x128xbf16>
    %57 = vector.shape_cast %56 : vector<32x128xbf16> to vector<2x16x128xbf16>
    %58 = vector.extract_strided_slice %46 {offsets = [0, 128], sizes = [32, 128], strides = [1, 1]} : vector<32x256xbf16> to vector<32x128xbf16>
    %59 = vector.shape_cast %58 : vector<32x128xbf16> to vector<2x16x128xbf16>
    %60 = vector.shape_cast %57 : vector<2x16x128xbf16> to vector<1x2x16x128xbf16>
    %61 = vector.shape_cast %59 : vector<2x16x128xbf16> to vector<1x2x16x128xbf16>
    %62 = tpu.concatenate %60, %61 in 0 : vector<1x2x16x128xbf16>, vector<1x2x16x128xbf16> -> vector<2x2x16x128xbf16>
    %63 = vector.shape_cast %62 : vector<2x2x16x128xbf16> to vector<4x16x128xbf16>
    %64 = vector.extract_strided_slice %47 {offsets = [0, 0], sizes = [32, 128], strides = [1, 1]} : vector<32x256xbf16> to vector<32x128xbf16>
    %65 = vector.shape_cast %64 : vector<32x128xbf16> to vector<2x16x128xbf16>
    %66 = vector.extract_strided_slice %47 {offsets = [0, 128], sizes = [32, 128], strides = [1, 1]} : vector<32x256xbf16> to vector<32x128xbf16>
    %67 = vector.shape_cast %66 : vector<32x128xbf16> to vector<2x16x128xbf16>
    %68 = vector.shape_cast %65 : vector<2x16x128xbf16> to vector<1x2x16x128xbf16>
    %69 = vector.shape_cast %67 : vector<2x16x128xbf16> to vector<1x2x16x128xbf16>
    %70 = tpu.concatenate %68, %69 in 0 : vector<1x2x16x128xbf16>, vector<1x2x16x128xbf16> -> vector<2x2x16x128xbf16>
    %71 = vector.shape_cast %70 : vector<2x2x16x128xbf16> to vector<4x16x128xbf16>
    "tpu.trace_start"() <{level = 10 : i32, message = "bld,bsd->bls"}> : () -> ()
    %cst_40 = arith.constant dense<0.000000e+00> : vector<4x16x16xf32>
    %72 = tpu.matmul %55, %63, %cst_40 {dimension_numbers = #tpu.dot_dimension_numbers<[2], [2], [1], [1], [0, 0, 0, 1, 1, 1], [0], [0]>} : vector<4x16x128xbf16>, vector<4x16x128xbf16>, vector<4x16x16xf32> -> vector<4x16x16xf32>
    "tpu.trace_stop"() : () -> ()
    %73 = vector.shape_cast %72 : vector<4x16x16xf32> to vector<2x2x16x16xf32>
    %74 = vector.shape_cast %31 : vector<2x16x16xf32> to vector<1x2x16x16xf32>
    %75 = vector.broadcast %74 : vector<1x2x16x16xf32> to vector<2x2x16x16xf32>
    %76 = arith.addf %73, %75 : vector<2x2x16x16xf32>
    %77 = vector.shape_cast %76 : vector<2x2x16x16xf32> to vector<4x16x16xf32>
    %cst_41 = arith.constant dense<0xFF800000> : vector<4x16xf32>
    %78 = vector.multi_reduction <maximumf>, %77, %cst_41 [2] : vector<4x16x16xf32> to vector<4x16xf32>
    %79 = vector.shape_cast %78 : vector<4x16xf32> to vector<4x16x1xf32>
    %80 = vector.broadcast %79 : vector<4x16x1xf32> to vector<4x16x16xf32>
    %81 = arith.subf %77, %80 : vector<4x16x16xf32>
    %82 = math.exp %81 : vector<4x16x16xf32>
    %cst_42 = arith.constant dense<0.000000e+00> : vector<4x16xf32>
    %83 = vector.multi_reduction <add>, %82, %cst_42 [2] : vector<4x16x16xf32> to vector<4x16xf32>
    %84 = vector.shape_cast %83 : vector<4x16xf32> to vector<4x16x1xf32>
    %85 = tpu.reciprocal %84 {approx = true} : vector<4x16x1xf32> -> vector<4x16x1xf32>
    %86 = vector.broadcast %85 : vector<4x16x1xf32> to vector<4x16x16xf32>
    %87 = arith.mulf %82, %86 : vector<4x16x16xf32>
    %88 = arith.truncf %87 : vector<4x16x16xf32> to vector<4x16x16xbf16>
    "tpu.trace_start"() <{level = 10 : i32, message = "bls,bsd->bld"}> : () -> ()
    %cst_43 = arith.constant dense<0.000000e+00> : vector<4x16x128xf32>
    %89 = tpu.matmul %88, %71, %cst_43 {dimension_numbers = #tpu.dot_dimension_numbers<[2], [1], [1], [2], [0, 0, 0, 1, 1, 2], [0], [0]>} : vector<4x16x16xbf16>, vector<4x16x128xbf16>, vector<4x16x128xf32> -> vector<4x16x128xf32>
    "tpu.trace_stop"() : () -> ()
    %90 = vector.extract_strided_slice %89 {offsets = [0, 0, 0], sizes = [2, 16, 128], strides = [1, 1, 1]} : vector<4x16x128xf32> to vector<2x16x128xf32>
    %91 = vector.shape_cast %90 : vector<2x16x128xf32> to vector<32x128xf32>
    %92 = vector.extract_strided_slice %89 {offsets = [2, 0, 0], sizes = [2, 16, 128], strides = [1, 1, 1]} : vector<4x16x128xf32> to vector<2x16x128xf32>
    %93 = vector.shape_cast %92 : vector<2x16x128xf32> to vector<32x128xf32>
    %94 = tpu.concatenate %91, %93 in 1 : vector<32x128xf32>, vector<32x128xf32> -> vector<32x256xf32>
    %95 = arith.truncf %94 : vector<32x256xf32> to vector<32x256xbf16>
    %c0_44 = arith.constant 0 : index
    %c0_45 = arith.constant 0 : index
    %c0_46 = arith.constant 0 : index
    %96 = vector.load %arg6[%c0_44, %c0_45, %c0_46] : memref<1x256x256xbf16, #tpu.memory_space<vmem>>, vector<1x256x256xbf16>
    %97 = vector.shape_cast %96 : vector<1x256x256xbf16> to vector<256x256xbf16>
    %cst_47 = arith.constant dense<0.000000e+00> : vector<32x256xf32>
    %98 = tpu.matmul %95, %97, %cst_47 {dimension_numbers = #tpu.dot_dimension_numbers<[1], [0], [0], [1], [0, 0, 1, 1], [], []>} : vector<32x256xbf16>, vector<256x256xbf16>, vector<32x256xf32> -> vector<32x256xf32>
    %99 = vector.broadcast %6 : vector<1x256xf32> to vector<32x256xf32>
    %100 = arith.addf %98, %99 : vector<32x256xf32>
    %101 = arith.addf %30, %100 : vector<32x256xf32>
    %cst_48 = arith.constant dense<0.000000e+00> : vector<32xf32>
    %102 = vector.multi_reduction <add>, %101, %cst_48 [1] : vector<32x256xf32> to vector<32xf32>
    %103 = vector.shape_cast %102 : vector<32xf32> to vector<32x1xf32>
    %cst_49 = arith.constant 2.560000e+02 : f32
    %104 = vector.broadcast %cst_49 : f32 to vector<32x1xf32>
    %105 = arith.divf %103, %104 : vector<32x1xf32>
    %106 = vector.broadcast %105 : vector<32x1xf32> to vector<32x256xf32>
    %107 = arith.subf %101, %106 : vector<32x256xf32>
    %108 = arith.mulf %107, %107 : vector<32x256xf32>
    %cst_50 = arith.constant dense<0.000000e+00> : vector<32xf32>
    %109 = vector.multi_reduction <add>, %108, %cst_50 [1] : vector<32x256xf32> to vector<32xf32>
    %110 = vector.shape_cast %109 : vector<32xf32> to vector<32x1xf32>
    %cst_51 = arith.constant 2.560000e+02 : f32
    %111 = vector.broadcast %cst_51 : f32 to vector<32x1xf32>
    %112 = arith.divf %110, %111 : vector<32x1xf32>
    %113 = vector.broadcast %105 : vector<32x1xf32> to vector<32x256xf32>
    %114 = arith.subf %101, %113 : vector<32x256xf32>
    %cst_52 = arith.constant 9.99999974E-6 : f32
    %115 = vector.broadcast %cst_52 : f32 to vector<32x1xf32>
    %116 = arith.addf %112, %115 : vector<32x1xf32>
    %117 = math.rsqrt %116 : vector<32x1xf32>
    %118 = vector.broadcast %117 : vector<32x1xf32> to vector<32x256xf32>
    %119 = arith.mulf %114, %118 : vector<32x256xf32>
    %120 = vector.broadcast %18 : vector<1x256xf32> to vector<32x256xf32>
    %121 = arith.mulf %119, %120 : vector<32x256xf32>
    %122 = vector.broadcast %20 : vector<1x256xf32> to vector<32x256xf32>
    %123 = arith.addf %121, %122 : vector<32x256xf32>
    %124 = arith.truncf %123 : vector<32x256xf32> to vector<32x256xbf16>
    %c0_53 = arith.constant 0 : index
    %c0_54 = arith.constant 0 : index
    %c0_55 = arith.constant 0 : index
    %125 = vector.load %arg7[%c0_53, %c0_54, %c0_55] : memref<1x256x256xbf16, #tpu.memory_space<vmem>>, vector<1x256x256xbf16>
    %126 = vector.shape_cast %125 : vector<1x256x256xbf16> to vector<256x256xbf16>
    %cst_56 = arith.constant dense<0.000000e+00> : vector<32x256xf32>
    %127 = tpu.matmul %124, %126, %cst_56 {dimension_numbers = #tpu.dot_dimension_numbers<[1], [0], [0], [1], [0, 0, 1, 1], [], []>} : vector<32x256xbf16>, vector<256x256xbf16>, vector<32x256xf32> -> vector<32x256xf32>
    %128 = vector.broadcast %8 : vector<1x256xf32> to vector<32x256xf32>
    %129 = arith.addf %127, %128 : vector<32x256xf32>
    %c0_57 = arith.constant 0 : index
    %c0_58 = arith.constant 0 : index
    %c0_59 = arith.constant 0 : index
    %130 = vector.load %arg8[%c0_57, %c0_58, %c0_59] : memref<1x256x512xbf16, #tpu.memory_space<vmem>>, vector<1x256x512xbf16>
    %131 = vector.shape_cast %130 : vector<1x256x512xbf16> to vector<256x512xbf16>
    %cst_60 = arith.constant dense<0.000000e+00> : vector<32x512xf32>
    %132 = tpu.matmul %33, %131, %cst_60 {dimension_numbers = #tpu.dot_dimension_numbers<[1], [0], [0], [1], [0, 0, 1, 1], [], []>} : vector<32x256xbf16>, vector<256x512xbf16>, vector<32x512xf32> -> vector<32x512xf32>
    %133 = vector.broadcast %10 : vector<1x512xf32> to vector<32x512xf32>
    %134 = arith.addf %132, %133 : vector<32x512xf32>
    %135 = vector.extract_strided_slice %134 {offsets = [0, 0], sizes = [32, 256], strides = [1, 1]} : vector<32x512xf32> to vector<32x256xf32>
    %136 = vector.extract_strided_slice %134 {offsets = [0, 256], sizes = [32, 256], strides = [1, 1]} : vector<32x512xf32> to vector<32x256xf32>
    %cst_61 = arith.constant 0.0883883461 : f32
    %137 = vector.broadcast %cst_61 : f32 to vector<32x256xf32>
    %138 = arith.mulf %129, %137 : vector<32x256xf32>
    %139 = arith.truncf %138 : vector<32x256xf32> to vector<32x256xbf16>
    %140 = arith.truncf %135 : vector<32x256xf32> to vector<32x256xbf16>
    %141 = arith.truncf %136 : vector<32x256xf32> to vector<32x256xbf16>
    %142 = vector.extract_strided_slice %139 {offsets = [0, 0], sizes = [32, 128], strides = [1, 1]} : vector<32x256xbf16> to vector<32x128xbf16>
    %143 = vector.shape_cast %142 : vector<32x128xbf16> to vector<2x16x128xbf16>
    %144 = vector.extract_strided_slice %139 {offsets = [0, 128], sizes = [32, 128], strides = [1, 1]} : vector<32x256xbf16> to vector<32x128xbf16>
    %145 = vector.shape_cast %144 : vector<32x128xbf16> to vector<2x16x128xbf16>
    %146 = vector.shape_cast %143 : vector<2x16x128xbf16> to vector<1x2x16x128xbf16>
    %147 = vector.shape_cast %145 : vector<2x16x128xbf16> to vector<1x2x16x128xbf16>
    %148 = tpu.concatenate %146, %147 in 0 : vector<1x2x16x128xbf16>, vector<1x2x16x128xbf16> -> vector<2x2x16x128xbf16>
    %149 = vector.shape_cast %148 : vector<2x2x16x128xbf16> to vector<4x16x128xbf16>
    %150 = vector.extract_strided_slice %140 {offsets = [0, 0], sizes = [32, 128], strides = [1, 1]} : vector<32x256xbf16> to vector<32x128xbf16>
    %151 = vector.shape_cast %150 : vector<32x128xbf16> to vector<2x16x128xbf16>
    %152 = vector.extract_strided_slice %140 {offsets = [0, 128], sizes = [32, 128], strides = [1, 1]} : vector<32x256xbf16> to vector<32x128xbf16>
    %153 = vector.shape_cast %152 : vector<32x128xbf16> to vector<2x16x128xbf16>
    %154 = vector.shape_cast %151 : vector<2x16x128xbf16> to vector<1x2x16x128xbf16>
    %155 = vector.shape_cast %153 : vector<2x16x128xbf16> to vector<1x2x16x128xbf16>
    %156 = tpu.concatenate %154, %155 in 0 : vector<1x2x16x128xbf16>, vector<1x2x16x128xbf16> -> vector<2x2x16x128xbf16>
    %157 = vector.shape_cast %156 : vector<2x2x16x128xbf16> to vector<4x16x128xbf16>
    %158 = vector.extract_strided_slice %141 {offsets = [0, 0], sizes = [32, 128], strides = [1, 1]} : vector<32x256xbf16> to vector<32x128xbf16>
    %159 = vector.shape_cast %158 : vector<32x128xbf16> to vector<2x16x128xbf16>
    %160 = vector.extract_strided_slice %141 {offsets = [0, 128], sizes = [32, 128], strides = [1, 1]} : vector<32x256xbf16> to vector<32x128xbf16>
    %161 = vector.shape_cast %160 : vector<32x128xbf16> to vector<2x16x128xbf16>
    %162 = vector.shape_cast %159 : vector<2x16x128xbf16> to vector<1x2x16x128xbf16>
    %163 = vector.shape_cast %161 : vector<2x16x128xbf16> to vector<1x2x16x128xbf16>
    %164 = tpu.concatenate %162, %163 in 0 : vector<1x2x16x128xbf16>, vector<1x2x16x128xbf16> -> vector<2x2x16x128xbf16>
    %165 = vector.shape_cast %164 : vector<2x2x16x128xbf16> to vector<4x16x128xbf16>
    "tpu.trace_start"() <{level = 10 : i32, message = "bld,bsd->bls"}> : () -> ()
    %cst_62 = arith.constant dense<0.000000e+00> : vector<4x16x16xf32>
    %166 = tpu.matmul %149, %157, %cst_62 {dimension_numbers = #tpu.dot_dimension_numbers<[2], [2], [1], [1], [0, 0, 0, 1, 1, 1], [0], [0]>} : vector<4x16x128xbf16>, vector<4x16x128xbf16>, vector<4x16x16xf32> -> vector<4x16x16xf32>
    "tpu.trace_stop"() : () -> ()
    %cst_63 = arith.constant dense<0xFF800000> : vector<4x16xf32>
    %167 = vector.multi_reduction <maximumf>, %166, %cst_63 [2] : vector<4x16x16xf32> to vector<4x16xf32>
    %168 = vector.shape_cast %167 : vector<4x16xf32> to vector<4x16x1xf32>
    %169 = vector.broadcast %168 : vector<4x16x1xf32> to vector<4x16x16xf32>
    %170 = arith.subf %166, %169 : vector<4x16x16xf32>
    %171 = math.exp %170 : vector<4x16x16xf32>
    %cst_64 = arith.constant dense<0.000000e+00> : vector<4x16xf32>
    %172 = vector.multi_reduction <add>, %171, %cst_64 [2] : vector<4x16x16xf32> to vector<4x16xf32>
    %173 = vector.shape_cast %172 : vector<4x16xf32> to vector<4x16x1xf32>
    %174 = tpu.reciprocal %173 {approx = true} : vector<4x16x1xf32> -> vector<4x16x1xf32>
    %175 = vector.broadcast %174 : vector<4x16x1xf32> to vector<4x16x16xf32>
    %176 = arith.mulf %171, %175 : vector<4x16x16xf32>
    %177 = arith.truncf %176 : vector<4x16x16xf32> to vector<4x16x16xbf16>
    "tpu.trace_start"() <{level = 10 : i32, message = "bls,bsd->bld"}> : () -> ()
    %cst_65 = arith.constant dense<0.000000e+00> : vector<4x16x128xf32>
    %178 = tpu.matmul %177, %165, %cst_65 {dimension_numbers = #tpu.dot_dimension_numbers<[2], [1], [1], [2], [0, 0, 0, 1, 1, 2], [0], [0]>} : vector<4x16x16xbf16>, vector<4x16x128xbf16>, vector<4x16x128xf32> -> vector<4x16x128xf32>
    "tpu.trace_stop"() : () -> ()
    %179 = vector.extract_strided_slice %178 {offsets = [0, 0, 0], sizes = [2, 16, 128], strides = [1, 1, 1]} : vector<4x16x128xf32> to vector<2x16x128xf32>
    %180 = vector.shape_cast %179 : vector<2x16x128xf32> to vector<32x128xf32>
    %181 = vector.extract_strided_slice %178 {offsets = [2, 0, 0], sizes = [2, 16, 128], strides = [1, 1, 1]} : vector<4x16x128xf32> to vector<2x16x128xf32>
    %182 = vector.shape_cast %181 : vector<2x16x128xf32> to vector<32x128xf32>
    %183 = tpu.concatenate %180, %182 in 1 : vector<32x128xf32>, vector<32x128xf32> -> vector<32x256xf32>
    %184 = arith.truncf %183 : vector<32x256xf32> to vector<32x256xbf16>
    %c0_66 = arith.constant 0 : index
    %c0_67 = arith.constant 0 : index
    %c0_68 = arith.constant 0 : index
    %185 = vector.load %arg9[%c0_66, %c0_67, %c0_68] : memref<1x256x256xbf16, #tpu.memory_space<vmem>>, vector<1x256x256xbf16>
    %186 = vector.shape_cast %185 : vector<1x256x256xbf16> to vector<256x256xbf16>
    %cst_69 = arith.constant dense<0.000000e+00> : vector<32x256xf32>
    %187 = tpu.matmul %184, %186, %cst_69 {dimension_numbers = #tpu.dot_dimension_numbers<[1], [0], [0], [1], [0, 0, 1, 1], [], []>} : vector<32x256xbf16>, vector<256x256xbf16>, vector<32x256xf32> -> vector<32x256xf32>
    %188 = vector.broadcast %12 : vector<1x256xf32> to vector<32x256xf32>
    %189 = arith.addf %187, %188 : vector<32x256xf32>
    %190 = arith.addf %123, %189 : vector<32x256xf32>
    %cst_70 = arith.constant dense<0.000000e+00> : vector<32xf32>
    %191 = vector.multi_reduction <add>, %190, %cst_70 [1] : vector<32x256xf32> to vector<32xf32>
    %192 = vector.shape_cast %191 : vector<32xf32> to vector<32x1xf32>
    %cst_71 = arith.constant 2.560000e+02 : f32
    %193 = vector.broadcast %cst_71 : f32 to vector<32x1xf32>
    %194 = arith.divf %192, %193 : vector<32x1xf32>
    %195 = vector.broadcast %194 : vector<32x1xf32> to vector<32x256xf32>
    %196 = arith.subf %190, %195 : vector<32x256xf32>
    %197 = arith.mulf %196, %196 : vector<32x256xf32>
    %cst_72 = arith.constant dense<0.000000e+00> : vector<32xf32>
    %198 = vector.multi_reduction <add>, %197, %cst_72 [1] : vector<32x256xf32> to vector<32xf32>
    %199 = vector.shape_cast %198 : vector<32xf32> to vector<32x1xf32>
    %cst_73 = arith.constant 2.560000e+02 : f32
    %200 = vector.broadcast %cst_73 : f32 to vector<32x1xf32>
    %201 = arith.divf %199, %200 : vector<32x1xf32>
    %202 = vector.broadcast %194 : vector<32x1xf32> to vector<32x256xf32>
    %203 = arith.subf %190, %202 : vector<32x256xf32>
    %cst_74 = arith.constant 9.99999974E-6 : f32
    %204 = vector.broadcast %cst_74 : f32 to vector<32x1xf32>
    %205 = arith.addf %201, %204 : vector<32x1xf32>
    %206 = math.rsqrt %205 : vector<32x1xf32>
    %207 = vector.broadcast %206 : vector<32x1xf32> to vector<32x256xf32>
    %208 = arith.mulf %203, %207 : vector<32x256xf32>
    %209 = vector.broadcast %22 : vector<1x256xf32> to vector<32x256xf32>
    %210 = arith.mulf %208, %209 : vector<32x256xf32>
    %211 = vector.broadcast %24 : vector<1x256xf32> to vector<32x256xf32>
    %212 = arith.addf %210, %211 : vector<32x256xf32>
    %213 = arith.truncf %212 : vector<32x256xf32> to vector<32x256xbf16>
    %c0_75 = arith.constant 0 : index
    %c0_76 = arith.constant 0 : index
    %c0_77 = arith.constant 0 : index
    %214 = vector.load %arg10[%c0_75, %c0_76, %c0_77] : memref<1x256x512xbf16, #tpu.memory_space<vmem>>, vector<1x256x512xbf16>
    %215 = vector.shape_cast %214 : vector<1x256x512xbf16> to vector<256x512xbf16>
    %cst_78 = arith.constant dense<0.000000e+00> : vector<32x512xf32>
    %216 = tpu.matmul %213, %215, %cst_78 {dimension_numbers = #tpu.dot_dimension_numbers<[1], [0], [0], [1], [0, 0, 1, 1], [], []>} : vector<32x256xbf16>, vector<256x512xbf16>, vector<32x512xf32> -> vector<32x512xf32>
    %217 = vector.broadcast %14 : vector<1x512xf32> to vector<32x512xf32>
    %218 = arith.addf %216, %217 : vector<32x512xf32>
    %cst_79 = arith.constant 0.000000e+00 : f32
    %219 = vector.broadcast %cst_79 : f32 to vector<32x512xf32>
    %220 = arith.maximumf %218, %219 : vector<32x512xf32>
    %221 = arith.truncf %220 : vector<32x512xf32> to vector<32x512xbf16>
    %c0_80 = arith.constant 0 : index
    %c0_81 = arith.constant 0 : index
    %c0_82 = arith.constant 0 : index
    %222 = vector.load %arg11[%c0_80, %c0_81, %c0_82] : memref<1x512x256xbf16, #tpu.memory_space<vmem>>, vector<1x512x256xbf16>
    %223 = vector.shape_cast %222 : vector<1x512x256xbf16> to vector<512x256xbf16>
    %cst_83 = arith.constant dense<0.000000e+00> : vector<32x256xf32>
    %224 = tpu.matmul %221, %223, %cst_83 {dimension_numbers = #tpu.dot_dimension_numbers<[1], [0], [0], [1], [0, 0, 1, 1], [], []>} : vector<32x512xbf16>, vector<512x256xbf16>, vector<32x256xf32> -> vector<32x256xf32>
    %225 = vector.broadcast %16 : vector<1x256xf32> to vector<32x256xf32>
    %226 = arith.addf %224, %225 : vector<32x256xf32>
    %227 = arith.addf %212, %226 : vector<32x256xf32>
    %cst_84 = arith.constant dense<0.000000e+00> : vector<32xf32>
    %228 = vector.multi_reduction <add>, %227, %cst_84 [1] : vector<32x256xf32> to vector<32xf32>
    %229 = vector.shape_cast %228 : vector<32xf32> to vector<32x1xf32>
    %cst_85 = arith.constant 2.560000e+02 : f32
    %230 = vector.broadcast %cst_85 : f32 to vector<32x1xf32>
    %231 = arith.divf %229, %230 : vector<32x1xf32>
    %232 = vector.broadcast %231 : vector<32x1xf32> to vector<32x256xf32>
    %233 = arith.subf %227, %232 : vector<32x256xf32>
    %234 = arith.mulf %233, %233 : vector<32x256xf32>
    %cst_86 = arith.constant dense<0.000000e+00> : vector<32xf32>
    %235 = vector.multi_reduction <add>, %234, %cst_86 [1] : vector<32x256xf32> to vector<32xf32>
    %236 = vector.shape_cast %235 : vector<32xf32> to vector<32x1xf32>
    %cst_87 = arith.constant 2.560000e+02 : f32
    %237 = vector.broadcast %cst_87 : f32 to vector<32x1xf32>
    %238 = arith.divf %236, %237 : vector<32x1xf32>
    %239 = vector.broadcast %231 : vector<32x1xf32> to vector<32x256xf32>
    %240 = arith.subf %227, %239 : vector<32x256xf32>
    %cst_88 = arith.constant 9.99999974E-6 : f32
    %241 = vector.broadcast %cst_88 : f32 to vector<32x1xf32>
    %242 = arith.addf %238, %241 : vector<32x1xf32>
    %243 = math.rsqrt %242 : vector<32x1xf32>
    %244 = vector.broadcast %243 : vector<32x1xf32> to vector<32x256xf32>
    %245 = arith.mulf %240, %244 : vector<32x256xf32>
    %246 = vector.broadcast %26 : vector<1x256xf32> to vector<32x256xf32>
    %247 = arith.mulf %245, %246 : vector<32x256xf32>
    %248 = vector.broadcast %28 : vector<1x256xf32> to vector<32x256xf32>
    %249 = arith.addf %247, %248 : vector<32x256xf32>
    %250 = vector.shape_cast %249 : vector<32x256xf32> to vector<2x16x256xf32>
    %c0_89 = arith.constant 0 : index
    %c0_90 = arith.constant 0 : index
    %c0_91 = arith.constant 0 : index
    %251 = vector.load %arg13[%c0_89, %c0_90, %c0_91] : memref<2x16x256xf32, #tpu.memory_space<vmem>>, vector<2x16x256xf32>
    tpu.vector_store %arg13[%c0_89, %c0_90, %c0_91], %250 {strides = array<i32>} : memref<2x16x256xf32, #tpu.memory_space<vmem>>, vector<2x16x256xf32>,
    return
  }
  func.func @transform_0(%arg0: i32, %arg1: i32) -> (i32, i32, i32) {
    %c0_i32 = arith.constant 0 : i32
    %c0_i32_0 = arith.constant 0 : i32
    %c0_i32_1 = arith.constant 0 : i32
    return %arg0, %c0_i32, %c0_i32_0 : i32, i32, i32
  }
  func.func @transform_1(%arg0: i32, %arg1: i32) -> (i32, i32, i32) {
    %c0_i32 = arith.constant 0 : i32
    %c0_i32_0 = arith.constant 0 : i32
    %c0_i32_1 = arith.constant 0 : i32
    return %arg0, %c0_i32, %c0_i32_0 : i32, i32, i32
  }
  func.func @transform_2(%arg0: i32, %arg1: i32) -> (i32, i32, i32) {
    %c0_i32 = arith.constant 0 : i32
    %c0_i32_0 = arith.constant 0 : i32
    %c0_i32_1 = arith.constant 0 : i32
    return %arg0, %c0_i32, %c0_i32_0 : i32, i32, i32
  }
  func.func @transform_3(%arg0: i32, %arg1: i32) -> (i32, i32, i32) {
    %c0_i32 = arith.constant 0 : i32
    %c0_i32_0 = arith.constant 0 : i32
    %c0_i32_1 = arith.constant 0 : i32
    return %arg1, %c0_i32, %c0_i32_0 : i32, i32, i32
  }
  func.func @transform_4(%arg0: i32, %arg1: i32) -> (i32, i32, i32) {
    %c0_i32 = arith.constant 0 : i32
    %c0_i32_0 = arith.constant 0 : i32
    %c0_i32_1 = arith.constant 0 : i32
    return %arg1, %c0_i32, %c0_i32_0 : i32, i32, i32
  }
  func.func @transform_5(%arg0: i32, %arg1: i32) -> (i32, i32, i32) {
    %c0_i32 = arith.constant 0 : i32
    %c0_i32_0 = arith.constant 0 : i32
    %c0_i32_1 = arith.constant 0 : i32
    return %arg1, %c0_i32, %c0_i32_0 : i32, i32, i32
  }
  func.func @transform_6(%arg0: i32, %arg1: i32) -> (i32, i32, i32) {
    %c0_i32 = arith.constant 0 : i32
    %c0_i32_0 = arith.constant 0 : i32
    %c0_i32_1 = arith.constant 0 : i32
    return %arg1, %c0_i32, %c0_i32_0 : i32, i32, i32
  }
  func.func @transform_7(%arg0: i32, %arg1: i32) -> (i32, i32, i32) {
    %c0_i32 = arith.constant 0 : i32
    %c0_i32_0 = arith.constant 0 : i32
    %c0_i32_1 = arith.constant 0 : i32
    return %arg1, %c0_i32, %c0_i32_0 : i32, i32, i32
  }
  func.func @transform_8(%arg0: i32, %arg1: i32) -> (i32, i32, i32) {
    %c0_i32 = arith.constant 0 : i32
    %c0_i32_0 = arith.constant 0 : i32
    %c0_i32_1 = arith.constant 0 : i32
    return %arg1, %c0_i32, %c0_i32_0 : i32, i32, i32
  }
  func.func @transform_9(%arg0: i32, %arg1: i32) -> (i32, i32, i32) {
    %c0_i32 = arith.constant 0 : i32
    %c0_i32_0 = arith.constant 0 : i32
    %c0_i32_1 = arith.constant 0 : i32
    return %arg1, %c0_i32, %c0_i32_0 : i32, i32, i32
  }
  func.func @transform_10(%arg0: i32, %arg1: i32) -> (i32, i32, i32) {
    %c0_i32 = arith.constant 0 : i32
    %c0_i32_0 = arith.constant 0 : i32
    %c0_i32_1 = arith.constant 0 : i32
    return %arg1, %c0_i32, %c0_i32_0 : i32, i32, i32
  }
  func.func @transform_11(%arg0: i32, %arg1: i32) -> (i32, i32, i32) {
    %c0_i32 = arith.constant 0 : i32
    %c0_i32_0 = arith.constant 0 : i32
    %c0_i32_1 = arith.constant 0 : i32
    return %arg0, %c0_i32, %c0_i32_0 : i32, i32, i32
  }
}

</mosaic_0001>

<bundles_post_ra>
// kernel: tpu_custom_call.1
= control target key start
LH: loop header
LB: loop body
LE: loop exit
PB: predicated region body
PF: predicated region fallthrough
CT: control target
= control target key end

     0   :  { %s8752_s0 = inlined_call_operand.hbm [shape: f32[2,16,256], index: 0, kind: input, shape index: {}]   ;;  %s8753_s1 = inlined_call_operand.hbm [shape: bf16[2,16,256], index: 1, kind: input, shape index: {}]   ;;  %s8754_s2 = inlined_call_operand.hbm [shape: f32[2,16,16], index: 2, kind: input, shape index: {}]   ;;  %s8755_s3 = inlined_call_operand.hbm [shape: bf16[2,256,768], index: 3, kind: input, shape index: {}]   ;;  %s8756_s4 = inlined_call_operand.hbm [shape: bf16[2,256,256], index: 4, kind: input, shape index: {}]   ;;  %s8757_s5 = inlined_call_operand.hbm [shape: bf16[2,256,256], index: 5, kind: input, shape index: {}]   ;;  %s8758_s6 = inlined_call_operand.hbm [shape: bf16[2,256,512], index: 6, kind: input, shape index: {}]   ;;  %s8759_s7 = inlined_call_operand.hbm [shape: bf16[2,256,256], index: 7, kind: input, shape index: {}]   ;;  %s8760_s8 = inlined_call_operand.hbm [shape: bf16[2,256,512], index: 8, kind: input, shape index: {}]   ;;  %s8761_s9 = inlined_call_operand.hbm [shape: bf16[2,512,256], index: 9, kind: input, shape index: {}]   ;;  %s8762_s10 = inlined_call_operand.hbm [shape: f32[2,1,4352], index: 10, kind: input, shape index: {}]   ;;  %s8763_s11 = inlined_call_operand.hbm [shape: f32[2,16,256], index: 11, kind: output, shape index: {}]  }
   0x1   :  { %8799 = sst [smem:[#allocation39_spill]] %s8753_s1 }
   0x2   :  { %8800 = sst [smem:[#allocation40_spill]] %s8755_s3 }
   0x3   :  { %8801 = sst [smem:[#allocation41_spill]] %s8757_s5 }
   0x4   :  { %8802 = sst [smem:[#allocation42_spill]] %s8759_s7 }
   0x5   :  { %8803 = sst [smem:[#allocation43_spill]] %s8761_s9 }
   0x6   :  { %8804 = sst [smem:[#allocation44_spill]] %s8762_s10 }
   0x7   :  { %8805 = sst [smem:[#allocation45_spill]] %s8763_s11 }
   0x8   :  { %16 = vsyncpa [#allocation3], 0 }
   0x9   :  { %17 = vsyncpa [#allocation6], 0 }
   0xa   :  { %18 = vsyncpa [#allocation9], 0 }
   0xb   :  { %20 = vsyncpa [#allocation9 + $0x1], 0 }
   0xc   :  { %21 = vsyncpa [#allocation12], 0 }
   0xd   :  { %23 = vsyncpa [#allocation12 + $0x1], 0 }
   0xe   :  { %24 = vsyncpa [#allocation15], 0 }
   0xf   :  { %26 = vsyncpa [#allocation15 + $0x1], 0 }
  0x10   :  { %27 = vsyncpa [#allocation18], 0 }
  0x11   :  { %29 = vsyncpa [#allocation18 + $0x1], 0 }
  0x12   :  { %30 = vsyncpa [#allocation4], 0  ;;  %s7351_s17 = smov 0   ;;  %s7353_s18 = smov 0  }
  0x13   :  { %s7355_s19 = smov 0   ;;  %s7357_s20 = smov 0  }
  0x14   :  { %s7359_s21 = smov 0   ;;  %s7361_s22 = smov 0  }
  0x15 LB: > { %8806 = sst [smem:[#allocation28_spill]] %s7251_s18  ;;  %s7380_s23 = sadd.s32 4294967295, %s7267_s22   ;;  %s7267_s22 = sphi %s7361_s22, %s36_s22   ;;  %s7263_s21 = sphi %s7359_s21, %s8863_s21   ;;  %s7259_s20 = sphi %s7357_s20, %s8862_s20   ;;  %s7255_s19 = sphi %s7355_s19, %s8861_s19   ;;  %s7251_s18 = sphi %s7353_s18, %s8860_s18   ;;  %s7247_s17 = sphi %s7351_s17, %s8859_s17  }
  0x16   : > { %8807 = sst [smem:[#allocation29_spill]] %s7255_s19  ;;  %p140_p0 = scmp.ne.s32.totalorder %s7255_s19, %s7251_s18 }
  0x17   : > { %8808 = sst [smem:[#allocation30_spill]] %s7259_s20  ;;  %p141_p1 = scmp.eq.s32.totalorder %s7267_s22, 0 }
  0x18   : > { %8809 = sst [smem:[#allocation31_spill]] %s7263_s21  ;;  %p146_p2 = scmp.ne.s32.totalorder %s7251_s18, %s7247_s17 }
  0x19   : > { %8810 = sst [smem:[#allocation32_spill]] %s7267_s22  ;;  %p8765_p3 = scmp.eq.s32.totalorder %s7380_s23, 0 }
  0x1a   : > { %8811 = sst [smem:[#allocation33_spill]] %s7380_s23  ;;  %p142_p4 = por %p141_p1, %p140_p0 }
  0x1b   : > { %p5435_p5 = scmp.ge.s32.totalorder %s7267_s22, 1  ;;  %p7391_p6 = por %p8765_p3, %p146_p2 }
  0x1c   : > { %p365_p7 = scmp.lt.s32.totalorder %s7267_s22, 3  ;;  %s7269_s27 = smov [#allocation5]  }
  0x1d   : > { %s8812_s25 = scalar_select %p7391_p6, 1, 0 }
  0x1e   : > { %p7396_p8 = pnand %p5435_p5, %p365_p7  ;;  %s398_s28 = sshll.u32 %s7269_s27, 4  ;;  %s399_s28 = int_to_ptr.vmem [resolvable:$true] %s398_s28 }
  0x1f   : > { %8813 = sst [smem:[#allocation34_spill]] %s8812_s25  ;;  %p6097_p10 = scmp.lt.s32.totalorder %s7267_s22, 2 }
  0x20   : > { %s8814_s26 = scalar_select %p7396_p8, 1, 0 }
  0x21   : > { %p6059_p9 = pneg %p7396_p8  ;;  %p7409_p12 = pnand %p6097_p10, %p142_p4 }
  0x22   : > { %8815 = sst [smem:[#allocation35_spill]] %s8814_s26  ;;  %s45_s12 = sadd.s32 1, %s7263_s21 }
  0x23   : > { %p7405_p11 = pnand %p6059_p9, %p8765_p3  ;;  %s8818_s1 = sld [smem:[#allocation39_spill]] }
  0x24   : > { %s8817_s30 = scalar_select %p7409_p12, 1, 0 }
  0x25   : > { %s8816_s29 = scalar_select %p7405_p11, 1, 0 }
  0x26   : > { %p7422_p0 = pneg %p7405_p11 }
  0x28   : > { %s8819_s27 = scalar_select %p7422_p0, 1, 0 }
  0x29   : > { %s6843_s15 = scalar_lea.hbm %s8818_s1, 512 }
  0x2a   : > { %p6844_p13 = scmp.ne.s32.totalorder %s8818_s1, %s6843_s15  ;;  %p6850_p4 = scmp.lt.u32.totalorder %s6843_s15, %s8818_s1 }
  0x2c   : > { %p6846_p1 = pnand %p7422_p0, %p6844_p13 }
  0x2e   : > { %p6847_p2 = pneg %p6846_p1 }
  0x30   : > { %p6852_p5 = pnand %p6850_p4, %p6847_p2 }
  0x32   : > { %6855 = shalt.err (!%p6852_p5)
}
  0x33   : > { %s6856_s13 = scalar_lea.vmem %s399_s28, 512  ;;  %p6864_p3 = scmp.lt.s32.totalorder %s399_s28, %s399_s28 }
  0x34   : > { %p6857_p7 = scmp.ne.s32.totalorder %s399_s28, %s6856_s13  ;;  %p6865_p6 = scmp.lt.s32.totalorder %s6856_s13, %s6856_s13 }
  0x36   : > { %p6859_p9 = pnand %p6857_p7, %p7422_p0  ;;  %p6866_p8 = por %p6865_p6, %p6864_p3 }
  0x38   : > { %p6860_p10 = pneg %p6859_p9 }
  0x3a   : > { %p6867_p12 = pnand %p6866_p8, %p6860_p10 }
  0x3c   : > { %6870 = shalt.err (!%p6867_p12)
}
  0x3d   : > { %s8775_s14 = smov 128   ;;  %s8777_s11 = smov 8  }
  0x3e   : > { %6065 = dma.hbm_to_vmem [thread:$0]  (!%p7405_p11), %s8818_s1, 512, %s399_s28, [#allocation6], %s8775_s14, %s8775_s14, %s8777_s11  }
  0x3f   : > { %p46_p3 = scmp.ge.s32.totalorder %s45_s12, 2  ;;  %s7442_s16 = sand.u32 1, %s7267_s22  }
  0x40   : > { %s7445_s17 = sand.u32 1, %s7255_s19   ;;  %s6022_s25 = smul.u32 12288, %s7263_s21 }
  0x41   : > { %8820 = sst [smem:[#allocation36_spill]] %s7445_s17  ;;  %s8865_s12 = smov (%p46_p3, %s45_s12), 0 }
  0x42   : > { %8821 = sst [smem:[#allocation37_spill]] %s8865_s12  ;;  %s6021_s13 = smul.u32 768, %s7445_s17 }
  0x43   : > { %s130_s20 = ssub.s32 %s7263_s21, %s8865_s12  ;;  %s8822_s3 = sld [smem:[#allocation40_spill]] }
  0x44   : > { %p131_p6 = scmp.eq.s32.totalorder %s130_s20, 0  ;;  %s433_s24 = scalar_lea.vmem [#allocation8], %s6021_s13 }
  0x45   : > { %s440_s15 = sshll.u32 %s433_s24, 4  ;;  %s8823_s14 = sadd.s32 1, %s7255_s19  ;;  %s7463_s15 = int_to_ptr.vmem [resolvable:$true] %s440_s15 }
  0x46   : > { %s7461_s11 = scalar_select %p131_p6, %s7255_s19, %s8823_s14  }
  0x47   : > { %s7466_s1 = sshll.u32 %s7445_s17, 8  ;;  %p8825_p12 = scmp.ne.s32.totalorder %s8817_s30, 0 }
  0x48   : > { %8824 = sst [smem:[#allocation38_spill]] %s7461_s11 }
  0x49   : > { %s7456_s28 = scalar_lea.hbm %s8822_s3, %s6022_s25  ;;  %p7473_p13 = pneg %p8825_p12 }
  0x4a   : > { %s6871_s20 = scalar_lea.hbm %s7456_s28, 12288  ;;  %s6876_s14 = scalar_lea.hbm %s8822_s3, 24576 }
  0x4b   : > { %p6872_p8 = scmp.ne.s32.totalorder %s7456_s28, %s6871_s20  ;;  %p6877_p4 = scmp.lt.u32.totalorder %s7456_s28, %s8822_s3 }
  0x4c   : > { %s8826_s18 = scalar_select %p7473_p13, 1, 0 }
  0x4d   : > { %p6874_p1 = pnand %p7473_p13, %p6872_p8  ;;  %p6878_p5 = scmp.lt.u32.totalorder %s6876_s14, %s6871_s20 }
  0x4e   : > { %p6880_p9 = scmp.lt.u32.totalorder %s6871_s20, %s7456_s28 }
  0x4f   : > { %p6875_p2 = pneg %p6874_p1  ;;  %p6879_p7 = por %p6878_p5, %p6877_p4 }
  0x51   : > { %p6881_p10 = por %p6880_p9, %p6879_p7 }
  0x53   : > { %p6882_p3 = pnand %p6881_p10, %p6875_p2 }
  0x55   : > { %6885 = shalt.err (!%p6882_p3)
}
  0x56   : > { %s6886_s12 = scalar_lea.vmem %s7463_s15, 12288  ;;  %s7272_s23 = smov [#allocation8]  }
  0x57   : > { %p6887_p6 = scmp.ne.s32.totalorder %s7463_s15, %s6886_s12  ;;  %s6891_s25 = sshll.u32 %s7272_s23, 4  ;;  %s6892_s25 = int_to_ptr.vmem [resolvable:$false] %s6891_s25 }
  0x58   : > { %s6893_s13 = scalar_lea.vmem %s6892_s25, 24576  ;;  %p6894_p11 = scmp.lt.s32.totalorder %s7463_s15, %s6892_s25 }
  0x59   : > { %p6889_p8 = pnand %p6887_p6, %p7473_p13  ;;  %p6895_p0 = scmp.lt.s32.totalorder %s6893_s13, %s6886_s12 }
  0x5b   : > { %p6890_p1 = pneg %p6889_p8  ;;  %p6896_p4 = por %p6895_p0, %p6894_p11 }
  0x5d   : > { %p6897_p5 = pnand %p6896_p4, %p6890_p1 }
  0x5f   : > { %6900 = shalt.err (!%p6897_p5)
}
  0x60   : > { %s7273_s20 = smov 384   ;;  %s7274_s14 = smov 24  }
  0x61   : > { %s8827_s24 = scalar_lea.sflag [#allocation9], %s7442_s16  ;;  %s7499_s23 = sshll.u32 %s7263_s21, 12 }
  0x62   : > { %6072 = dma.hbm_to_vmem [thread:$0]  (!%p8825_p12), %s7456_s28, 12288, %s7463_s15, %s8827_s24, %s7273_s20, %s7273_s20, %s7274_s14  }
  0x63   : > { %s8828_s5 = sld [smem:[#allocation41_spill]]  ;;  %s475_s3 = scalar_lea.vmem [#allocation11], %s7466_s1 }
  0x64   : > { %s482_s11 = sshll.u32 %s475_s3, 4  ;;  %s8786_s19 = scalar_lea.sflag [#allocation12], %s7442_s16  ;;  %s7508_s11 = int_to_ptr.vmem [resolvable:$true] %s482_s11 }
  0x69   : > { %s7505_s13 = scalar_lea.hbm %s8828_s5, %s7499_s23  ;;  %s6906_s20 = scalar_lea.hbm %s8828_s5, 8192 }
  0x6a   : > { %s6901_s22 = scalar_lea.hbm %s7505_s13, 4096  ;;  %p6907_p7 = scmp.lt.u32.totalorder %s7505_s13, %s8828_s5 }
  0x6b   : > { %p6902_p11 = scmp.ne.s32.totalorder %s7505_s13, %s6901_s22  ;;  %p6908_p9 = scmp.lt.u32.totalorder %s6906_s20, %s6901_s22 }
  0x6c   : > { %p6910_p3 = scmp.lt.u32.totalorder %s6901_s22, %s7505_s13 }
  0x6d   : > { %p6904_p0 = pnand %p6902_p11, %p7473_p13  ;;  %p6909_p10 = por %p6908_p9, %p6907_p7 }
  0x6f   : > { %p6905_p2 = pneg %p6904_p0  ;;  %p6911_p6 = por %p6910_p3, %p6909_p10 }
  0x71   : > { %p6912_p8 = pnand %p6911_p6, %p6905_p2 }
  0x73   : > { %6915 = shalt.err (!%p6912_p8)
}
  0x74   : > { %s6916_s3 = scalar_lea.vmem %s7508_s11, 4096  ;;  %s7275_s12 = smov [#allocation11]  }
  0x75   : > { %p6917_p1 = scmp.ne.s32.totalorder %s7508_s11, %s6916_s3  ;;  %s6921_s25 = sshll.u32 %s7275_s12, 4  ;;  %s6922_s25 = int_to_ptr.vmem [resolvable:$false] %s6921_s25 }
  0x76   : > { %s6923_s28 = scalar_lea.vmem %s6922_s25, 8192  ;;  %p6924_p11 = scmp.lt.s32.totalorder %s7508_s11, %s6922_s25 }
  0x77   : > { %p6919_p4 = pnand %p6917_p1, %p7473_p13  ;;  %p6925_p0 = scmp.lt.s32.totalorder %s6923_s28, %s6916_s3 }
  0x79   : > { %p6920_p5 = pneg %p6919_p4  ;;  %p6926_p7 = por %p6925_p0, %p6924_p11 }
  0x7b   : > { %p6927_p9 = pnand %p6926_p7, %p6920_p5 }
  0x7d   : > { %6930 = shalt.err (!%p6927_p9)
}
  0x7e   : > { %s8829_s22 = smov 8   ;;  %s8830_s15 = smov 128  }
  0x7f   : > { %6078 = dma.hbm_to_vmem [thread:$0]  (!%p8825_p12), %s7505_s13, 4096, %s7508_s11, %s8786_s19, %s8830_s15, %s8830_s15, %s8829_s22  }
  0x80   : > { %s8831_s7 = sld [smem:[#allocation42_spill]]  ;;  %s517_s3 = scalar_lea.vmem [#allocation14], %s7466_s1 }
  0x81   : > { %s524_s12 = sshll.u32 %s517_s3, 4  ;;  %s7547_s25 = sshll.u32 %s7445_s17, 9  ;;  %s7544_s12 = int_to_ptr.vmem [resolvable:$true] %s524_s12 }
  0x82   : > { %s8787_s28 = scalar_lea.sflag [#allocation15], %s7442_s16 }
  0x86   : > { %s7541_s24 = scalar_lea.hbm %s8831_s7, %s7499_s23  ;;  %s6936_s20 = scalar_lea.hbm %s8831_s7, 8192 }
  0x87   : > { %s6931_s5 = scalar_lea.hbm %s7541_s24, 4096  ;;  %p6937_p6 = scmp.lt.u32.totalorder %s7541_s24, %s8831_s7 }
  0x88   : > { %p6932_p2 = scmp.ne.s32.totalorder %s7541_s24, %s6931_s5  ;;  %p6938_p8 = scmp.lt.u32.totalorder %s6936_s20, %s6931_s5 }
  0x89   : > { %p6940_p4 = scmp.lt.u32.totalorder %s6931_s5, %s7541_s24 }
  0x8a   : > { %p6934_p10 = pnand %p6932_p2, %p7473_p13  ;;  %p6939_p1 = por %p6938_p8, %p6937_p6 }
  0x8c   : > { %p6935_p3 = pneg %p6934_p10  ;;  %p6941_p5 = por %p6940_p4, %p6939_p1 }
  0x8e   : > { %p6942_p11 = pnand %p6941_p5, %p6935_p3 }
  0x90   : > { %6945 = shalt.err (!%p6942_p11)
}
  0x91   : > { %s6946_s3 = scalar_lea.vmem %s7544_s12, 4096  ;;  %s7276_s11 = smov [#allocation14]  }
  0x92   : > { %p6947_p0 = scmp.ne.s32.totalorder %s7544_s12, %s6946_s3  ;;  %s6951_s13 = sshll.u32 %s7276_s11, 4  ;;  %s6952_s13 = int_to_ptr.vmem [resolvable:$false] %s6951_s13 }
  0x93   : > { %s6953_s19 = scalar_lea.vmem %s6952_s13, 8192  ;;  %p6954_p2 = scmp.lt.s32.totalorder %s7544_s12, %s6952_s13 }
  0x94   : > { %p6949_p7 = pnand %p6947_p0, %p7473_p13  ;;  %p6955_p10 = scmp.lt.s32.totalorder %s6953_s19, %s6946_s3 }
  0x96   : > { %p6950_p9 = pneg %p6949_p7  ;;  %p6956_p6 = por %p6955_p10, %p6954_p2 }
  0x98   : > { %p6957_p8 = pnand %p6956_p6, %p6950_p9 }
  0x9a   : > { %6960 = shalt.err (!%p6957_p8)
}
  0x9b   : > { %6084 = dma.hbm_to_vmem [thread:$0]  (!%p8825_p12), %s7541_s24, 4096, %s7544_s12, %s8787_s28, %s8830_s15, %s8830_s15, %s8829_s22  }
  0x9c   : > { %s7577_s5 = sshll.u32 %s7263_s21, 13  ;;  %s8832_s9 = sld [smem:[#allocation43_spill]] }
  0x9d   : > { %s559_s11 = scalar_lea.vmem [#allocation17], %s7547_s25  ;;  %s8790_s19 = scalar_lea.sflag [#allocation18], %s7442_s16 }
  0x9e   : > { %s566_s13 = sshll.u32 %s559_s11, 4  ;;  %s7586_s13 = int_to_ptr.vmem [resolvable:$true] %s566_s13 }
  0xa2   : > { %s7583_s3 = scalar_lea.hbm %s8832_s9, %s7577_s5  ;;  %s6966_s20 = scalar_lea.hbm %s8832_s9, 16384 }
  0xa3   : > { %s6961_s7 = scalar_lea.hbm %s7583_s3, 8192  ;;  %p6967_p5 = scmp.lt.u32.totalorder %s7583_s3, %s8832_s9 }
  0xa4   : > { %p6962_p3 = scmp.ne.s32.totalorder %s7583_s3, %s6961_s7  ;;  %p6968_p11 = scmp.lt.u32.totalorder %s6966_s20, %s6961_s7 }
  0xa5   : > { %p6970_p7 = scmp.lt.u32.totalorder %s6961_s7, %s7583_s3 }
  0xa6   : > { %p6964_p1 = pnand %p6962_p3, %p7473_p13  ;;  %p6969_p0 = por %p6968_p11, %p6967_p5 }
  0xa8   : > { %p6965_p4 = pneg %p6964_p1  ;;  %p6971_p9 = por %p6970_p7, %p6969_p0 }
  0xaa   : > { %p6972_p2 = pnand %p6971_p9, %p6965_p4 }
  0xac   : > { %6975 = shalt.err (!%p6972_p2)
}
  0xad   : > { %s6976_s11 = scalar_lea.vmem %s7586_s13, 8192  ;;  %s7277_s24 = smov [#allocation17]  }
  0xae   : > { %p6977_p10 = scmp.ne.s32.totalorder %s7586_s13, %s6976_s11  ;;  %s6981_s12 = sshll.u32 %s7277_s24, 4  ;;  %s6982_s12 = int_to_ptr.vmem [resolvable:$false] %s6981_s12 }
  0xaf   : > { %s6983_s28 = scalar_lea.vmem %s6982_s12, 16384  ;;  %p6984_p3 = scmp.lt.s32.totalorder %s7586_s13, %s6982_s12 }
  0xb0   : > { %p6979_p6 = pnand %p6977_p10, %p7473_p13  ;;  %p6985_p1 = scmp.lt.s32.totalorder %s6983_s28, %s6976_s11 }
  0xb2   : > { %p6980_p8 = pneg %p6979_p6  ;;  %p6986_p5 = por %p6985_p1, %p6984_p3 }
  0xb4   : > { %p6987_p11 = pnand %p6986_p5, %p6980_p8 }
  0xb6   : > { %6990 = shalt.err (!%p6987_p11)
}
  0xb7   : > { %6090 = dma.hbm_to_vmem [thread:$0]  (!%p8825_p12), %s7583_s3, 8192, %s7586_s13, %s8790_s19, %s8830_s15, %s8830_s15, %s8829_s22  }
  0xb8   : > { %s7278_s7 = smov [#allocation2]   ;;  %s6991_s11 = scalar_lea.hbm %s8752_s0, 1024 }
  0xb9   : > { %s381_s20 = sshll.u32 %s7278_s7, 4  ;;  %p6992_p4 = scmp.ne.s32.totalorder %s8752_s0, %s6991_s11  ;;  %s382_s20 = int_to_ptr.vmem [resolvable:$true] %s381_s20 }
  0xba   : > { %p8833_p0 = scmp.ne.s32.totalorder %s8819_s27, 0  ;;  %p6998_p2 = scmp.lt.u32.totalorder %s6991_s11, %s8752_s0 }
  0xbc   : > { %p6994_p7 = pnand %p6992_p4, %p8833_p0 }
  0xbe   : > { %p6995_p9 = pneg %p6994_p7 }
  0xc0   : > { %p7000_p10 = pnand %p6998_p2, %p6995_p9 }
  0xc2   : > { %7003 = shalt.err (!%p7000_p10)
}
  0xc3   : > { %s7004_s3 = scalar_lea.vmem %s382_s20, 1024  ;;  %p7012_p1 = scmp.lt.s32.totalorder %s382_s20, %s382_s20 }
  0xc4   : > { %p7005_p6 = scmp.ne.s32.totalorder %s382_s20, %s7004_s3  ;;  %p7013_p5 = scmp.lt.s32.totalorder %s7004_s3, %s7004_s3 }
  0xc6   : > { %p7007_p8 = pnand %p7005_p6, %p8833_p0  ;;  %p7014_p11 = por %p7013_p5, %p7012_p1 }
  0xc8   : > { %p7008_p3 = pneg %p7007_p8 }
  0xca   : > { %p7015_p12 = pnand %p7014_p11, %p7008_p3 }
  0xcc   : > { %7018 = shalt.err (!%p7015_p12)
}
  0xcd   : > { %s7279_s13 = smov 256   ;;  %s7280_s7 = smov 16  }
  0xce   : > { %p8834_p4 = scmp.ne.s32.totalorder %s8816_s29, 0  ;;  %s7281_s14 = smov [#allocation7]  }
  0xcf   : > { %s415_s24 = sshll.u32 %s7281_s14, 4  ;;  %s7640_s28 = scalar_lea.hbm %s8756_s4, %s7499_s23  ;;  %s416_s24 = int_to_ptr.vmem [resolvable:$true] %s415_s24 }
  0xd0   : > { %6062 = dma.hbm_to_vmem [thread:$0]  (!%p8834_p4), %s8752_s0, 1024, %s382_s20, [#allocation3], %s7279_s13, %s7279_s13, %s7280_s7  }
  0xd1   : > { %s7019_s10 = scalar_lea.hbm %s8754_s2, 512 }
  0xd2   : > { %p7020_p12 = scmp.ne.s32.totalorder %s8754_s2, %s7019_s10  ;;  %p7026_p2 = scmp.lt.u32.totalorder %s7019_s10, %s8754_s2 }
  0xd4   : > { %p7022_p7 = pnand %p7020_p12, %p8833_p0 }
  0xd6   : > { %p7023_p9 = pneg %p7022_p7 }
  0xd8   : > { %p7028_p10 = pnand %p7026_p2, %p7023_p9 }
  0xda   : > { %7031 = shalt.err (!%p7028_p10)
}
  0xdb   : > { %s7032_s26 = scalar_lea.vmem %s416_s24, 512  ;;  %p7040_p1 = scmp.lt.s32.totalorder %s416_s24, %s416_s24 }
  0xdc   : > { %p7033_p6 = scmp.ne.s32.totalorder %s416_s24, %s7032_s26  ;;  %p7041_p5 = scmp.lt.s32.totalorder %s7032_s26, %s7032_s26 }
  0xde   : > { %p7035_p8 = pnand %p7033_p6, %p8833_p0  ;;  %p7042_p11 = por %p7041_p5, %p7040_p1 }
  0xe0   : > { %p7036_p3 = pneg %p7035_p8 }
  0xe2   : > { %p7043_p13 = pnand %p7042_p11, %p7036_p3 }
  0xe4   : > { %7046 = shalt.err (!%p7043_p13)
}
  0xe5   : > { %6068 = dma.hbm_to_vmem [thread:$0]  (!%p8834_p4), %s8754_s2, 512, %s416_s24, [#allocation6], %s8830_s15, %s8830_s15, %s8829_s22  }
  0xe6   : > { %s454_s27 = scalar_lea.vmem [#allocation10], %s7466_s1  ;;  %s7670_s19 = scalar_lea.hbm %s8758_s6, %s7577_s5 }
  0xe7   : > { %s461_s17 = sshll.u32 %s454_s27, 4  ;;  %s7047_s14 = scalar_lea.hbm %s7640_s28, 4096  ;;  %s7664_s17 = int_to_ptr.vmem [resolvable:$true] %s461_s17 }
  0xe8   : > { %p7048_p13 = scmp.ne.s32.totalorder %s7640_s28, %s7047_s14  ;;  %p8835_p0 = scmp.ne.s32.totalorder %s8826_s18, 0 }
  0xe9   : > { %s7052_s3 = scalar_lea.hbm %s8756_s4, 8192  ;;  %p7053_p4 = scmp.lt.u32.totalorder %s7640_s28, %s8756_s4 }
  0xea   : > { %p7050_p12 = pnand %p7048_p13, %p8835_p0  ;;  %p7054_p9 = scmp.lt.u32.totalorder %s7052_s3, %s7047_s14 }
  0xeb   : > { %p7056_p10 = scmp.lt.u32.totalorder %s7047_s14, %s7640_s28 }
  0xec   : > { %p7051_p7 = pneg %p7050_p12  ;;  %p7055_p2 = por %p7054_p9, %p7053_p4 }
  0xee   : > { %p7057_p6 = por %p7056_p10, %p7055_p2 }
  0xf0   : > { %p7058_p8 = pnand %p7057_p6, %p7051_p7 }
  0xf2   : > { %7061 = shalt.err (!%p7058_p8)
}
  0xf3   : > { %s7062_s1 = scalar_lea.vmem %s7664_s17, 4096  ;;  %s7282_s9 = smov [#allocation10]  }
  0xf4   : > { %p7063_p3 = scmp.ne.s32.totalorder %s7664_s17, %s7062_s1  ;;  %s7067_s26 = sshll.u32 %s7282_s9, 4  ;;  %s7068_s26 = int_to_ptr.vmem [resolvable:$false] %s7067_s26 }
  0xf5   : > { %s7069_s21 = scalar_lea.vmem %s7068_s26, 8192  ;;  %p7070_p11 = scmp.lt.s32.totalorder %s7664_s17, %s7068_s26 }
  0xf6   : > { %p7065_p1 = pnand %p7063_p3, %p8835_p0  ;;  %p7071_p13 = scmp.lt.s32.totalorder %s7069_s21, %s7062_s1 }
  0xf8   : > { %p7066_p5 = pneg %p7065_p1  ;;  %p7072_p12 = por %p7071_p13, %p7070_p11 }
  0xfa   : > { %p7073_p4 = pnand %p7072_p12, %p7066_p5 }
  0xfc   : > { %7076 = shalt.err (!%p7073_p4)
}
  0xfd   : > { %p8836_p7 = scmp.ne.s32.totalorder %s8817_s30, 0  ;;  %s8837_s10 = scalar_lea.sflag [#allocation9], %s7442_s16 }
  0xfe   : > { %s496_s27 = scalar_lea.vmem [#allocation13], %s7547_s25  ;;  %s7705_s11 = scalar_lea.hbm %s8760_s8, %s7577_s5 }
  0xff   : > { %6075 = dma.hbm_to_vmem [thread:$0]  (!%p8836_p7), %s7640_s28, 4096, %s7664_s17, %s8837_s10, %s8830_s15, %s8830_s15, %s8829_s22  }
 0x100   : > { %s503_s23 = sshll.u32 %s496_s27, 4  ;;  %s7077_s12 = scalar_lea.hbm %s7670_s19, 8192  ;;  %s7699_s23 = int_to_ptr.vmem [resolvable:$true] %s503_s23 }
 0x101   : > { %p7078_p9 = scmp.ne.s32.totalorder %s7670_s19, %s7077_s12  ;;  %s7082_s24 = scalar_lea.hbm %s8758_s6, 16384 }
 0x102   : > { %p7083_p6 = scmp.lt.u32.totalorder %s7670_s19, %s8758_s6  ;;  %p7084_p8 = scmp.lt.u32.totalorder %s7082_s24, %s7077_s12 }
 0x103   : > { %p7080_p2 = pnand %p7078_p9, %p8835_p0  ;;  %p7086_p1 = scmp.lt.u32.totalorder %s7077_s12, %s7670_s19 }
 0x104   : > { %p7085_p3 = por %p7084_p8, %p7083_p6 }
 0x105   : > { %p7081_p10 = pneg %p7080_p2 }
 0x106   : > { %p7087_p5 = por %p7086_p1, %p7085_p3 }
 0x108   : > { %p7088_p11 = pnand %p7087_p5, %p7081_p10 }
 0x10a   : > { %7091 = shalt.err (!%p7088_p11)
}
 0x10b   : > { %s7092_s15 = scalar_lea.vmem %s7699_s23, 8192  ;;  %s7283_s5 = smov [#allocation13]  }
 0x10c   : > { %p7093_p13 = scmp.ne.s32.totalorder %s7699_s23, %s7092_s15  ;;  %s7097_s28 = sshll.u32 %s7283_s5, 4  ;;  %s7098_s28 = int_to_ptr.vmem [resolvable:$false] %s7097_s28 }
 0x10d   : > { %s7099_s17 = scalar_lea.vmem %s7098_s28, 16384  ;;  %p7100_p9 = scmp.lt.s32.totalorder %s7699_s23, %s7098_s28 }
 0x10e   : > { %p7095_p12 = pnand %p7093_p13, %p8835_p0  ;;  %p7101_p2 = scmp.lt.s32.totalorder %s7099_s17, %s7092_s15 }
 0x110   : > { %p7096_p4 = pneg %p7095_p12  ;;  %p7102_p6 = por %p7101_p2, %p7100_p9 }
 0x112   : > { %p7103_p8 = pnand %p7102_p6, %p7096_p4 }
 0x114   : > { %7106 = shalt.err (!%p7103_p8)
}
 0x115   : > { %s8838_s9 = scalar_lea.sflag [#allocation12], %s7442_s16  ;;  %s8839_s26 = sld [smem:[#allocation36_spill]] }
 0x116   : > { %s8840_s21 = sld [smem:[#allocation31_spill]]  ;;  %s538_s10 = scalar_lea.vmem [#allocation16], %s7547_s25 }
 0x117   : > { %6081 = dma.hbm_to_vmem [thread:$0]  (!%p8836_p7), %s7670_s19, 8192, %s7699_s23, %s8838_s9, %s7279_s13, %s7279_s13, %s7280_s7  }
 0x118   : > { %s545_s27 = sshll.u32 %s538_s10, 4  ;;  %s7107_s12 = scalar_lea.hbm %s7705_s11, 8192  ;;  %s7735_s27 = int_to_ptr.vmem [resolvable:$true] %s545_s27 }
 0x119   : > { %p7108_p10 = scmp.ne.s32.totalorder %s7705_s11, %s7107_s12  ;;  %s7112_s24 = scalar_lea.hbm %s8760_s8, 16384 }
 0x11a   : > { %p7113_p5 = scmp.lt.u32.totalorder %s7705_s11, %s8760_s8  ;;  %p7114_p11 = scmp.lt.u32.totalorder %s7112_s24, %s7107_s12 }
 0x11b   : > { %s6023_s29 = smul.u32 34, %s8839_s26  ;;  %p7110_p3 = pnand %p7108_p10, %p8835_p0 }
 0x11c   : > { %s6024_s14 = smul.u32 544, %s8840_s21  ;;  %p7115_p13 = por %p7114_p11, %p7113_p5 }
 0x11d   : > { %p7111_p1 = pneg %p7110_p3  ;;  %p7116_p12 = scmp.lt.u32.totalorder %s7107_s12, %s7705_s11 }
 0x11f   : > { %p7117_p4 = por %p7116_p12, %p7115_p13 }
 0x121   : > { %p7118_p9 = pnand %p7117_p4, %p7111_p1 }
 0x123   : > { %7121 = shalt.err (!%p7118_p9)
}
 0x124   : > { %s7122_s25 = scalar_lea.vmem %s7735_s27, 8192  ;;  %s7284_s19 = smov [#allocation16]  }
 0x125   : > { %p7123_p2 = scmp.ne.s32.totalorder %s7735_s27, %s7122_s25  ;;  %s7127_s23 = sshll.u32 %s7284_s19, 4  ;;  %s7128_s23 = int_to_ptr.vmem [resolvable:$false] %s7127_s23 }
 0x126   : > { %s7129_s15 = scalar_lea.vmem %s7128_s23, 16384  ;;  %p7130_p10 = scmp.lt.s32.totalorder %s7735_s27, %s7128_s23 }
 0x127   : > { %p7125_p6 = pnand %p7123_p2, %p8835_p0  ;;  %p7131_p3 = scmp.lt.s32.totalorder %s7129_s15, %s7122_s25 }
 0x129   : > { %p7126_p8 = pneg %p7125_p6  ;;  %p7132_p5 = por %p7131_p3, %p7130_p10 }
 0x12b   : > { %p7133_p11 = pnand %p7132_p5, %p7126_p8 }
 0x12d   : > { %7136 = shalt.err (!%p7133_p11)
}
 0x12e   : > { %s8841_s5 = scalar_lea.sflag [#allocation15], %s7442_s16  ;;  %s8842_s9 = sld [smem:[#allocation44_spill]] }
 0x12f   : > { %6087 = dma.hbm_to_vmem [thread:$0]  (!%p8836_p7), %s7705_s11, 8192, %s7735_s27, %s8841_s5, %s7279_s13, %s7279_s13, %s7280_s7  }
 0x130   : > { %s580_s12 = scalar_lea.vmem [#allocation19], %s6023_s29 }
 0x131   : > { %s588_s3 = sshll.u32 %s580_s12, 4  ;;  %s589_s3 = int_to_ptr.vmem [resolvable:$true] %s588_s3 }
 0x134   : > { %s7769_s10 = scalar_lea.hbm %s8842_s9, %s6024_s14  ;;  %s7142_s11 = scalar_lea.hbm %s8842_s9, 1088 }
 0x135   : > { %s7137_s20 = scalar_lea.hbm %s7769_s10, 544  ;;  %p7143_p4 = scmp.lt.u32.totalorder %s7769_s10, %s8842_s9 }
 0x136   : > { %p7138_p1 = scmp.ne.s32.totalorder %s7769_s10, %s7137_s20  ;;  %p7144_p9 = scmp.lt.u32.totalorder %s7142_s11, %s7137_s20 }
 0x137   : > { %p7146_p6 = scmp.lt.u32.totalorder %s7137_s20, %s7769_s10 }
 0x138   : > { %p7140_p13 = pnand %p7138_p1, %p8835_p0  ;;  %p7145_p2 = por %p7144_p9, %p7143_p4 }
 0x13a   : > { %p7141_p12 = pneg %p7140_p13  ;;  %p7147_p8 = por %p7146_p6, %p7145_p2 }
 0x13c   : > { %p7148_p10 = pnand %p7147_p8, %p7141_p12 }
 0x13e   : > { %7151 = shalt.err (!%p7148_p10)
}
 0x13f   : > { %s7152_s26 = scalar_lea.vmem %s589_s3, 544  ;;  %s7285_s29 = smov [#allocation19]  }
 0x140   : > { %p7153_p3 = scmp.ne.s32.totalorder %s589_s3, %s7152_s26  ;;  %s7157_s14 = sshll.u32 %s7285_s29, 4  ;;  %s7158_s14 = int_to_ptr.vmem [resolvable:$false] %s7157_s14 }
 0x141   : > { %s7159_s24 = scalar_lea.vmem %s7158_s14, 1088  ;;  %p7160_p1 = scmp.lt.s32.totalorder %s589_s3, %s7158_s14 }
 0x142   : > { %p7155_p5 = pnand %p7153_p3, %p8835_p0  ;;  %p7161_p13 = scmp.lt.s32.totalorder %s7159_s24, %s7152_s26 }
 0x144   : > { %p7156_p11 = pneg %p7155_p5  ;;  %p7162_p7 = por %p7161_p13, %p7160_p1 }
 0x146   : > { %p7163_p4 = pnand %p7162_p7, %p7156_p11 }
 0x148   : > { %7166 = shalt.err (!%p7163_p4)
}
 0x149   : > { %p8843_p9 = scmp.ne.s32.totalorder %s8817_s30, 0  ;;  %s8844_s1 = scalar_lea.sflag [#allocation18], %s7442_s16 }
 0x14a   : > { %s8845_s22 = sld [smem:[#allocation35_spill]] }
 0x14b   : > { %6093 = dma.hbm_to_vmem [thread:$0]  (!%p8843_p9), %s7769_s10, 544, %s589_s3, %s8844_s1  }
 0x150   : > { %p8846_p12 = scmp.ne.s32.totalorder %s8845_s22, 0 }
 0x151   : > { %s8847_s18 = sld [smem:[#allocation33_spill]] (!%p8846_p12) }
 0x152   : > { %597 = sbr.rel (%p8846_p12) target bundleno = 4404 (0x1134), region = 64 }
 0x157   : > { %p8848_p0 = scmp.eq.s32.totalorder (!%p8846_p12), %s8847_s18, 0 }
 0x159   : > { %7218 = dma.done.wait (%p8848_p0), [#allocation3], 1024   ;;  %p8849_p2 = pmov %p8848_p0 }
 0x15a   : > { %p8850_p6 = pmov %p8848_p0 }
 0x15b   : > { %7220 = vsyncadd (%p8849_p2), [#allocation3], 4294966272 }
 0x15c   : > { %7222 = dma.done.wait (%p8850_p6), [#allocation6], 1024   ;;  %p8851_p7 = pmov %p8848_p0 }
 0x15d   : > { %s8852_s30 = sld [smem:[#allocation28_spill]]  ;;  %s611_s25 = sand.u32 1, %s8847_s18  }
 0x15e   : > { %7224 = vsyncadd (%p8851_p7), [#allocation6], 4294966272  ;;  %s8853_s16 = sld [smem:[#allocation34_spill]]  ;;  %s612_s15 = scalar_lea.sflag [#allocation9], %s611_s25 }
 0x163   : > { %s613_s19 = sand.u32 1, %s8852_s30  }
 0x164   : > { %s6025_s23 = smul.u32 768, %s613_s19  ;;  %p8854_p8 = scmp.ne.s32.totalorder %s8853_s16, 0 }
 0x166   : > { %s7804_s5 = scalar_lea.vmem [#allocation8], %s6025_s23 }
 0x167   : > { %7226 = dma.done.wait (%p8854_p8), %s612_s15, 16384  }
 0x168   : > { %7228 = vsyncadd (%p8854_p8), %s612_s15, 4294950912  ;;  %s5464_s28 = sshll.u32 %s613_s19, 8  ;;  %s630_s10 = scalar_lea.sflag [#allocation12], %s611_s25 }
 0x169   : > { %s7810_s17 = scalar_lea.vmem [#allocation10], %s5464_s28  ;;  %s7812_s12 = scalar_lea.vmem [#allocation11], %s5464_s28 }
 0x16a   : > { %7230 = dma.done.wait (%p8854_p8), %s630_s10, 12288  }
 0x16b   : > { %7232 = vsyncadd (%p8854_p8), %s630_s10, 4294955008  ;;  %s5466_s3 = sshll.u32 %s613_s19, 9  ;;  %s648_s13 = scalar_lea.sflag [#allocation15], %s611_s25 }
 0x16c   : > { %s7818_s20 = scalar_lea.vmem [#allocation13], %s5466_s3  ;;  %s7820_s7 = scalar_lea.vmem [#allocation14], %s5464_s28 }
 0x16d   : > { %7234 = dma.done.wait (%p8854_p8), %s648_s13, 12288  }
 0x16e   : > { %7236 = vsyncadd (%p8854_p8), %s648_s13, 4294955008  ;;  %s7826_s11 = scalar_lea.vmem [#allocation16], %s5466_s3  ;;  %s666_s21 = scalar_lea.sflag [#allocation18], %s611_s25 }
 0x16f   : > { %s7828_s27 = scalar_lea.vmem [#allocation17], %s5466_s3 }
 0x170   : > { %7238 = dma.done.wait (%p8854_p8), %s666_s21, 8736  }
 0x171   : > { %7240 = vsyncadd (%p8854_p8), %s666_s21, 4294958560  ;;  %s6026_s26 = smul.u32 34, %s613_s19  ;;  %s8855_s14 = sld [smem:[#allocation30_spill]] }
 0x173   : > { %s7834_s29 = scalar_lea.vmem [#allocation19], %s6026_s26 }
 0x177   : > { %p5470_p10 = scmp.ne.s32.totalorder %s8855_s14, 0 }
 0x178   : > { %v756_v0 = vld [vmem:[#allocation2] sm:$0xff] (!%p5470_p10)  ;;  %v757_v1 = vld [vmem:[#allocation2 + $0x8] sm:$0xff] (!%p5470_p10)  ;;  %v758_v2 = vld [vmem:[#allocation2 + $0x10] sm:$0xff] (!%p5470_p10) }
 0x179   : > { %755 = sbr.rel (%p5470_p10) target bundleno = 384 (0x180), region = 112  ;;  %764 = vst [vmem:[#allocation20] sm:$0xff] (!%p5470_p10), %v756_v0  ;;  %765 = vst [vmem:[#allocation20 + $0x8] sm:$0xff] (!%p5470_p10), %v757_v1  ;;  %v759_v3 = vld [vmem:[#allocation2 + $0x18] sm:$0xff] (!%p5470_p10)  ;;  %v760_v4 = vld [vmem:[#allocation2 + $0x20] sm:$0xff] (!%p5470_p10) }
 0x17a   : > { %766 = vst [vmem:[#allocation20 + $0x10] sm:$0xff] (!%p5470_p10), %v758_v2  ;;  %v761_v5 = vld [vmem:[#allocation2 + $0x28] sm:$0xff] (!%p5470_p10)  ;;  %767 = vst [vmem:[#allocation20 + $0x18] sm:$0xff] (!%p5470_p10), %v759_v3  ;;  %v762_v6 = vld [vmem:[#allocation2 + $0x30] sm:$0xff] (!%p5470_p10) }
 0x17b   : > { %768 = vst [vmem:[#allocation20 + $0x20] sm:$0xff] (!%p5470_p10), %v760_v4  ;;  %769 = vst [vmem:[#allocation20 + $0x28] sm:$0xff] (!%p5470_p10), %v761_v5  ;;  %v763_v7 = vld [vmem:[#allocation2 + $0x38] sm:$0xff] (!%p5470_p10) }
 0x17c   : > { %770 = vst [vmem:[#allocation20 + $0x30] sm:$0xff] (!%p5470_p10), %v762_v6  ;;  %771 = vst [vmem:[#allocation20 + $0x38] sm:$0xff] (!%p5470_p10), %v763_v7 }
 0x180 PF: > { %v6165_v8 = vld [vmem:[%s7804_s5 + $0x4] ss:$24 sps:$4 sm:$0xff]   ;;  %v6167_v9 = vld [vmem:[%s7804_s5] ss:$24 sps:$4 sm:$0xff]   ;;  %v6168_v10 = vld [vmem:[%s7804_s5 + $0x34] ss:$24 sps:$4 sm:$0xff]  }
 0x181   : > { %1412 = vmatprep.subr.bf16.mxu1 %v6165_v8  ;;  %v6170_v11 = vld [vmem:[%s7804_s5 + $0x30] ss:$24 sps:$4 sm:$0xff]   ;;  %v6171_v12 = vld [vmem:[%s7804_s5 + $0x64] ss:$24 sps:$4 sm:$0xff]   ;;  %v6173_v13 = vld [vmem:[%s7804_s5 + $0x60] ss:$24 sps:$4 sm:$0xff]  }
 0x182   : > { %1413 = vmatpush1.bf16.msra.mxu1 %v6167_v9  ;;  %v6174_v14 = vld [vmem:[%s7804_s5 + $0x94] ss:$24 sps:$4 sm:$0xff]   ;;  %v6176_v15 = vld [vmem:[%s7804_s5 + $0x90] ss:$24 sps:$4 sm:$0xff]   ;;  %v6177_v16 = vld [vmem:[%s7804_s5 + $0xc4] ss:$24 sps:$4 sm:$0xff]  }
 0x183   : > { %1414 = vmatprep.subr.bf16.mxu1 %v6168_v10  ;;  %v6179_v17 = vld [vmem:[%s7804_s5 + $0xc0] ss:$24 sps:$4 sm:$0xff]   ;;  %v6180_v18 = vld [vmem:[%s7804_s5 + $0xf4] ss:$24 sps:$4 sm:$0xff]   ;;  %v6182_v19 = vld [vmem:[%s7804_s5 + $0xf0] ss:$24 sps:$4 sm:$0xff]  }
 0x184   : > { %v6183_v20 = vld [vmem:[%s7804_s5 + $0x124] ss:$24 sps:$4 sm:$0xff]   ;;  %v786_v21 = vld [vmem:[#allocation20 + $0x8] sm:$0xff]  ;;  %v6185_v24 = vld [vmem:[%s7804_s5 + $0x120] ss:$24 sps:$4 sm:$0xff]   ;;  %vm7287_vm0 = vmmov 0  }
 0x185   : > { %v788_v22 = vld [vmem:[#allocation20 + $0x18] sm:$0xff]  ;;  %v6186_v25 = vld [vmem:[%s7804_s5 + $0x154] ss:$24 sps:$4 sm:$0xff]   ;;  %v6188_v26 = vld [vmem:[%s7804_s5 + $0x150] ss:$24 sps:$4 sm:$0xff]   ;;  %vm1763_vm1 = vcmask 130048  }
 0x186   : > { %1415 = vmatpush1.bf16.msra.mxu1 %v6170_v11  ;;  %v7850_v23 = vpack.c.bf16 %v788_v22, %v786_v21  ;;  %v6189_v27 = vld [vmem:[%s7804_s5 + $0x184] ss:$24 sps:$4 sm:$0xff]   ;;  %v6191_v28 = vld [vmem:[%s7804_s5 + $0x180] ss:$24 sps:$4 sm:$0xff]   ;;  %v6192_v29 = vld [vmem:[%s7804_s5 + $0x1b4] ss:$24 sps:$4 sm:$0xff]  }
 0x187   : > { %1416 = vmatprep.subr.bf16.mxu1 %v6171_v12  ;;  %v6194_v30 = vld [vmem:[%s7804_s5 + $0x1b0] ss:$24 sps:$4 sm:$0xff]   ;;  %v6195_v31 = vld [vmem:[%s7804_s5 + $0x1e4] ss:$24 sps:$4 sm:$0xff]   ;;  %v6197_v32 = vld [vmem:[%s7804_s5 + $0x1e0] ss:$24 sps:$4 sm:$0xff]  }
 0x188   : > { %1444 = vmatprep.mubr.bf16.mxu1 %v7850_v23  ;;  %1550 = vmatprep.mubr.bf16.mxu0 %v7850_v23  ;;  %v6198_v33 = vld [vmem:[%s7804_s5 + $0x214] ss:$24 sps:$4 sm:$0xff]   ;;  %v6200_v34 = vld [vmem:[%s7804_s5 + $0x210] ss:$24 sps:$4 sm:$0xff]   ;;  %v6201_v35 = vld [vmem:[%s7804_s5 + $0x244] ss:$24 sps:$4 sm:$0xff]  }
 0x189   : > { %v6203_v36 = vld [vmem:[%s7804_s5 + $0x240] ss:$24 sps:$4 sm:$0xff]   ;;  %v6204_v37 = vld [vmem:[%s7804_s5 + $0x274] ss:$24 sps:$4 sm:$0xff]   ;;  %v6263_v39 = vld [vmem:[%s7804_s5 + $0x10] ss:$24 sps:$4 sm:$0xff]  }
 0x18a   : > { %1417 = vmatpush1.bf16.msra.mxu1 %v6173_v13  ;;  %v6261_v38 = vld [vmem:[%s7804_s5 + $0x14] ss:$24 sps:$4 sm:$0xff]   ;;  %v6206_v40 = vld [vmem:[%s7804_s5 + $0x270] ss:$24 sps:$4 sm:$0xff]   ;;  %v6207_v41 = vld [vmem:[%s7804_s5 + $0x2a4] ss:$24 sps:$4 sm:$0xff]  }
 0x18b   : > { %1418 = vmatprep.subr.bf16.mxu1 %v6174_v14  ;;  %1518 = vmatprep.subr.bf16.mxu0 %v6261_v38  ;;  %v6209_v42 = vld [vmem:[%s7804_s5 + $0x2a0] ss:$24 sps:$4 sm:$0xff]   ;;  %v6210_v43 = vld [vmem:[%s7804_s5 + $0x2d4] ss:$24 sps:$4 sm:$0xff]   ;;  %v6212_v44 = vld [vmem:[%s7804_s5 + $0x2d0] ss:$24 sps:$4 sm:$0xff]  }
 0x18c   : > { %1519 = vmatpush1.bf16.msra.mxu0 %v6263_v39  ;;  %v785_v45 = vld [vmem:[#allocation20] sm:$0xff]  ;;  %v787_v46 = vld [vmem:[#allocation20 + $0x10] sm:$0xff]  ;;  %v790_v48 = vld [vmem:[#allocation20 + $0x28] sm:$0xff]  ;;  %s8856_s24 = sld [smem:[#allocation33_spill]]  ;;  %s7288_s1 = smov [#allocation20]  }
 0x18d   : > { %v6215_v47 = vld [vmem:[%s7804_s5 + $0xc] ss:$24 sps:$4 sm:$0xff]   ;;  %v792_v49 = vld [vmem:[#allocation20 + $0x38] sm:$0xff]  ;;  %v7877_v51 = vpack.c.bf16 %v787_v46, %v785_v45  ;;  %v6216_v54 = vld [vmem:[%s7804_s5 + $0x38] ss:$24 sps:$4 sm:$0xff]   ;;  %s5184_s22 = sshll.u32 %s7288_s1, 4  ;;  %s5185_s22 = int_to_ptr.vmem [resolvable:$true] %s5184_s22 }
 0x18e   : > { %1419 = vmatpush1.bf16.msra.mxu1 %v6176_v15  ;;  %v6213_v50 = vld [vmem:[%s7804_s5 + $0x8] ss:$24 sps:$4 sm:$0xff]   ;;  %v6218_v52 = vld [vmem:[%s7804_s5 + $0x3c] ss:$24 sps:$4 sm:$0xff]   ;;  %v7880_v53 = vpack.c.bf16 %v792_v49, %v790_v48  ;;  %v6221_v57 = vld [vmem:[%s7804_s5 + $0x6c] ss:$24 sps:$4 sm:$0xff]   ;;  %p7174_p13 = scmp.lt.s32.totalorder %s5185_s22, %s5185_s22 }
 0x18f   : > { %1420 = vmatprep.subr.bf16.mxu1 %v6177_v16  ;;  %v789_v55 = vld [vmem:[#allocation20 + $0x20] sm:$0xff]  ;;  %v791_v56 = vld [vmem:[#allocation20 + $0x30] sm:$0xff]  ;;  %s7167_s18 = scalar_lea.vmem %s5185_s22, 1024 }
 0x190   : > { %v6219_v58 = vld [vmem:[%s7804_s5 + $0x68] ss:$24 sps:$4 sm:$0xff]   ;;  %v6224_v59 = vld [vmem:[%s7804_s5 + $0x9c] ss:$24 sps:$4 sm:$0xff]   ;;  %v7888_v60 = vpack.c.bf16 %v791_v56, %v789_v55  ;;  %v6222_v61 = vld [vmem:[%s7804_s5 + $0x98] ss:$24 sps:$4 sm:$0xff]   ;;  %v902_v55 = vlaneseq  ;;  %p7168_p5 = scmp.ne.s32.totalorder %s5185_s22, %s7167_s18  ;;  %p7175_p4 = scmp.lt.s32.totalorder %s7167_s18, %s7167_s18 }
 0x191   : > { %v6227_v62 = vld [vmem:[%s7804_s5 + $0xcc] ss:$24 sps:$4 sm:$0xff]   ;;  %v6225_v63 = vld [vmem:[%s7804_s5 + $0xc8] ss:$24 sps:$4 sm:$0xff]   ;;  %v6230_v0 = vld [vmem:[%s7804_s5 + $0xfc] ss:$24 sps:$4 sm:$0xff]  }
 0x192   : > { %1421 = vmatpush1.bf16.msra.mxu1 %v6179_v17  ;;  %v6228_v1 = vld [vmem:[%s7804_s5 + $0xf8] ss:$24 sps:$4 sm:$0xff]   ;;  %v6233_v2 = vld [vmem:[%s7804_s5 + $0x12c] ss:$24 sps:$4 sm:$0xff]   ;;  %v6231_v3 = vld [vmem:[%s7804_s5 + $0x128] ss:$24 sps:$4 sm:$0xff]   ;;  %p7176_p9 = por %p7175_p4, %p7174_p13 }
 0x193   : > { %1422 = vmatprep.subr.bf16.mxu1 %v6180_v18  ;;  %v6236_v4 = vld [vmem:[%s7804_s5 + $0x15c] ss:$24 sps:$4 sm:$0xff]   ;;  %v6234_v5 = vld [vmem:[%s7804_s5 + $0x158] ss:$24 sps:$4 sm:$0xff]   ;;  %v6239_v6 = vld [vmem:[%s7804_s5 + $0x18c] ss:$24 sps:$4 sm:$0xff]  }
 0x194   : > { %v6237_v7 = vld [vmem:[%s7804_s5 + $0x188] ss:$24 sps:$4 sm:$0xff]   ;;  %v6242_v8 = vld [vmem:[%s7804_s5 + $0x1bc] ss:$24 sps:$4 sm:$0xff]   ;;  %v6240_v9 = vld [vmem:[%s7804_s5 + $0x1b8] ss:$24 sps:$4 sm:$0xff]  }
 0x195   : > { %v6245_v10 = vld [vmem:[%s7804_s5 + $0x1ec] ss:$24 sps:$4 sm:$0xff]   ;;  %v6243_v11 = vld [vmem:[%s7804_s5 + $0x1e8] ss:$24 sps:$4 sm:$0xff]   ;;  %v6248_v12 = vld [vmem:[%s7804_s5 + $0x21c] ss:$24 sps:$4 sm:$0xff]  }
 0x196   : > { %1423 = vmatpush1.bf16.msra.mxu1 %v6182_v19  ;;  %v6246_v13 = vld [vmem:[%s7804_s5 + $0x218] ss:$24 sps:$4 sm:$0xff]   ;;  %v6251_v14 = vld [vmem:[%s7804_s5 + $0x24c] ss:$24 sps:$4 sm:$0xff]   ;;  %v6249_v15 = vld [vmem:[%s7804_s5 + $0x248] ss:$24 sps:$4 sm:$0xff]  }
 0x197   : > { %1424 = vmatprep.subr.bf16.mxu1 %v6183_v20  ;;  %v6254_v16 = vld [vmem:[%s7804_s5 + $0x27c] ss:$24 sps:$4 sm:$0xff]   ;;  %v6252_v17 = vld [vmem:[%s7804_s5 + $0x278] ss:$24 sps:$4 sm:$0xff]   ;;  %v6257_v18 = vld [vmem:[%s7804_s5 + $0x2ac] ss:$24 sps:$4 sm:$0xff]  }
 0x198   : > { %v6255_v19 = vld [vmem:[%s7804_s5 + $0x2a8] ss:$24 sps:$4 sm:$0xff]   ;;  %v6260_v20 = vld [vmem:[%s7804_s5 + $0x2dc] ss:$24 sps:$4 sm:$0xff]   ;;  %v6258_v21 = vld [vmem:[%s7804_s5 + $0x2d8] ss:$24 sps:$4 sm:$0xff]  }
 0x199   : > { %v6264_v22 = vld [vmem:[%s7804_s5 + $0x44] ss:$24 sps:$4 sm:$0xff]   ;;  %v6290_v39 = vld [vmem:[%s7804_s5 + $0x1c0] ss:$24 sps:$4 sm:$0xff]   ;;  %v6299_v45 = vld [vmem:[%s7804_s5 + $0x250] ss:$24 sps:$4 sm:$0xff]  }
 0x19a   : > { %1425 = vmatpush1.bf16.msra.mxu1 %v6185_v24  ;;  %1520 = vmatprep.subr.bf16.mxu0 %v6264_v22  ;;  %v6267_v24 = vld [vmem:[%s7804_s5 + $0x74] ss:$24 sps:$4 sm:$0xff]   ;;  %v6288_v38 = vld [vmem:[%s7804_s5 + $0x1c4] ss:$24 sps:$4 sm:$0xff]   ;;  %v6305_v49 = vld [vmem:[%s7804_s5 + $0x2b0] ss:$24 sps:$4 sm:$0xff]  }
 0x19b   : > { %1426 = vmatprep.subr.bf16.mxu1 %v6186_v25  ;;  %v6269_v25 = vld [vmem:[%s7804_s5 + $0x70] ss:$24 sps:$4 sm:$0xff]   ;;  %v6300_v46 = vld [vmem:[%s7804_s5 + $0x284] ss:$24 sps:$4 sm:$0xff]   ;;  %v6303_v48 = vld [vmem:[%s7804_s5 + $0x2b4] ss:$24 sps:$4 sm:$0xff]  }
 0x19c   : > { %v7959_v56 = vshrl.u32 %v902_v55, 7  ;;  %p6101_p3 = scmp.eq.s32.totalorder %s8856_s24, 1 }
 0x19e   : > { %1427 = vmatpush1.bf16.msra.mxu1 %v6188_v26  ;;  %v6270_v26 = vld [vmem:[%s7804_s5 + $0xa4] ss:$24 sps:$4 sm:$0xff]   ;;  %p7169_p11 = pnand %p7168_p5, %p6101_p3 }
 0x19f   : > { %1428 = vmatprep.subr.bf16.mxu1 %v6189_v27  ;;  %v6272_v27 = vld [vmem:[%s7804_s5 + $0xa0] ss:$24 sps:$4 sm:$0xff]  }
 0x1a0   : > { %p7170_p1 = pneg %p7169_p11 }
 0x1a2   : > { %1429 = vmatpush1.bf16.msra.mxu1 %v6191_v28  ;;  %v6273_v28 = vld [vmem:[%s7804_s5 + $0xd4] ss:$24 sps:$4 sm:$0xff]   ;;  %p7177_p12 = pnand %p7176_p9, %p7170_p1 }
 0x1a3   : > { %1430 = vmatprep.subr.bf16.mxu1 %v6192_v29  ;;  %v6275_v29 = vld [vmem:[%s7804_s5 + $0xd0] ss:$24 sps:$4 sm:$0xff]  }
 0x1a6   : > { %1431 = vmatpush1.bf16.msra.mxu1 %v6194_v30  ;;  %v6276_v30 = vld [vmem:[%s7804_s5 + $0x104] ss:$24 sps:$4 sm:$0xff]  }
 0x1a7   : > { %1432 = vmatprep.subr.bf16.mxu1 %v6195_v31  ;;  %v6278_v31 = vld [vmem:[%s7804_s5 + $0x100] ss:$24 sps:$4 sm:$0xff]  }
 0x1aa   : > { %1433 = vmatpush1.bf16.msra.mxu1 %v6197_v32  ;;  %v6279_v32 = vld [vmem:[%s7804_s5 + $0x134] ss:$24 sps:$4 sm:$0xff]  }
 0x1ab   : > { %1434 = vmatprep.subr.bf16.mxu1 %v6198_v33  ;;  %v6281_v33 = vld [vmem:[%s7804_s5 + $0x130] ss:$24 sps:$4 sm:$0xff]  }
 0x1ae   : > { %1435 = vmatpush1.bf16.msra.mxu1 %v6200_v34  ;;  %v6282_v34 = vld [vmem:[%s7804_s5 + $0x164] ss:$24 sps:$4 sm:$0xff]  }
 0x1af   : > { %1436 = vmatprep.subr.bf16.mxu1 %v6201_v35  ;;  %v6284_v35 = vld [vmem:[%s7804_s5 + $0x160] ss:$24 sps:$4 sm:$0xff]  }
 0x1b2   : > { %1437 = vmatpush1.bf16.msra.mxu1 %v6203_v36  ;;  %v6285_v36 = vld [vmem:[%s7804_s5 + $0x194] ss:$24 sps:$4 sm:$0xff]  }
 0x1b3   : > { %1438 = vmatprep.subr.bf16.mxu1 %v6204_v37  ;;  %v6287_v37 = vld [vmem:[%s7804_s5 + $0x190] ss:$24 sps:$4 sm:$0xff]  }
 0x1b6   : > { %1439 = vmatpush1.bf16.msra.mxu1 %v6206_v40  ;;  %v6291_v40 = vld [vmem:[%s7804_s5 + $0x1f4] ss:$24 sps:$4 sm:$0xff]  }
 0x1b7   : > { %1440 = vmatprep.subr.bf16.mxu1 %v6207_v41  ;;  %v6293_v41 = vld [vmem:[%s7804_s5 + $0x1f0] ss:$24 sps:$4 sm:$0xff]  }
 0x1ba   : > { %1441 = vmatpush1.bf16.msra.mxu1 %v6209_v42  ;;  %v6294_v42 = vld [vmem:[%s7804_s5 + $0x224] ss:$24 sps:$4 sm:$0xff]  }
 0x1bb   : > { %1442 = vmatprep.subr.bf16.mxu1 %v6210_v43  ;;  %v6296_v43 = vld [vmem:[%s7804_s5 + $0x220] ss:$24 sps:$4 sm:$0xff]  }
 0x1be   : > { %1443 = vmatpush1.bf16.msra.mxu1 %v6212_v44  ;;  %v6297_v44 = vld [vmem:[%s7804_s5 + $0x254] ss:$24 sps:$4 sm:$0xff]  }
 0x1bf   : > { %1465 = vmatprep.subr.bf16.mxu1 %v6215_v47  ;;  %v6302_v47 = vld [vmem:[%s7804_s5 + $0x280] ss:$24 sps:$4 sm:$0xff]  }
 0x1c1   : > { %1445 = vmatmul.mubr.bf16.vlgmr.msra.gmra.mrb[0].mxu1 %v7877_v51 }
 0x1c2   : > { %1466 = vmatpush1.bf16.msra.mxu1 %v6213_v50  ;;  %1454 = vmatprep.mubr.bf16.mxu1 %v7880_v53  ;;  %v6306_v50 = vld [vmem:[%s7804_s5 + $0x2e4] ss:$24 sps:$4 sm:$0xff]  }
 0x1c3   : > { %1467 = vmatprep.subr.bf16.mxu1 %v6218_v52  ;;  %v6308_v52 = vld [vmem:[%s7804_s5 + $0x2e0] ss:$24 sps:$4 sm:$0xff]  }
 0x1c6   : > { %1468 = vmatpush1.bf16.msra.mxu1 %v6216_v54  ;;  %v7286_v54 = vmov 0.0  }
 0x1c7   : > { %1469 = vmatprep.subr.bf16.mxu1 %v6221_v57  ;;  %v7968_v57 = vsub.s32 1, %v7959_v56 }
 0x1c9   : > { %1455 = vmatmul.mubr.bf16.gmra.mrb[4].mxu1 %v7888_v60 }
 0x1ca   : > { %1470 = vmatpush1.bf16.msra.mxu1 %v6219_v58  ;;  %1497 = vmatprep.mubr.bf16.mxu1 %v7850_v23  ;;  %v6266_v23 = vld [vmem:[%s7804_s5 + $0x40] ss:$24 sps:$4 sm:$0xff]  }
 0x1cb   : > { %1471 = vmatprep.subr.bf16.mxu1 %v6224_v59  ;;  %1521 = vmatpush1.bf16.msra.mxu0 %v6266_v23 }
 0x1cc   : > { %1522 = vmatprep.subr.bf16.mxu0 %v6267_v24  ;;  %v7975_v24 = vsub.s32 2, %v7959_v56 }
 0x1ce   : > { %1472 = vmatpush1.bf16.msra.mxu1 %v6222_v61 }
 0x1cf   : > { %1473 = vmatprep.subr.bf16.mxu1 %v6227_v62  ;;  %1523 = vmatpush1.bf16.msra.mxu0 %v6269_v25  ;;  %v7978_v25 = vsub.s32 3, %v7959_v56 }
 0x1d0   : > { %1524 = vmatprep.subr.bf16.mxu0 %v6270_v26 }
 0x1d2   : > { %1474 = vmatpush1.bf16.msra.mxu1 %v6225_v63 }
 0x1d3   : > { %1475 = vmatprep.subr.bf16.mxu1 %v6230_v0  ;;  %1525 = vmatpush1.bf16.msra.mxu0 %v6272_v27 }
 0x1d4   : > { %1526 = vmatprep.subr.bf16.mxu0 %v6273_v28 }
 0x1d6   : > { %1476 = vmatpush1.bf16.msra.mxu1 %v6228_v1 }
 0x1d7   : > { %1477 = vmatprep.subr.bf16.mxu1 %v6233_v2  ;;  %1527 = vmatpush1.bf16.msra.mxu0 %v6275_v29 }
 0x1d8   : > { %1528 = vmatprep.subr.bf16.mxu0 %v6276_v30 }
 0x1da   : > { %1478 = vmatpush1.bf16.msra.mxu1 %v6231_v3 }
 0x1db   : > { %1479 = vmatprep.subr.bf16.mxu1 %v6236_v4  ;;  %1529 = vmatpush1.bf16.msra.mxu0 %v6278_v31 }
 0x1dc   : > { %1530 = vmatprep.subr.bf16.mxu0 %v6279_v32 }
 0x1de   : > { %1480 = vmatpush1.bf16.msra.mxu1 %v6234_v5 }
 0x1df   : > { %1481 = vmatprep.subr.bf16.mxu1 %v6239_v6  ;;  %1531 = vmatpush1.bf16.msra.mxu0 %v6281_v33 }
 0x1e0   : > { %1532 = vmatprep.subr.bf16.mxu0 %v6282_v34 }
 0x1e2   : > { %1482 = vmatpush1.bf16.msra.mxu1 %v6237_v7 }
 0x1e3   : > { %1483 = vmatprep.subr.bf16.mxu1 %v6242_v8  ;;  %1533 = vmatpush1.bf16.msra.mxu0 %v6284_v35 }
 0x1e4   : > { %1534 = vmatprep.subr.bf16.mxu0 %v6285_v36 }
 0x1e6   : > { %1484 = vmatpush1.bf16.msra.mxu1 %v6240_v9 }
 0x1e7   : > { %1485 = vmatprep.subr.bf16.mxu1 %v6245_v10  ;;  %1535 = vmatpush1.bf16.msra.mxu0 %v6287_v37 }
 0x1e8   : > { %1536 = vmatprep.subr.bf16.mxu0 %v6288_v38 }
 0x1ea   : > { %1486 = vmatpush1.bf16.msra.mxu1 %v6243_v11 }
 0x1eb   : > { %1487 = vmatprep.subr.bf16.mxu1 %v6248_v12  ;;  %1537 = vmatpush1.bf16.msra.mxu0 %v6290_v39 }
 0x1ec   : > { %1538 = vmatprep.subr.bf16.mxu0 %v6291_v40 }
 0x1ee   : > { %1488 = vmatpush1.bf16.msra.mxu1 %v6246_v13 }
 0x1ef   : > { %1489 = vmatprep.subr.bf16.mxu1 %v6251_v14  ;;  %1539 = vmatpush1.bf16.msra.mxu0 %v6293_v41 }
 0x1f0   : > { %1540 = vmatprep.subr.bf16.mxu0 %v6294_v42 }
 0x1f2   : > { %1490 = vmatpush1.bf16.msra.mxu1 %v6249_v15 }
 0x1f3   : > { %1491 = vmatprep.subr.bf16.mxu1 %v6254_v16  ;;  %1541 = vmatpush1.bf16.msra.mxu0 %v6296_v43 }
 0x1f4   : > { %1542 = vmatprep.subr.bf16.mxu0 %v6297_v44 }
 0x1f6   : > { %1492 = vmatpush1.bf16.msra.mxu1 %v6252_v17 }
 0x1f7   : > { %1493 = vmatprep.subr.bf16.mxu1 %v6257_v18  ;;  %1543 = vmatpush1.bf16.msra.mxu0 %v6299_v45 }
 0x1f8   : > { %1544 = vmatprep.subr.bf16.mxu0 %v6300_v46 }
 0x1fa   : > { %1494 = vmatpush1.bf16.msra.mxu1 %v6255_v19 }
 0x1fb   : > { %1495 = vmatprep.subr.bf16.mxu1 %v6260_v20  ;;  %1545 = vmatpush1.bf16.msra.mxu0 %v6302_v47 }
 0x1fc   : > { %1546 = vmatprep.subr.bf16.mxu0 %v6303_v48  ;;  %v920_v48 = vsub.s32 4, %v7959_v56 }
 0x1fe   : > { %1496 = vmatpush1.bf16.msra.mxu1 %v6258_v21 }
 0x1ff   : > { %1547 = vmatpush1.bf16.msra.mxu0 %v6305_v49  ;;  %5927 = vmatprep.subr.bf16.mxu1 %v7286_v54  ;;  %v924_v49 = vsub.s32 5, %v7959_v56 }
 0x200   : > { %1548 = vmatprep.subr.bf16.mxu0 %v6306_v50 }
 0x201   : > { %1498 = vmatmul.mubr.bf16.vlgmr.msra.gmra.mrb[8].mxu1 %v7877_v51 }
 0x202   : > { %1507 = vmatprep.mubr.bf16.mxu1 %v7880_v53 }
 0x203   : > { %1549 = vmatpush1.bf16.msra.mxu0 %v6308_v52 }
 0x204   : > { %5909 = vmatprep.subr.bf16.mxu0 %v7286_v54 }
 0x206   : > { %1551 = vmatmul.mubr.bf16.vlgmr.msra.gmra.mrb[0].mxu0 %v7877_v51  ;;  %v7962_v51 = vsub.s32 0, %v7959_v56 }
 0x207   : > { %1560 = vmatprep.mubr.bf16.mxu0 %v7880_v53  ;;  %v7965_v53 = vld [vmem:[%s7834_s29] sm:$0x3f] }
 0x208   : > { %v905_v58 = vrot.slane %v7965_v53, %v7962_v51  ;;  %v909_v59 = vrot.slane %v7965_v53, %v7968_v57  ;;  %v913_v26 = vrot.slane %v7965_v53, %v7975_v24  ;;  %v917_v28 = vrot.slane %v7965_v53, %v7978_v25 }
 0x209   : > { %1508 = vmatmul.mubr.bf16.gmra.mrb[12].mxu1 %v7888_v60  ;;  %v921_v50 = vrot.slane %v7965_v53, %v920_v48  ;;  %v925_v52 = vrot.slane %v7965_v53, %v924_v49 }
 0x20a   : > { %5929 = vmatprep.mubr.msk.bf16.mxu1 %vm7287_vm0, %v7286_v54 }
 0x20e   : > { %1561 = vmatmul.mubr.bf16.gmra.mrb[4].mxu0 %v7888_v60 }
 0x20f   : > { %5911 = vmatprep.mubr.msk.bf16.mxu0 %vm7287_vm0, %v7286_v54 }
 0x294   : > { %v1446_v60 = vpop.f32.mrb[0].mxu1 }
 0x295   : > { %v1447_v61 = vadd.f32 %v1446_v60, %v905_v58  ;;  %v1448_v62 = vpop.f32.mrb[1].mxu1 }
 0x296   : > { %v1449_v63 = vadd.f32 %v1448_v62, %v909_v59  ;;  %v1450_v0 = vpop.f32.mrb[2].mxu1 }
 0x297   : > { %v1571_v1 = vmul.f32 0.088388346, %v1447_v61  ;;  %v1451_v2 = vadd.f32 %v1450_v0, %v905_v58  ;;  %v1452_v3 = vpop.f32.mrb[3].mxu1 }
 0x298   : > { %v1453_v4 = vadd.f32 %v1452_v3, %v909_v59  ;;  %v1572_v6 = vmul.f32 0.088388346, %v1449_v63 }
 0x299   : > { %v1573_v5 = vmul.f32 0.088388346, %v1451_v2 }
 0x29a   : > { %v1574_v7 = vmul.f32 0.088388346, %v1453_v4 }
 0x29b   : > { %v1579_v8 = vpack.c.bf16 %v1573_v5, %v1571_v1 }
 0x29c   : > { %v1580_v9 = vpack.c.bf16 %v1574_v7, %v1572_v6  ;;  %v1456_v10 = vpop.f32.mrb[4].mxu1 }
 0x29d   : > { %v1457_v11 = vadd.f32 %v1456_v10, %v905_v58  ;;  %v1458_v12 = vpop.f32.mrb[5].mxu1 }
 0x29e   : > { %v1459_v13 = vadd.f32 %v1458_v12, %v909_v59  ;;  %v1460_v14 = vpop.f32.mrb[6].mxu1 }
 0x29f   : > { %v1575_v15 = vmul.f32 0.088388346, %v1457_v11  ;;  %v1461_v16 = vadd.f32 %v1460_v14, %v905_v58  ;;  %v1462_v17 = vpop.f32.mrb[7].mxu1  ;;  %v793_v11 = vld [vmem:[#allocation7] sm:$0xff] }
 0x2a0   : > { %v1576_v18 = vmul.f32 0.088388346, %v1459_v13  ;;  %v1463_v19 = vadd.f32 %v1462_v17, %v909_v59  ;;  %v794_v13 = vld [vmem:[#allocation7 + $0x8] sm:$0xff] }
 0x2a1   : > { %v1577_v20 = vmul.f32 0.088388346, %v1461_v16 }
 0x2a2   : > { %v1578_v21 = vmul.f32 0.088388346, %v1463_v19 }
 0x2a3   : > { %v1581_v22 = vpack.c.bf16 %v1577_v20, %v1575_v15  ;;  %v795_v20 = vld [vmem:[#allocation7 + $0x10] sm:$0xff] }
 0x2a4   : > { %v1582_v23 = vpack.c.bf16 %v1578_v21, %v1576_v18 }
 0x2d4   : > { %v1499_v27 = vpop.f32.mrb[8].mxu1 }
 0x2d5   : > { %v1501_v29 = vpop.f32.mrb[9].mxu1  ;;  %v1500_v31 = vadd.f32 %v1499_v27, %v913_v26 }
 0x2d6   : > { %v1503_v30 = vpop.f32.mrb[10].mxu1  ;;  %v1502_v34 = vadd.f32 %v1501_v29, %v917_v28 }
 0x2d7   : > { %v1504_v32 = vadd.f32 %v1503_v30, %v913_v26  ;;  %v1505_v33 = vpop.f32.mrb[11].mxu1 }
 0x2d8   : > { %v1506_v35 = vadd.f32 %v1505_v33, %v917_v28 }
 0x2d9   : > { %v1583_v36 = vpack.c.bf16 %v1504_v32, %v1500_v31  ;;  %v1552_v55 = vpop.f32.mrb[0].mxu0 }
 0x2da   : > { %v1584_v37 = vpack.c.bf16 %v1506_v35, %v1502_v34  ;;  %v1553_v58 = vadd.f32 %v1552_v55, %v921_v50  ;;  %v1554_v59 = vpop.f32.mrb[1].mxu0 }
 0x2db   : > { %5910 = vmatpush3.bf16.xpose.msra.mxu0 %v1583_v36  ;;  %v7997_v60 = vadd.f32 %v1554_v59, %v925_v52  ;;  %v1556_v61 = vpop.f32.mrb[2].mxu0 }
 0x2dc   : > { %v1509_v38 = vpop.f32.mrb[12].mxu1  ;;  %5915 = vmatprep.subr.bf16.mxu0 %v7286_v54  ;;  %v1557_v62 = vadd.f32 %v1556_v61, %v921_v50  ;;  %v1558_v63 = vpop.f32.mrb[3].mxu0 }
 0x2dd   : > { %v1511_v39 = vpop.f32.mrb[13].mxu1  ;;  %v1510_v41 = vadd.f32 %v1509_v38, %v913_v26  ;;  %v7999_v0 = vadd.f32 %v1558_v63, %v925_v52 }
 0x2de   : > { %v1513_v40 = vpop.f32.mrb[14].mxu1  ;;  %v1512_v44 = vadd.f32 %v1511_v39, %v917_v28  ;;  %v1587_v1 = vpack.c.bf16 %v1557_v62, %v1553_v58 }
 0x2df   : > { %v1514_v42 = vadd.f32 %v1513_v40, %v913_v26  ;;  %v1515_v43 = vpop.f32.mrb[15].mxu1  ;;  %v1588_v2 = vpack.c.bf16 %v7999_v0, %v7997_v60 }
 0x2e0   : > { %v1516_v45 = vadd.f32 %v1515_v43, %v917_v28 }
 0x2e1   : > { %v1585_v46 = vpack.c.bf16 %v1514_v42, %v1510_v41  ;;  %v1562_v56 = vpop.f32.mrb[4].mxu0 }
 0x2e2   : > { %v1586_v47 = vpack.c.bf16 %v1516_v45, %v1512_v44  ;;  %5912 = vmatmul.mubr.bf16.vlgmr.msra.gmra.mrb[8].mxu0 %v1579_v8  ;;  %v8004_v3 = vadd.f32 %v1562_v56, %v921_v50  ;;  %v1564_v53 = vpop.f32.mrb[5].mxu0 }
 0x2e3   : > { %5916 = vmatpush3.bf16.xpose.msra.mxu0 %v1585_v46  ;;  %5917 = vmatprep.mubr.msk.bf16.mxu0 %vm7287_vm0, %v7286_v54  ;;  %v8006_v4 = vadd.f32 %v1564_v53, %v925_v52  ;;  %v1566_v5 = vpop.f32.mrb[6].mxu0 }
 0x2e4   : > { %5928 = vmatpush3.bf16.xpose.msra.mxu1 %v1586_v47  ;;  %5921 = vmatprep.subr.bf16.mxu0 %v7286_v54  ;;  %v8008_v6 = vadd.f32 %v1566_v5, %v921_v50  ;;  %v1568_v7 = vpop.f32.mrb[7].mxu0 }
 0x2e5   : > { %5933 = vmatprep.subr.bf16.mxu1 %v7286_v54  ;;  %v8010_v8 = vadd.f32 %v1568_v7, %v925_v52 }
 0x2e7   : > { %v1590_v10 = vpack.c.bf16 %v8010_v8, %v8006_v4  ;;  %v6347_v4 = vld [vmem:[%s7810_s17 + $0xc4] ss:$8 sps:$4 sm:$0xff]   ;;  %v6345_v8 = vld [vmem:[%s7810_s17 + $0xc0] ss:$8 sps:$4 sm:$0xff]  }
 0x2ea   : > { %5918 = vmatmul.mubr.bf16.vlgmr.msra.gmra.mrb[12].mxu0 %v1581_v22 }
 0x2eb   : > { %5922 = vmatpush3.bf16.xpose.msra.mxu0 %v1584_v37  ;;  %5930 = vmatmul.mubr.bf16.vlgmr.msra.gmra.mrb[16].mxu1 %v1582_v23  ;;  %v796_v23 = vld [vmem:[#allocation7 + $0x18] sm:$0xff] }
 0x2ec   : > { %5923 = vmatprep.mubr.msk.bf16.mxu0 %vm7287_vm0, %v7286_v54  ;;  %5935 = vmatprep.mubr.msk.bf16.mxu1 %vm7287_vm0, %v7286_v54 }
 0x2ed   : > { %5934 = vmatpush3.bf16.msra.mxu1 %v1587_v1 }
 0x2ee   : > { %5939 = vmatprep.subr.bf16.mxu1 %v7286_v54 }
 0x2f2   : > { %5924 = vmatmul.mubr.bf16.vlgmr.msra.gmra.mrb[16].mxu0 %v1580_v9  ;;  %v1589_v9 = vpack.c.bf16 %v8008_v6, %v8004_v3 }
 0x3b5   : > { %v1625_v12 = vpop.f32.mrb[8].mxu0 }
 0x3b6   : > { %v1755_v14 = vadd.f32 %v1625_v12, %v793_v11  ;;  %v5913_v15 = vpop.f32.mrb[9].mxu0 }
 0x3b7   : > { %v1628_v16 = vpop.f32.mrb[10].mxu0 }
 0x3b8   : > { %v1756_v17 = vadd.f32 %v1628_v16, %v794_v13  ;;  %v5914_v18 = vpop.f32.mrb[11].mxu0  ;;  %v1764_v19 = vsel %vm1763_vm1, %v1755_v14, -inf }
 0x3b9   : > { %1765 = vmax.xlane.f32.xlu0 %v1764_v19 }
 0x3ba   : > { %v1767_v21 = vsel %vm1763_vm1, %v1756_v17, -inf }
 0x3bd   : > { %1768 = vmax.xlane.f32.xlu0 %v1767_v21  ;;  %v1666_v22 = vpop.f32.mrb[12].mxu0 }
 0x3be   : > { %v1757_v26 = vadd.f32 %v1666_v22, %v795_v20  ;;  %v5919_v27 = vpop.f32.mrb[13].mxu0  ;;  %v1748_v28 = vpop.f32.mrb[16].mxu1 }
 0x3bf   : > { %v1669_v29 = vpop.f32.mrb[14].mxu0  ;;  %v5931_v30 = vpop.f32.mrb[17].mxu1  ;;  %v1761_v41 = vadd.f32 %v1748_v28, %v795_v20 }
 0x3c0   : > { %v1758_v31 = vadd.f32 %v1669_v29, %v796_v23  ;;  %v5920_v32 = vpop.f32.mrb[15].mxu0  ;;  %v1751_v33 = vpop.f32.mrb[18].mxu1  ;;  %v1770_v34 = vsel %vm1763_vm1, %v1757_v26, -inf }
 0x3c1   : > { %v5932_v35 = vpop.f32.mrb[19].mxu1  ;;  %1771 = vmax.xlane.f32.xlu1 %v1770_v34  ;;  %v1762_v45 = vadd.f32 %v1751_v33, %v796_v23  ;;  %v1782_v47 = vsel %vm1763_vm1, %v1761_v41, -inf }
 0x3c2   : > { %v1773_v36 = vsel %vm1763_vm1, %v1758_v31, -inf }
 0x3c3   : > { %v1785_v48 = vsel %vm1763_vm1, %v1762_v45, -inf }
 0x3c5   : > { %1774 = vmax.xlane.f32.xlu1 %v1773_v36  ;;  %v1707_v37 = vpop.f32.mrb[16].mxu0 }
 0x3c6   : > { %v1759_v38 = vadd.f32 %v1707_v37, %v793_v11  ;;  %v5925_v39 = vpop.f32.mrb[17].mxu0 }
 0x3c7   : > { %v1710_v40 = vpop.f32.mrb[18].mxu0  ;;  %v6309_v39 = vld [vmem:[%s7810_s17] ss:$8 sps:$4 sm:$0xff]  }
 0x3c8   : > { %v1760_v42 = vadd.f32 %v1710_v40, %v794_v13  ;;  %v5926_v43 = vpop.f32.mrb[19].mxu0  ;;  %v1776_v44 = vsel %vm1763_vm1, %v1759_v38, -inf  ;;  %v6311_v40 = vld [vmem:[%s7810_s17 + $0x4] ss:$8 sps:$4 sm:$0xff]  }
 0x3c9   : > { %1777 = vmax.xlane.f32.xlu0 %v1776_v44  ;;  %2239 = vmatprep.subr.bf16.mxu0 %v6311_v40  ;;  %v6317_v43 = vld [vmem:[%s7810_s17 + $0x24] ss:$8 sps:$4 sm:$0xff]   ;;  %v6315_v44 = vld [vmem:[%s7810_s17 + $0x20] ss:$8 sps:$4 sm:$0xff]  }
 0x3ca   : > { %v1779_v46 = vsel %vm1763_vm1, %v1760_v42, -inf  ;;  %2240 = vmatpush1.bf16.msra.mxu0 %v6309_v39  ;;  %v6354_v39 = vld [vmem:[%s7810_s17 + $0xf0] ss:$8 sps:$4 sm:$0xff]  }
 0x3cb   : > { %1780 = vmax.xlane.f32.xlu1 %v1779_v46  ;;  %v6318_v46 = vld [vmem:[%s7810_s17 + $0x30] ss:$8 sps:$4 sm:$0xff]  }
 0x3cd   : > { %1783 = vmax.xlane.f32.xlu0 %v1782_v47  ;;  %v6323_v47 = vld [vmem:[%s7810_s17 + $0x44] ss:$8 sps:$4 sm:$0xff]  }
 0x3cf   : > { %1786 = vmax.xlane.f32.xlu1 %v1785_v48  ;;  %v6321_v48 = vld [vmem:[%s7810_s17 + $0x40] ss:$8 sps:$4 sm:$0xff]  }
 0x446   : > { %v1766_v49 = vpop.xlane.xlu0 %1765 }
 0x447   : > { %v1788_v50 = vsub.f32 %v1755_v14, %v1766_v49  ;;  %v6326_v49 = vld [vmem:[%s7810_s17 + $0x54] ss:$8 sps:$4 sm:$0xff]  }
 0x449   : > { %v1796_v52 = vmul.f32 1.442695, %v1788_v50  ;;  %v6324_v50 = vld [vmem:[%s7810_s17 + $0x50] ss:$8 sps:$4 sm:$0xff]  }
 0x44a   : > { %v1769_v55 = vpop.xlane.xlu0 %1768 }
 0x44b   : > { %6747 = vpow2.f32 %v1796_v52  ;;  %v1789_v58 = vsub.f32 %v1756_v17, %v1769_v55  ;;  %v6329_v52 = vld [vmem:[%s7810_s17 + $0x64] ss:$8 sps:$4 sm:$0xff]   ;;  %v6327_v55 = vld [vmem:[%s7810_s17 + $0x60] ss:$8 sps:$4 sm:$0xff]  }
 0x44d   : > { %v1798_v59 = vmul.f32 1.442695, %v1789_v58  ;;  %v6332_v58 = vld [vmem:[%s7810_s17 + $0x74] ss:$8 sps:$4 sm:$0xff]  }
 0x44e   : > { %v1772_v61 = vpop.xlane.xlu1 %1771 }
 0x44f   : > { %6749 = vpow2.f32 %v1798_v59  ;;  %v1790_v62 = vsub.f32 %v1757_v26, %v1772_v61  ;;  %v6330_v59 = vld [vmem:[%s7810_s17 + $0x70] ss:$8 sps:$4 sm:$0xff]   ;;  %v6335_v61 = vld [vmem:[%s7810_s17 + $0x84] ss:$8 sps:$4 sm:$0xff]  }
 0x451   : > { %v1800_v63 = vmul.f32 1.442695, %v1790_v62  ;;  %v6333_v62 = vld [vmem:[%s7810_s17 + $0x80] ss:$8 sps:$4 sm:$0xff]  }
 0x452   : > { %v1775_v1 = vpop.xlane.xlu1 %1774 }
 0x453   : > { %6751 = vpow2.f32 %v1800_v63  ;;  %v1791_v56 = vsub.f32 %v1758_v31, %v1775_v1  ;;  %v6338_v63 = vld [vmem:[%s7810_s17 + $0x94] ss:$8 sps:$4 sm:$0xff]   ;;  %v6336_v1 = vld [vmem:[%s7810_s17 + $0x90] ss:$8 sps:$4 sm:$0xff]  }
 0x455   : > { %v8024_v53 = vpop.eup %6747  ;;  %v1802_v5 = vmul.f32 1.442695, %v1791_v56  ;;  %v6341_v56 = vld [vmem:[%s7810_s17 + $0xa4] ss:$8 sps:$4 sm:$0xff]  }
 0x456   : > { %v1778_v7 = vpop.xlane.xlu0 %1777  ;;  %v1812_v11 = vsel %vm1763_vm1, %v8024_v53, 0.0 }
 0x457   : > { %6753 = vpow2.f32 %v1802_v5  ;;  %v1792_v12 = vsub.f32 %v1759_v38, %v1778_v7  ;;  %1813 = vadd.xlane.f32.xlu0 %v1812_v11  ;;  %v6339_v5 = vld [vmem:[%s7810_s17 + $0xa0] ss:$8 sps:$4 sm:$0xff]  }
 0x458   : > { %v1781_v13 = vpop.xlane.xlu1 %1780 }
 0x459   : > { %v8028_v14 = vpop.eup %6749  ;;  %v1804_v15 = vmul.f32 1.442695, %v1792_v12  ;;  %v1793_v16 = vsub.f32 %v1760_v42, %v1781_v13  ;;  %v6312_v42 = vld [vmem:[%s7810_s17 + $0x10] ss:$8 sps:$4 sm:$0xff]  }
 0x45a   : > { %v1784_v17 = vpop.xlane.xlu0 %1783  ;;  %v1815_v18 = vsel %vm1763_vm1, %v8028_v14, 0.0 }
 0x45b   : > { %6755 = vpow2.f32 %v1804_v15  ;;  %v1806_v19 = vmul.f32 1.442695, %v1793_v16  ;;  %v1794_v20 = vsub.f32 %v1761_v41, %v1784_v17  ;;  %1816 = vadd.xlane.f32.xlu1 %v1815_v18  ;;  %v6314_v41 = vld [vmem:[%s7810_s17 + $0x14] ss:$8 sps:$4 sm:$0xff]  }
 0x45c   : > { %v1787_v21 = vpop.xlane.xlu1 %1786  ;;  %2241 = vmatprep.subr.bf16.mxu0 %v6314_v41 }
 0x45d   : > { %v8032_v22 = vpop.eup %6751  ;;  %6757 = vpow2.f32 %v1806_v19  ;;  %v1808_v23 = vmul.f32 1.442695, %v1794_v20  ;;  %v1795_v26 = vsub.f32 %v1762_v45, %v1787_v21  ;;  %2242 = vmatpush1.bf16.msra.mxu0 %v6312_v42  ;;  %v6320_v45 = vld [vmem:[%s7810_s17 + $0x34] ss:$8 sps:$4 sm:$0xff]  }
 0x45e   : > { %v1818_v27 = vsel %vm1763_vm1, %v8032_v22, 0.0  ;;  %2243 = vmatprep.subr.bf16.mxu0 %v6317_v43 }
 0x45f   : > { %6759 = vpow2.f32 %v1808_v23  ;;  %v1810_v28 = vmul.f32 1.442695, %v1795_v26  ;;  %1819 = vadd.xlane.f32.xlu0 %v1818_v27 }
 0x461   : > { %v8036_v29 = vpop.eup %6753  ;;  %6761 = vpow2.f32 %v1810_v28  ;;  %2244 = vmatpush1.bf16.msra.mxu0 %v6315_v44 }
 0x462   : > { %v1821_v30 = vsel %vm1763_vm1, %v8036_v29, 0.0  ;;  %2245 = vmatprep.subr.bf16.mxu0 %v6320_v45 }
 0x463   : > { %1822 = vadd.xlane.f32.xlu1 %v1821_v30 }
 0x465   : > { %v8040_v31 = vpop.eup %6755  ;;  %2246 = vmatpush1.bf16.msra.mxu0 %v6318_v46 }
 0x466   : > { %v1824_v32 = vsel %vm1763_vm1, %v8040_v31, 0.0  ;;  %2247 = vmatprep.subr.bf16.mxu0 %v6323_v47 }
 0x467   : > { %v8044_v33 = vpop.eup %6757  ;;  %1825 = vadd.xlane.f32.xlu0 %v1824_v32 }
 0x468   : > { %v1827_v34 = vsel %vm1763_vm1, %v8044_v33, 0.0 }
 0x469   : > { %v8048_v35 = vpop.eup %6759  ;;  %1828 = vadd.xlane.f32.xlu1 %v1827_v34  ;;  %2248 = vmatpush1.bf16.msra.mxu0 %v6321_v48  ;;  %v6342_v34 = vld [vmem:[%s7810_s17 + $0xb0] ss:$8 sps:$4 sm:$0xff]  }
 0x46a   : > { %v1830_v36 = vsel %vm1763_vm1, %v8048_v35, 0.0  ;;  %2249 = vmatprep.subr.bf16.mxu0 %v6326_v49 }
 0x46b   : > { %v8052_v37 = vpop.eup %6761  ;;  %1831 = vadd.xlane.f32.xlu0 %v1830_v36  ;;  %v6348_v36 = vld [vmem:[%s7810_s17 + $0xd0] ss:$8 sps:$4 sm:$0xff]  }
 0x46c   : > { %v1833_v38 = vsel %vm1763_vm1, %v8052_v37, 0.0 }
 0x46d   : > { %1834 = vadd.xlane.f32.xlu1 %v1833_v38  ;;  %2250 = vmatpush1.bf16.msra.mxu0 %v6324_v50  ;;  %v6356_v38 = vld [vmem:[%s7810_s17 + $0xf4] ss:$8 sps:$4 sm:$0xff]  }
 0x46e   : > { %2251 = vmatprep.subr.bf16.mxu0 %v6329_v52 }
 0x471   : > { %2252 = vmatpush1.bf16.msra.mxu0 %v6327_v55 }
 0x472   : > { %2253 = vmatprep.subr.bf16.mxu0 %v6332_v58 }
 0x475   : > { %2254 = vmatpush1.bf16.msra.mxu0 %v6330_v59 }
 0x476   : > { %2255 = vmatprep.subr.bf16.mxu0 %v6335_v61 }
 0x479   : > { %2256 = vmatpush1.bf16.msra.mxu0 %v6333_v62 }
 0x47a   : > { %2257 = vmatprep.subr.bf16.mxu0 %v6338_v63 }
 0x47d   : > { %2258 = vmatpush1.bf16.msra.mxu0 %v6336_v1 }
 0x47e   : > { %2259 = vmatprep.subr.bf16.mxu0 %v6341_v56 }
 0x481   : > { %2260 = vmatpush1.bf16.msra.mxu0 %v6339_v5  ;;  %v773_v5 = vld [vmem:[%s7834_s29 + $0x6] sm:$0x3] }
 0x4e4   : > { %v1814_v7 = vpop.xlane.xlu0 %1813 }
 0x4e5   : > { %6763 = vrcp.f32 %v1814_v7  ;;  %v2072_v7 = vrot.slane %v773_v5, %v7962_v51 }
 0x4e8   : > { %v1817_v11 = vpop.xlane.xlu1 %1816 }
 0x4e9   : > { %6765 = vrcp.f32 %v1817_v11  ;;  %v2076_v11 = vrot.slane %v773_v5, %v7968_v57  ;;  %v6387_v5 = vld [vmem:[%s7812_s12 + $0x40] ss:$8 sps:$4 sm:$0xff]  }
 0x4ec   : > { %v1820_v12 = vpop.xlane.xlu0 %1819 }
 0x4ed   : > { %6767 = vrcp.f32 %v1820_v12 }
 0x4ef   : > { %v6764_v15 = vpop.eup %6763 }
 0x4f0   : > { %v1823_v13 = vpop.xlane.xlu1 %1822  ;;  %v1844_v17 = vmul.f32 %v6764_v15, %v8024_v53 }
 0x4f1   : > { %6769 = vrcp.f32 %v1823_v13 }
 0x4f3   : > { %v6766_v16 = vpop.eup %6765 }
 0x4f4   : > { %v1845_v18 = vmul.f32 %v6766_v16, %v8028_v14  ;;  %v1826_v19 = vpop.xlane.xlu0 %1825 }
 0x4f5   : > { %6771 = vrcp.f32 %v1826_v19 }
 0x4f6   : > { %v1829_v20 = vpop.xlane.xlu1 %1828  ;;  %v1852_v21 = vpack.c.bf16 %v1845_v18, %v1844_v17  ;;  %v6835_v18 = vld [vmem:[#allocation20] sm:$0xff] }
 0x4f7   : > { %6773 = vrcp.f32 %v1829_v20  ;;  %v6768_v23 = vpop.eup %6767 }
 0x4f8   : > { %5936 = vmatmul.mubr.msk.bf16.vlgmr.msra.gmra.mrb[20].mxu1 %vm1763_vm1, %v1852_v21  ;;  %v1846_v14 = vmul.f32 %v6768_v23, %v8032_v22  ;;  %v1832_v28 = vpop.xlane.xlu0 %1831  ;;  %v6836_v23 = vld [vmem:[#allocation20 + $0x8] sm:$0xff] }
 0x4f9   : > { %5940 = vmatpush3.bf16.msra.mxu1 %v1589_v9  ;;  %5941 = vmatprep.mubr.msk.bf16.mxu1 %vm7287_vm0, %v7286_v54 }
 0x4fa   : > { %v1835_v26 = vpop.xlane.xlu1 %1834  ;;  %5945 = vmatprep.subr.bf16.mxu1 %v7286_v54 }
 0x4fb   : > { %v6770_v53 = vpop.eup %6769  ;;  %6775 = vrcp.f32 %v1835_v26 }
 0x4fc   : > { %v1847_v27 = vmul.f32 %v6770_v53, %v8036_v29  ;;  %6777 = vrcp.f32 %v1832_v28  ;;  %v6838_v28 = vld [vmem:[#allocation20 + $0x18] sm:$0xff] }
 0x4fe   : > { %v1853_v30 = vpack.c.bf16 %v1847_v27, %v1846_v14  ;;  %v6837_v14 = vld [vmem:[#allocation20 + $0x10] sm:$0xff] }
 0x4ff   : > { %v6772_v32 = vpop.eup %6771 }
 0x500   : > { %5942 = vmatmul.mubr.msk.bf16.vlgmr.msra.gmra.mrb[24].mxu1 %vm1763_vm1, %v1853_v30  ;;  %v1848_v9 = vmul.f32 %v6772_v32, %v8040_v31 }
 0x501   : > { %v6774_v3 = vpop.eup %6773  ;;  %5946 = vmatpush3.bf16.msra.mxu1 %v1588_v2  ;;  %5947 = vmatprep.mubr.msk.bf16.mxu1 %vm7287_vm0, %v7286_v54 }
 0x502   : > { %v1849_v6 = vmul.f32 %v6774_v3, %v8044_v33  ;;  %5951 = vmatprep.subr.bf16.mxu1 %v7286_v54  ;;  %v6344_v33 = vld [vmem:[%s7810_s17 + $0xb4] ss:$8 sps:$4 sm:$0xff]  }
 0x503   : > { %2261 = vmatprep.subr.bf16.mxu0 %v6344_v33 }
 0x504   : > { %v1854_v22 = vpack.c.bf16 %v1849_v6, %v1848_v9  ;;  %2262 = vmatpush1.bf16.msra.mxu0 %v6342_v34  ;;  %v6840_v34 = vld [vmem:[#allocation20 + $0x28] sm:$0xff] }
 0x505   : > { %v6776_v29 = vpop.eup %6775  ;;  %2263 = vmatprep.subr.bf16.mxu0 %v6347_v4 }
 0x506   : > { %v6778_v60 = vpop.eup %6777  ;;  %v1851_v0 = vmul.f32 %v6776_v29, %v8052_v37  ;;  %v6353_v37 = vld [vmem:[%s7810_s17 + $0xe4] ss:$8 sps:$4 sm:$0xff]  }
 0x507   : > { %v1850_v2 = vmul.f32 %v6778_v60, %v8048_v35  ;;  %v6351_v35 = vld [vmem:[%s7810_s17 + $0xe0] ss:$8 sps:$4 sm:$0xff]  }
 0x508   : > { %5948 = vmatmul.mubr.msk.bf16.vlgmr.msra.gmra.mrb[28].mxu1 %vm1763_vm1, %v1854_v22  ;;  %2264 = vmatpush1.bf16.msra.mxu0 %v6345_v8 }
 0x509   : > { %5952 = vmatpush3.bf16.msra.mxu1 %v1590_v10  ;;  %5953 = vmatprep.mubr.msk.bf16.mxu1 %vm7287_vm0, %v7286_v54  ;;  %v1855_v31 = vpack.c.bf16 %v1851_v0, %v1850_v2  ;;  %v6350_v10 = vld [vmem:[%s7810_s17 + $0xd4] ss:$8 sps:$4 sm:$0xff]   ;;  %v6839_v0 = vld [vmem:[#allocation20 + $0x20] sm:$0xff] }
 0x50a   : > { %2265 = vmatprep.subr.bf16.mxu0 %v6350_v10  ;;  %v6841_v10 = vld [vmem:[#allocation20 + $0x30] sm:$0xff] }
 0x50c   : > { %2266 = vmatpush1.bf16.msra.mxu0 %v6348_v36 }
 0x50d   : > { %2267 = vmatprep.subr.bf16.mxu0 %v6353_v37  ;;  %v6842_v37 = vld [vmem:[#allocation20 + $0x38] sm:$0xff] }
 0x510   : > { %5954 = vmatmul.mubr.msk.bf16.vlgmr.msra.gmra.mrb[32].mxu1 %vm1763_vm1, %v1855_v31  ;;  %2268 = vmatpush1.bf16.msra.mxu0 %v6351_v35 }
 0x511   : > { %2269 = vmatprep.subr.bf16.mxu0 %v6356_v38 }
 0x514   : > { %2270 = vmatpush1.bf16.msra.mxu0 %v6354_v39 }
 0x5cb   : > { %v1893_v40 = vpop.f32.mrb[20].mxu1 }
 0x5cc   : > { %v5937_v41 = vpop.f32.mrb[21].mxu1 }
 0x5cd   : > { %v1896_v42 = vpop.f32.mrb[22].mxu1  ;;  %v6359_v41 = vld [vmem:[%s7818_s20 + $0x4] ss:$16 sps:$4 sm:$0xff]  }
 0x5ce   : > { %v2032_v43 = vpack.c.bf16 %v1896_v42, %v1893_v40  ;;  %v5938_v44 = vpop.f32.mrb[23].mxu1  ;;  %v6357_v40 = vld [vmem:[%s7818_s20] ss:$16 sps:$4 sm:$0xff]   ;;  %v6362_v42 = vld [vmem:[%s7818_s20 + $0x24] ss:$16 sps:$4 sm:$0xff]   ;;  %3088 = vmatprep.subr.bf16.mxu0 %v6359_v41 }
 0x5cf   : > { %v6365_v44 = vld [vmem:[%s7812_s12 + $0x4] ss:$8 sps:$4 sm:$0xff]  }
 0x5d0   : > { %2610 = vmatprep.subr.bf16.mxu1 %v6365_v44 }
 0x5d3   : > { %v1937_v45 = vpop.f32.mrb[24].mxu1 }
 0x5d4   : > { %v5943_v46 = vpop.f32.mrb[25].mxu1 }
 0x5d5   : > { %v1940_v47 = vpop.f32.mrb[26].mxu1  ;;  %v6371_v46 = vld [vmem:[%s7812_s12 + $0x14] ss:$8 sps:$4 sm:$0xff]  }
 0x5d6   : > { %v2034_v48 = vpack.c.bf16 %v1940_v47, %v1937_v45  ;;  %v5944_v49 = vpop.f32.mrb[27].mxu1  ;;  %v6360_v45 = vld [vmem:[%s7818_s20 + $0x20] ss:$16 sps:$4 sm:$0xff]   ;;  %v6368_v47 = vld [vmem:[%s7818_s20 + $0x44] ss:$16 sps:$4 sm:$0xff]  }
 0x5d7   : > { %v6377_v49 = vld [vmem:[%s7812_s12 + $0x24] ss:$8 sps:$4 sm:$0xff]  }
 0x5db   : > { %v1981_v50 = vpop.f32.mrb[28].mxu1 }
 0x5dc   : > { %v5949_v52 = vpop.f32.mrb[29].mxu1 }
 0x5dd   : > { %v1984_v55 = vpop.f32.mrb[30].mxu1  ;;  %v6374_v52 = vld [vmem:[%s7818_s20 + $0x64] ss:$16 sps:$4 sm:$0xff]  }
 0x5de   : > { %v2033_v58 = vpack.c.bf16 %v1984_v55, %v1981_v50  ;;  %v5950_v59 = vpop.f32.mrb[31].mxu1  ;;  %v6366_v50 = vld [vmem:[%s7818_s20 + $0x40] ss:$16 sps:$4 sm:$0xff]  }
 0x5df   : > { %v6375_v55 = vld [vmem:[%s7812_s12 + $0x20] ss:$8 sps:$4 sm:$0xff]  }
 0x5e0   : > { %2271 = vmatprep.mubr.bf16.mxu0 %v2033_v58  ;;  %v6383_v58 = vld [vmem:[%s7812_s12 + $0x34] ss:$8 sps:$4 sm:$0xff]   ;;  %v6372_v59 = vld [vmem:[%s7818_s20 + $0x60] ss:$16 sps:$4 sm:$0xff]  }
 0x5e1   : > { %2272 = vmatmul.mubr.bf16.vlgmr.msra.gmra.mrb[20].mxu0 %v2032_v43  ;;  %v6363_v43 = vld [vmem:[%s7812_s12] ss:$8 sps:$4 sm:$0xff]  }
 0x5e2   : > { %3089 = vmatpush1.bf16.msra.mxu0 %v6357_v40  ;;  %2611 = vmatpush1.bf16.msra.mxu1 %v6363_v43 }
 0x5e3   : > { %v2025_v61 = vpop.f32.mrb[32].mxu1  ;;  %3090 = vmatprep.subr.bf16.mxu0 %v6362_v42  ;;  %2612 = vmatprep.subr.bf16.mxu1 %v6371_v46 }
 0x5e4   : > { %v5955_v62 = vpop.f32.mrb[33].mxu1 }
 0x5e5   : > { %v2028_v63 = vpop.f32.mrb[34].mxu1  ;;  %v6381_v62 = vld [vmem:[%s7812_s12 + $0x30] ss:$8 sps:$4 sm:$0xff]  }
 0x5e6   : > { %v2035_v1 = vpack.c.bf16 %v2028_v63, %v2025_v61  ;;  %v5956_v56 = vpop.f32.mrb[35].mxu1  ;;  %3091 = vmatpush1.bf16.msra.mxu0 %v6360_v45  ;;  %v6380_v61 = vld [vmem:[%s7818_s20 + $0x84] ss:$16 sps:$4 sm:$0xff]  }
 0x5e7   : > { %3092 = vmatprep.subr.bf16.mxu0 %v6368_v47  ;;  %v6389_v63 = vld [vmem:[%s7812_s12 + $0x44] ss:$8 sps:$4 sm:$0xff]  }
 0x5e8   : > { %2281 = vmatprep.mubr.bf16.mxu0 %v2035_v1  ;;  %v6378_v1 = vld [vmem:[%s7818_s20 + $0x80] ss:$16 sps:$4 sm:$0xff]   ;;  %v6386_v56 = vld [vmem:[%s7818_s20 + $0xa4] ss:$16 sps:$4 sm:$0xff]  }
 0x5e9   : > { %2282 = vmatmul.mubr.bf16.gmra.mrb[24].mxu0 %v2034_v48  ;;  %v6369_v48 = vld [vmem:[%s7812_s12 + $0x10] ss:$8 sps:$4 sm:$0xff]  }
 0x5ea   : > { %2613 = vmatpush1.bf16.msra.mxu1 %v6369_v48  ;;  %3093 = vmatpush1.bf16.msra.mxu0 %v6366_v50 }
 0x5eb   : > { %2614 = vmatprep.subr.bf16.mxu1 %v6377_v49  ;;  %3094 = vmatprep.subr.bf16.mxu0 %v6374_v52 }
 0x5ee   : > { %2615 = vmatpush1.bf16.msra.mxu1 %v6375_v55  ;;  %3095 = vmatpush1.bf16.msra.mxu0 %v6372_v59  ;;  %v6428_v59 = vld [vmem:[%s7818_s20 + $0x184] ss:$16 sps:$4 sm:$0xff]  }
 0x5ef   : > { %2616 = vmatprep.subr.bf16.mxu1 %v6383_v58  ;;  %3096 = vmatprep.subr.bf16.mxu0 %v6380_v61  ;;  %v6425_v58 = vld [vmem:[%s7812_s12 + $0xa4] ss:$8 sps:$4 sm:$0xff]   ;;  %v6423_v61 = vld [vmem:[%s7812_s12 + $0xa0] ss:$8 sps:$4 sm:$0xff]  }
 0x5f2   : > { %2617 = vmatpush1.bf16.msra.mxu1 %v6381_v62  ;;  %3097 = vmatpush1.bf16.msra.mxu0 %v6378_v1  ;;  %v6426_v62 = vld [vmem:[%s7818_s20 + $0x180] ss:$16 sps:$4 sm:$0xff]   ;;  %v6434_v1 = vld [vmem:[%s7818_s20 + $0x1a4] ss:$16 sps:$4 sm:$0xff]  }
 0x5f3   : > { %2618 = vmatprep.subr.bf16.mxu1 %v6389_v63  ;;  %3098 = vmatprep.subr.bf16.mxu0 %v6386_v56  ;;  %v6431_v63 = vld [vmem:[%s7812_s12 + $0xb4] ss:$8 sps:$4 sm:$0xff]   ;;  %v6429_v56 = vld [vmem:[%s7812_s12 + $0xb0] ss:$8 sps:$4 sm:$0xff]  }
 0x5f6   : > { %2619 = vmatpush1.bf16.msra.mxu1 %v6387_v5  ;;  %v6432_v5 = vld [vmem:[%s7818_s20 + $0x1a0] ss:$16 sps:$4 sm:$0xff]  }
 0x6b4   : > { %v2273_v12 = vpop.f32.mrb[20].mxu0 }
 0x6b5   : > { %v2274_v13 = vadd.f32 %v2273_v12, %v2072_v7  ;;  %v2275_v15 = vpop.f32.mrb[21].mxu0  ;;  %v6392_v12 = vld [vmem:[%s7818_s20 + $0xc4] ss:$16 sps:$4 sm:$0xff]  }
 0x6b6   : > { %v2276_v16 = vadd.f32 %v2275_v15, %v2076_v11  ;;  %v2277_v17 = vpop.f32.mrb[22].mxu0  ;;  %v6401_v15 = vld [vmem:[%s7812_s12 + $0x64] ss:$8 sps:$4 sm:$0xff]  }
 0x6b7   : > { %v8120_v19 = vadd.f32 %v6835_v18, %v2274_v13  ;;  %v2278_v20 = vadd.f32 %v2277_v17, %v2072_v7  ;;  %v2279_v21 = vpop.f32.mrb[23].mxu0  ;;  %v6393_v13 = vld [vmem:[%s7812_s12 + $0x50] ss:$8 sps:$4 sm:$0xff]   ;;  %v6398_v17 = vld [vmem:[%s7818_s20 + $0xe4] ss:$16 sps:$4 sm:$0xff]  }
 0x6b8   : > { %v8122_v26 = vadd.f32 %v6836_v23, %v2276_v16  ;;  %v2280_v53 = vadd.f32 %v2279_v21, %v2076_v11  ;;  %v6390_v16 = vld [vmem:[%s7818_s20 + $0xc0] ss:$16 sps:$4 sm:$0xff]   ;;  %v6404_v23 = vld [vmem:[%s7818_s20 + $0x104] ss:$16 sps:$4 sm:$0xff]  }
 0x6b9   : > { %v8124_v27 = vadd.f32 %v6837_v14, %v2278_v20  ;;  %v6399_v18 = vld [vmem:[%s7812_s12 + $0x60] ss:$8 sps:$4 sm:$0xff]   ;;  %v6407_v20 = vld [vmem:[%s7812_s12 + $0x74] ss:$8 sps:$4 sm:$0xff]   ;;  %v6413_v14 = vld [vmem:[%s7812_s12 + $0x84] ss:$8 sps:$4 sm:$0xff]  }
 0x6ba   : > { %v8126_v30 = vadd.f32 %v6838_v28, %v2280_v53  ;;  %v2300_v32 = vadd.f32 %v8122_v26, %v8120_v19  ;;  %v6396_v21 = vld [vmem:[%s7818_s20 + $0xe0] ss:$16 sps:$4 sm:$0xff]  }
 0x6bb   : > { %v6405_v53 = vld [vmem:[%s7812_s12 + $0x70] ss:$8 sps:$4 sm:$0xff]  }
 0x6bc   : > { %v2283_v3 = vpop.f32.mrb[24].mxu0  ;;  %2301 = vadd.xlane.f32.xlu0 %v2300_v32  ;;  %v2303_v6 = vadd.f32 %v8126_v30, %v8124_v27  ;;  %v6402_v28 = vld [vmem:[%s7818_s20 + $0x100] ss:$16 sps:$4 sm:$0xff]   ;;  %v6410_v32 = vld [vmem:[%s7818_s20 + $0x124] ss:$16 sps:$4 sm:$0xff]  }
 0x6bd   : > { %v2284_v9 = vadd.f32 %v2283_v3, %v2072_v7  ;;  %v2285_v22 = vpop.f32.mrb[25].mxu0  ;;  %v6411_v3 = vld [vmem:[%s7812_s12 + $0x80] ss:$8 sps:$4 sm:$0xff]  }
 0x6be   : > { %v2286_v29 = vadd.f32 %v2285_v22, %v2076_v11  ;;  %v2287_v60 = vpop.f32.mrb[26].mxu0  ;;  %2304 = vadd.xlane.f32.xlu1 %v2303_v6  ;;  %v6419_v6 = vld [vmem:[%s7812_s12 + $0x94] ss:$8 sps:$4 sm:$0xff]  }
 0x6bf   : > { %v8132_v2 = vadd.f32 %v6839_v0, %v2284_v9  ;;  %v2288_v31 = vadd.f32 %v2287_v60, %v2072_v7  ;;  %v2289_v33 = vpop.f32.mrb[27].mxu0  ;;  %v6395_v7 = vld [vmem:[%s7812_s12 + $0x54] ss:$8 sps:$4 sm:$0xff]   ;;  %v6408_v9 = vld [vmem:[%s7818_s20 + $0x120] ss:$16 sps:$4 sm:$0xff]  }
 0x6c0   : > { %v8134_v4 = vadd.f32 %v6840_v34, %v2286_v29  ;;  %v2290_v8 = vadd.f32 %v2289_v33, %v2076_v11  ;;  %v6384_v11 = vld [vmem:[%s7818_s20 + $0xa0] ss:$16 sps:$4 sm:$0xff]   ;;  %2620 = vmatprep.subr.bf16.mxu1 %v6395_v7  ;;  %v6416_v22 = vld [vmem:[%s7818_s20 + $0x144] ss:$16 sps:$4 sm:$0xff]  }
 0x6c1   : > { %v8136_v36 = vadd.f32 %v6841_v10, %v2288_v31  ;;  %3099 = vmatpush1.bf16.msra.mxu0 %v6384_v11  ;;  %2621 = vmatpush1.bf16.msra.mxu1 %v6393_v13  ;;  %v6417_v29 = vld [vmem:[%s7812_s12 + $0x90] ss:$8 sps:$4 sm:$0xff]   ;;  %v6422_v0 = vld [vmem:[%s7818_s20 + $0x164] ss:$16 sps:$4 sm:$0xff]  }
 0x6c2   : > { %v8138_v35 = vadd.f32 %v6842_v37, %v2290_v8  ;;  %v2306_v38 = vadd.f32 %v8134_v4, %v8132_v2  ;;  %3100 = vmatprep.subr.bf16.mxu0 %v6392_v12  ;;  %2622 = vmatprep.subr.bf16.mxu1 %v6401_v15  ;;  %v6414_v60 = vld [vmem:[%s7818_s20 + $0x140] ss:$16 sps:$4 sm:$0xff]   ;;  %v6437_v7 = vld [vmem:[%s7812_s12 + $0xc4] ss:$8 sps:$4 sm:$0xff]   ;;  %v6443_v15 = vld [vmem:[%s7812_s12 + $0xd4] ss:$8 sps:$4 sm:$0xff]  }
 0x6c3   : > { %v6420_v31 = vld [vmem:[%s7818_s20 + $0x160] ss:$16 sps:$4 sm:$0xff]   ;;  %v6440_v11 = vld [vmem:[%s7818_s20 + $0x1c4] ss:$16 sps:$4 sm:$0xff]  }
 0x6c4   : > { %2307 = vadd.xlane.f32.xlu0 %v2306_v38  ;;  %v2309_v39 = vadd.f32 %v8138_v35, %v8136_v36  ;;  %v6435_v12 = vld [vmem:[%s7812_s12 + $0xc0] ss:$8 sps:$4 sm:$0xff]  }
 0x6c5   : > { %3101 = vmatpush1.bf16.msra.mxu0 %v6390_v16  ;;  %2623 = vmatpush1.bf16.msra.mxu1 %v6399_v18  ;;  %v6438_v13 = vld [vmem:[%s7818_s20 + $0x1c0] ss:$16 sps:$4 sm:$0xff]   ;;  %v6446_v16 = vld [vmem:[%s7818_s20 + $0x1e4] ss:$16 sps:$4 sm:$0xff]  }
 0x6c6   : > { %2310 = vadd.xlane.f32.xlu1 %v2309_v39  ;;  %3102 = vmatprep.subr.bf16.mxu0 %v6398_v17  ;;  %v6441_v17 = vld [vmem:[%s7812_s12 + $0xd0] ss:$8 sps:$4 sm:$0xff]  }
 0x6c7   : > { %2624 = vmatprep.subr.bf16.mxu1 %v6407_v20  ;;  %v6444_v18 = vld [vmem:[%s7818_s20 + $0x1e0] ss:$16 sps:$4 sm:$0xff]   ;;  %v8244_v20 = vld [vmem:[#allocation5 + $0x4] ss:$8 sps:$4 sm:$0xff]  }
 0x6c8   : > { %3120 = vmatprep.mubr.bf16.mxu0 %v8244_v20 }
 0x6c9   : > { %3103 = vmatpush1.bf16.msra.mxu0 %v6396_v21  ;;  %2625 = vmatpush1.bf16.msra.mxu1 %v6405_v53  ;;  %v8246_v21 = vld [vmem:[#allocation5] ss:$8 sps:$4 sm:$0xff]   ;;  %v6452_v53 = vld [vmem:[%s7812_s12 + $0xe4] ss:$8 sps:$4 sm:$0xff]  }
 0x6ca   : > { %3104 = vmatprep.subr.bf16.mxu0 %v6404_v23  ;;  %2626 = vmatprep.subr.bf16.mxu1 %v6413_v14  ;;  %v6450_v23 = vld [vmem:[%s7812_s12 + $0xe0] ss:$8 sps:$4 sm:$0xff]   ;;  %v6455_v14 = vld [vmem:[%s7812_s12 + $0xf4] ss:$8 sps:$4 sm:$0xff]  }
 0x6cd   : > { %3105 = vmatpush1.bf16.msra.mxu0 %v6402_v28  ;;  %2627 = vmatpush1.bf16.msra.mxu1 %v6411_v3  ;;  %v6453_v28 = vld [vmem:[%s7812_s12 + $0xf0] ss:$8 sps:$4 sm:$0xff]  }
 0x6ce   : > { %3106 = vmatprep.subr.bf16.mxu0 %v6410_v32  ;;  %2628 = vmatprep.subr.bf16.mxu1 %v6419_v6  ;;  %v8255_v32 = vld [vmem:[#allocation5 + $0x14] ss:$8 sps:$4 sm:$0xff]   ;;  %v8257_v3 = vld [vmem:[#allocation5 + $0x10] ss:$8 sps:$4 sm:$0xff]  }
 0x6cf   : > { %v6461_v6 = vld [vmem:[%s7818_s20 + $0xc] ss:$16 sps:$4 sm:$0xff]  }
 0x6d1   : > { %3107 = vmatpush1.bf16.msra.mxu0 %v6408_v9  ;;  %2629 = vmatpush1.bf16.msra.mxu1 %v6417_v29 }
 0x6d2   : > { %3108 = vmatprep.subr.bf16.mxu0 %v6416_v22  ;;  %2630 = vmatprep.subr.bf16.mxu1 %v6425_v58 }
 0x6d5   : > { %3109 = vmatpush1.bf16.msra.mxu0 %v6414_v60  ;;  %2631 = vmatpush1.bf16.msra.mxu1 %v6423_v61 }
 0x6d6   : > { %3110 = vmatprep.subr.bf16.mxu0 %v6422_v0  ;;  %2632 = vmatprep.subr.bf16.mxu1 %v6431_v63 }
 0x6d9   : > { %3111 = vmatpush1.bf16.msra.mxu0 %v6420_v31  ;;  %2633 = vmatpush1.bf16.msra.mxu1 %v6429_v56 }
 0x6da   : > { %3112 = vmatprep.subr.bf16.mxu0 %v6428_v59  ;;  %2634 = vmatprep.subr.bf16.mxu1 %v6437_v7 }
 0x6dd   : > { %3113 = vmatpush1.bf16.msra.mxu0 %v6426_v62  ;;  %2635 = vmatpush1.bf16.msra.mxu1 %v6435_v12 }
 0x6de   : > { %3114 = vmatprep.subr.bf16.mxu0 %v6434_v1  ;;  %2636 = vmatprep.subr.bf16.mxu1 %v6443_v15 }
 0x6e1   : > { %3115 = vmatpush1.bf16.msra.mxu0 %v6432_v5  ;;  %2637 = vmatpush1.bf16.msra.mxu1 %v6441_v17  ;;  %v6459_v5 = vld [vmem:[%s7818_s20 + $0x8] ss:$16 sps:$4 sm:$0xff]  }
 0x6e2   : > { %3116 = vmatprep.subr.bf16.mxu0 %v6440_v11  ;;  %2638 = vmatprep.subr.bf16.mxu1 %v6452_v53  ;;  %v6464_v11 = vld [vmem:[%s7818_s20 + $0x2c] ss:$16 sps:$4 sm:$0xff]  }
 0x6e5   : > { %3117 = vmatpush1.bf16.msra.mxu0 %v6438_v13  ;;  %2639 = vmatpush1.bf16.msra.mxu1 %v6450_v23 }
 0x6e6   : > { %3118 = vmatprep.subr.bf16.mxu0 %v6446_v16  ;;  %2640 = vmatprep.subr.bf16.mxu1 %v6455_v14 }
 0x6e9   : > { %3119 = vmatpush1.bf16.msra.mxu0 %v6444_v18  ;;  %2641 = vmatpush1.bf16.msra.mxu1 %v6453_v28 }
 0x6ea   : > { %5957 = vmatprep.subr.bf16.mxu0 %v7286_v54  ;;  %3141 = vmatprep.subr.bf16.mxu1 %v6461_v6  ;;  %v6465_v6 = vld [vmem:[%s7818_s20 + $0x48] ss:$16 sps:$4 sm:$0xff]  }
 0x6ec   : > { %3121 = vmatmul.mubr.bf16.vlgmr.msra.gmra.mrb[28].mxu0 %v8246_v21 }
 0x6ed   : > { %3130 = vmatprep.mubr.bf16.mxu0 %v8255_v32 }
 0x6f4   : > { %3131 = vmatmul.mubr.bf16.gmra.mrb[32].mxu0 %v8257_v3 }
 0x6f5   : > { %5959 = vmatprep.mubr.msk.bf16.mxu0 %vm7287_vm0, %v7286_v54 }
 0x749   : > { %v2302_v33 = vpop.xlane.xlu0 %2301 }
 0x74a   : > { %v2313_v34 = vmul.f32 0.00390625, %v2302_v33 }
 0x74b   : > { %v2305_v8 = vpop.xlane.xlu1 %2304 }
 0x74c   : > { %v8189_v10 = vsub.f32 %v8120_v19, %v2313_v34  ;;  %v8192_v37 = vsub.f32 %v8122_v26, %v2313_v34  ;;  %v2314_v38 = vmul.f32 0.00390625, %v2305_v8 }
 0x74e   : > { %v8195_v39 = vsub.f32 %v8124_v27, %v2314_v38  ;;  %v8198_v40 = vsub.f32 %v8126_v30, %v2314_v38  ;;  %v2325_v41 = vmul.f32 %v8189_v10, %v8189_v10  ;;  %v2326_v42 = vmul.f32 %v8192_v37, %v8192_v37 }
 0x750   : > { %v2333_v43 = vadd.f32 %v2326_v42, %v2325_v41  ;;  %v2327_v19 = vmul.f32 %v8195_v39, %v8195_v39  ;;  %v2328_v26 = vmul.f32 %v8198_v40, %v8198_v40  ;;  %v779_v42 = vld [vmem:[%s7834_s29 + $0x16] sm:$0x3] }
 0x751   : > { %v2308_v44 = vpop.xlane.xlu0 %2307 }
 0x752   : > { %v2315_v45 = vmul.f32 0.00390625, %v2308_v44  ;;  %2334 = vadd.xlane.f32.xlu0 %v2333_v43  ;;  %v2336_v27 = vadd.f32 %v2328_v26, %v2327_v19  ;;  %v780_v19 = vld [vmem:[%s7834_s29 + $0x18] sm:$0x3]  ;;  %v2369_v26 = vrot.slane %v779_v42, %v7962_v51  ;;  %v2373_v44 = vrot.slane %v779_v42, %v7968_v57  ;;  %v6488_v42 = vld [vmem:[%s7818_s20 + $0x12c] ss:$16 sps:$4 sm:$0xff]  }
 0x753   : > { %v2311_v30 = vpop.xlane.xlu1 %2310 }
 0x754   : > { %v8209_v46 = vsub.f32 %v8132_v2, %v2315_v45  ;;  %v8212_v47 = vsub.f32 %v8134_v4, %v2315_v45  ;;  %v2316_v48 = vmul.f32 0.00390625, %v2311_v30  ;;  %2337 = vadd.xlane.f32.xlu1 %v2336_v27 }
 0x756   : > { %v8215_v49 = vsub.f32 %v8136_v36, %v2316_v48  ;;  %v8218_v50 = vsub.f32 %v8138_v35, %v2316_v48  ;;  %v2329_v52 = vmul.f32 %v8209_v46, %v8209_v46  ;;  %v2330_v2 = vmul.f32 %v8212_v47, %v8212_v47 }
 0x758   : > { %v2339_v55 = vadd.f32 %v2330_v2, %v2329_v52  ;;  %v2331_v4 = vmul.f32 %v8215_v49, %v8215_v49  ;;  %v2332_v36 = vmul.f32 %v8218_v50, %v8218_v50  ;;  %v2388_v52 = vrot.slane %v780_v19, %v7962_v51 }
 0x759   : > { %v2392_v2 = vrot.slane %v780_v19, %v7968_v57  ;;  %v6491_v19 = vld [vmem:[%s7818_s20 + $0x14c] ss:$16 sps:$4 sm:$0xff]  }
 0x75a   : > { %2340 = vadd.xlane.f32.xlu0 %v2339_v55  ;;  %v2342_v35 = vadd.f32 %v2332_v36, %v2331_v4 }
 0x75c   : > { %2343 = vadd.xlane.f32.xlu1 %v2342_v35 }
 0x7df   : > { %v2335_v9 = vpop.xlane.xlu0 %2334 }
 0x7e0   : > { %v2345_v22 = vmul.f32 0.00390625, %v2335_v9  ;;  %v6470_v9 = vld [vmem:[%s7818_s20 + $0x6c] ss:$16 sps:$4 sm:$0xff]  }
 0x7e1   : > { %v2338_v29 = vpop.xlane.xlu1 %2337 }
 0x7e2   : > { %v2349_v60 = vadd.f32 1e-05, %v2345_v22  ;;  %v2346_v0 = vmul.f32 0.00390625, %v2338_v29  ;;  %v6468_v22 = vld [vmem:[%s7818_s20 + $0x68] ss:$16 sps:$4 sm:$0xff]  }
 0x7e3   : > { %v6473_v29 = vld [vmem:[%s7818_s20 + $0x8c] ss:$16 sps:$4 sm:$0xff]  }
 0x7e4   : > { %6779 = vrsqrt.f32 %v2349_v60  ;;  %v2350_v31 = vadd.f32 1e-05, %v2346_v0  ;;  %v6471_v60 = vld [vmem:[%s7818_s20 + $0x88] ss:$16 sps:$4 sm:$0xff]   ;;  %v6476_v0 = vld [vmem:[%s7818_s20 + $0xac] ss:$16 sps:$4 sm:$0xff]  }
 0x7e6   : > { %6781 = vrsqrt.f32 %v2350_v31  ;;  %v6474_v31 = vld [vmem:[%s7818_s20 + $0xa8] ss:$16 sps:$4 sm:$0xff]  }
 0x7e7   : > { %v2341_v33 = vpop.xlane.xlu0 %2340 }
 0x7e8   : > { %v2347_v34 = vmul.f32 0.00390625, %v2341_v33  ;;  %v6479_v33 = vld [vmem:[%s7818_s20 + $0xcc] ss:$16 sps:$4 sm:$0xff]  }
 0x7e9   : > { %v2344_v8 = vpop.xlane.xlu1 %2343 }
 0x7ea   : > { %v2351_v38 = vadd.f32 1e-05, %v2347_v34  ;;  %v2348_v41 = vmul.f32 0.00390625, %v2344_v8  ;;  %v6477_v34 = vld [vmem:[%s7818_s20 + $0xc8] ss:$16 sps:$4 sm:$0xff]  }
 0x7eb   : > { %v6480_v8 = vld [vmem:[%s7818_s20 + $0xe8] ss:$16 sps:$4 sm:$0xff]  }
 0x7ec   : > { %6783 = vrsqrt.f32 %v2351_v38  ;;  %v2352_v43 = vadd.f32 1e-05, %v2348_v41  ;;  %v6485_v38 = vld [vmem:[%s7818_s20 + $0x10c] ss:$16 sps:$4 sm:$0xff]   ;;  %v6483_v41 = vld [vmem:[%s7818_s20 + $0x108] ss:$16 sps:$4 sm:$0xff]  }
 0x7ee   : > { %v6780_v45 = vpop.eup %6779  ;;  %6785 = vrsqrt.f32 %v2352_v43  ;;  %v6486_v43 = vld [vmem:[%s7818_s20 + $0x128] ss:$16 sps:$4 sm:$0xff]  }
 0x7ef   : > { %v2357_v27 = vmul.f32 %v6780_v45, %v8189_v10  ;;  %v2358_v30 = vmul.f32 %v6780_v45, %v8192_v37  ;;  %v6492_v45 = vld [vmem:[%s7818_s20 + $0x168] ss:$16 sps:$4 sm:$0xff]  }
 0x7f0   : > { %v6782_v48 = vpop.eup %6781 }
 0x7f1   : > { %v2359_v55 = vmul.f32 %v6782_v48, %v8195_v39  ;;  %v2360_v4 = vmul.f32 %v6782_v48, %v8198_v40  ;;  %v2377_v36 = vmul.f32 %v2373_v44, %v2358_v30  ;;  %v2376_v35 = vmul.f32 %v2369_v26, %v2357_v27  ;;  %v6497_v27 = vld [vmem:[%s7818_s20 + $0x18c] ss:$16 sps:$4 sm:$0xff]   ;;  %v6495_v30 = vld [vmem:[%s7818_s20 + $0x188] ss:$16 sps:$4 sm:$0xff]  }
 0x7f2   : > { %v6500_v48 = vld [vmem:[%s7818_s20 + $0x1ac] ss:$16 sps:$4 sm:$0xff]  }
 0x7f3   : > { %v2379_v58 = vmul.f32 %v2373_v44, %v2360_v4  ;;  %v2378_v59 = vmul.f32 %v2369_v26, %v2359_v55  ;;  %v8274_v61 = vadd.f32 %v2392_v2, %v2377_v36  ;;  %v8278_v37 = vadd.f32 %v2388_v52, %v2376_v35  ;;  %v6501_v55 = vld [vmem:[%s7818_s20 + $0x1c8] ss:$16 sps:$4 sm:$0xff]   ;;  %v6506_v4 = vld [vmem:[%s7818_s20 + $0x1ec] ss:$16 sps:$4 sm:$0xff]  }
 0x7f4   : > { %v6504_v36 = vld [vmem:[%s7818_s20 + $0x1e8] ss:$16 sps:$4 sm:$0xff]  }
 0x7f5   : > { %v8276_v10 = vadd.f32 %v2392_v2, %v2379_v58  ;;  %v8280_v62 = vadd.f32 %v2388_v52, %v2378_v59  ;;  %v8338_v35 = vld [vmem:[%s7834_s29 + $0xa] sm:$0xf] }
 0x7f6   : > { %v6784_v63 = vpop.eup %6783  ;;  %v2731_v58 = vrot.slane %v8338_v35, %v7962_v51  ;;  %v2735_v59 = vrot.slane %v8338_v35, %v7968_v57 }
 0x7f7   : > { %v2404_v1 = vpack.c.bf16 %v8276_v10, %v8274_v61  ;;  %v2403_v39 = vpack.c.bf16 %v8280_v62, %v8278_v37  ;;  %v2362_v40 = vmul.f32 %v6784_v63, %v8212_v47  ;;  %v2361_v56 = vmul.f32 %v6784_v63, %v8209_v46  ;;  %v6462_v47 = vld [vmem:[%s7818_s20 + $0x28] ss:$16 sps:$4 sm:$0xff]   ;;  %v6467_v46 = vld [vmem:[%s7818_s20 + $0x4c] ss:$16 sps:$4 sm:$0xff]   ;;  %v3122_v63 = vpop.f32.mrb[28].mxu0 }
 0x7f8   : > { %v6786_v7 = vpop.eup %6785 }
 0x7f9   : > { %2642 = vmatprep.mubr.bf16.mxu1 %v2404_v1  ;;  %v2364_v12 = vmul.f32 %v6786_v7, %v8218_v50  ;;  %v2381_v13 = vmul.f32 %v2373_v44, %v2362_v40  ;;  %v2363_v15 = vmul.f32 %v6786_v7, %v8215_v49  ;;  %v2380_v16 = vmul.f32 %v2369_v26, %v2361_v56 }
 0x7fa   : > { %2643 = vmatmul.mubr.bf16.vlgmr.msra.gmra.mrb[36].mxu1 %v2403_v39  ;;  %v3123_v1 = vadd.f32 %v3122_v63, %v2731_v58  ;;  %v3124_v39 = vpop.f32.mrb[29].mxu0 }
 0x7fb   : > { %v2383_v17 = vmul.f32 %v2373_v44, %v2364_v12  ;;  %v2382_v18 = vmul.f32 %v2369_v26, %v2363_v15  ;;  %3142 = vmatpush1.bf16.msra.mxu1 %v6459_v5  ;;  %v8294_v23 = vadd.f32 %v2392_v2, %v2381_v13  ;;  %v8298_v50 = vadd.f32 %v2388_v52, %v2380_v16  ;;  %v6489_v26 = vld [vmem:[%s7818_s20 + $0x148] ss:$16 sps:$4 sm:$0xff]   ;;  %v6494_v44 = vld [vmem:[%s7818_s20 + $0x16c] ss:$16 sps:$4 sm:$0xff]  }
 0x7fc   : > { %3143 = vmatprep.subr.bf16.mxu1 %v6464_v11  ;;  %v3125_v40 = vadd.f32 %v3124_v39, %v2735_v59  ;;  %v2743_v39 = vrot.slane %v8338_v35, %v7978_v25 }
 0x7fd   : > { %v8296_v53 = vadd.f32 %v2392_v2, %v2383_v17  ;;  %v8300_v49 = vadd.f32 %v2388_v52, %v2382_v18  ;;  %v6498_v52 = vld [vmem:[%s7818_s20 + $0x1a8] ss:$16 sps:$4 sm:$0xff]   ;;  %v6503_v2 = vld [vmem:[%s7818_s20 + $0x1cc] ss:$16 sps:$4 sm:$0xff]  }
 0x7ff   : > { %v2406_v14 = vpack.c.bf16 %v8296_v53, %v8294_v23  ;;  %v2405_v28 = vpack.c.bf16 %v8300_v49, %v8298_v50  ;;  %3144 = vmatpush1.bf16.msra.mxu1 %v6462_v47 }
 0x800   : > { %3145 = vmatprep.subr.bf16.mxu1 %v6467_v46 }
 0x801   : > { %2652 = vmatprep.mubr.bf16.mxu1 %v2406_v14 }
 0x802   : > { %2653 = vmatmul.mubr.bf16.gmra.mrb[40].mxu1 %v2405_v28  ;;  %v774_v28 = vld [vmem:[%s7834_s29 + $0x8] sm:$0x3] }
 0x803   : > { %3146 = vmatpush1.bf16.msra.mxu1 %v6465_v6  ;;  %3173 = vmatprep.mubr.bf16.mxu1 %v8244_v20  ;;  %v6482_v20 = vld [vmem:[%s7818_s20 + $0xec] ss:$16 sps:$4 sm:$0xff]   ;;  %v2443_v6 = vrot.slane %v774_v28, %v7962_v51 }
 0x804   : > { %3147 = vmatprep.subr.bf16.mxu1 %v6470_v9  ;;  %v2447_v9 = vrot.slane %v774_v28, %v7968_v57 }
 0x807   : > { %3148 = vmatpush1.bf16.msra.mxu1 %v6468_v22 }
 0x808   : > { %3149 = vmatprep.subr.bf16.mxu1 %v6473_v29 }
 0x80b   : > { %3150 = vmatpush1.bf16.msra.mxu1 %v6471_v60 }
 0x80c   : > { %3151 = vmatprep.subr.bf16.mxu1 %v6476_v0 }
 0x80f   : > { %3152 = vmatpush1.bf16.msra.mxu1 %v6474_v31 }
 0x810   : > { %3153 = vmatprep.subr.bf16.mxu1 %v6479_v33 }
 0x813   : > { %3154 = vmatpush1.bf16.msra.mxu1 %v6477_v34 }
 0x814   : > { %3155 = vmatprep.subr.bf16.mxu1 %v6482_v20 }
 0x817   : > { %3156 = vmatpush1.bf16.msra.mxu1 %v6480_v8 }
 0x818   : > { %3157 = vmatprep.subr.bf16.mxu1 %v6485_v38 }
 0x81b   : > { %3158 = vmatpush1.bf16.msra.mxu1 %v6483_v41 }
 0x81c   : > { %3159 = vmatprep.subr.bf16.mxu1 %v6488_v42 }
 0x81f   : > { %3160 = vmatpush1.bf16.msra.mxu1 %v6486_v43 }
 0x820   : > { %3161 = vmatprep.subr.bf16.mxu1 %v6491_v19 }
 0x823   : > { %3162 = vmatpush1.bf16.msra.mxu1 %v6489_v26 }
 0x824   : > { %3163 = vmatprep.subr.bf16.mxu1 %v6494_v44 }
 0x827   : > { %3164 = vmatpush1.bf16.msra.mxu1 %v6492_v45 }
 0x828   : > { %3165 = vmatprep.subr.bf16.mxu1 %v6497_v27 }
 0x82b   : > { %3166 = vmatpush1.bf16.msra.mxu1 %v6495_v30 }
 0x82c   : > { %3167 = vmatprep.subr.bf16.mxu1 %v6500_v48 }
 0x82f   : > { %3168 = vmatpush1.bf16.msra.mxu1 %v6498_v52 }
 0x830   : > { %3169 = vmatprep.subr.bf16.mxu1 %v6503_v2 }
 0x833   : > { %3170 = vmatpush1.bf16.msra.mxu1 %v6501_v55 }
 0x834   : > { %3171 = vmatprep.subr.bf16.mxu1 %v6506_v4 }
 0x837   : > { %3172 = vmatpush1.bf16.msra.mxu1 %v6504_v36 }
 0x838   : > { %5969 = vmatprep.subr.bf16.mxu1 %v7286_v54 }
 0x83a   : > { %3174 = vmatmul.mubr.bf16.vlgmr.msra.gmra.mrb[44].mxu1 %v8246_v21  ;;  %v3126_v21 = vpop.f32.mrb[30].mxu0 }
 0x83b   : > { %3183 = vmatprep.mubr.bf16.mxu1 %v8255_v32  ;;  %v3127_v56 = vadd.f32 %v3126_v21, %v2731_v58  ;;  %v3128_v32 = vpop.f32.mrb[31].mxu0 }
 0x83c   : > { %v3129_v5 = vadd.f32 %v3128_v32, %v2735_v59  ;;  %v3132_v11 = vpop.f32.mrb[32].mxu0 }
 0x83d   : > { %v3206_v7 = vpack.c.bf16 %v3127_v56, %v3123_v1  ;;  %v3134_v12 = vpop.f32.mrb[33].mxu0  ;;  %v3133_v15 = vadd.f32 %v3132_v11, %v2731_v58  ;;  %v2739_v1 = vrot.slane %v8338_v35, %v7975_v24 }
 0x83e   : > { %v3136_v13 = vpop.f32.mrb[34].mxu0  ;;  %v3135_v17 = vadd.f32 %v3134_v12, %v2735_v59 }
 0x83f   : > { %5958 = vmatpush3.bf16.xpose.msra.mxu0 %v3206_v7  ;;  %v3137_v16 = vadd.f32 %v3136_v13, %v2731_v58  ;;  %v3138_v47 = vpop.f32.mrb[35].mxu0 }
 0x840   : > { %5963 = vmatprep.subr.bf16.mxu0 %v7286_v54  ;;  %v3139_v46 = vadd.f32 %v3138_v47, %v2735_v59 }
 0x841   : > { %v3208_v18 = vpack.c.bf16 %v3137_v16, %v3133_v15 }
 0x842   : > { %3184 = vmatmul.mubr.bf16.gmra.mrb[48].mxu1 %v8257_v3  ;;  %v3207_v3 = vpack.c.bf16 %v3129_v5, %v3125_v40  ;;  %v3209_v14 = vpack.c.bf16 %v3139_v46, %v3135_v17 }
 0x843   : > { %5971 = vmatprep.mubr.msk.bf16.mxu1 %vm7287_vm0, %v7286_v54 }
 0x844   : > { %5970 = vmatpush3.bf16.xpose.msra.mxu1 %v3207_v3 }
 0x845   : > { %5981 = vmatprep.subr.bf16.mxu1 %v7286_v54 }
 0x8cd   : > { %v2644_v22 = vpop.f32.mrb[36].mxu1 }
 0x8ce   : > { %v2645_v29 = vadd.f32 %v2644_v22, %v2443_v6  ;;  %v2646_v60 = vpop.f32.mrb[37].mxu1 }
 0x8cf   : > { %v2647_v0 = vadd.f32 %v2646_v60, %v2447_v9  ;;  %v2648_v31 = vpop.f32.mrb[38].mxu1 }
 0x8d0   : > { %v2649_v33 = vadd.f32 %v2648_v31, %v2443_v6  ;;  %v2650_v34 = vpop.f32.mrb[39].mxu1  ;;  %v3194_v8 = vmul.f32 0.088388346, %v2645_v29 }
 0x8d1   : > { %v2651_v20 = vadd.f32 %v2650_v34, %v2447_v9  ;;  %v3195_v41 = vmul.f32 0.088388346, %v2647_v0 }
 0x8d2   : > { %v3196_v38 = vmul.f32 0.088388346, %v2649_v33 }
 0x8d3   : > { %v3197_v42 = vmul.f32 0.088388346, %v2651_v20 }
 0x8d4   : > { %v3202_v43 = vpack.c.bf16 %v3196_v38, %v3194_v8 }
 0x8d5   : > { %v3203_v19 = vpack.c.bf16 %v3197_v42, %v3195_v41  ;;  %v2654_v26 = vpop.f32.mrb[40].mxu1 }
 0x8d6   : > { %v2655_v44 = vadd.f32 %v2654_v26, %v2443_v6  ;;  %v2656_v45 = vpop.f32.mrb[41].mxu1  ;;  %5960 = vmatmul.mubr.bf16.vlgmr.msra.gmra.mrb[36].mxu0 %v3202_v43 }
 0x8d7   : > { %v2657_v27 = vadd.f32 %v2656_v45, %v2447_v9  ;;  %v2658_v30 = vpop.f32.mrb[42].mxu1  ;;  %5964 = vmatpush3.bf16.xpose.msra.mxu0 %v3208_v18  ;;  %5972 = vmatmul.mubr.bf16.vlgmr.msra.gmra.mrb[52].mxu1 %v3203_v19 }
 0x8d8   : > { %v2659_v48 = vadd.f32 %v2658_v30, %v2443_v6  ;;  %v2660_v52 = vpop.f32.mrb[43].mxu1  ;;  %5965 = vmatprep.mubr.msk.bf16.mxu0 %vm7287_vm0, %v7286_v54  ;;  %5975 = vmatprep.subr.bf16.mxu0 %v7286_v54  ;;  %v3198_v55 = vmul.f32 0.088388346, %v2655_v44 }
 0x8d9   : > { %v2661_v2 = vadd.f32 %v2660_v52, %v2447_v9  ;;  %5983 = vmatprep.mubr.msk.bf16.mxu1 %vm7287_vm0, %v7286_v54  ;;  %v3199_v36 = vmul.f32 0.088388346, %v2657_v27 }
 0x8da   : > { %v3200_v4 = vmul.f32 0.088388346, %v2659_v48 }
 0x8db   : > { %v3201_v58 = vmul.f32 0.088388346, %v2661_v2 }
 0x8dc   : > { %v3204_v59 = vpack.c.bf16 %v3200_v4, %v3198_v55 }
 0x8dd   : > { %v3205_v63 = vpack.c.bf16 %v3201_v58, %v3199_v36 }
 0x8de   : > { %5966 = vmatmul.mubr.bf16.vlgmr.msra.gmra.mrb[40].mxu0 %v3204_v59 }
 0x8df   : > { %5976 = vmatpush3.bf16.xpose.msra.mxu0 %v3209_v14  ;;  %5977 = vmatprep.mubr.msk.bf16.mxu0 %vm7287_vm0, %v7286_v54 }
 0x8e0   : > { %5987 = vmatprep.subr.bf16.mxu0 %v7286_v54 }
 0x8e6   : > { %5978 = vmatmul.mubr.bf16.vlgmr.msra.gmra.mrb[44].mxu0 %v3205_v63 }
 0x8e7   : > { %5989 = vmatprep.mubr.msk.bf16.mxu0 %vm7287_vm0, %v7286_v54 }
 0x90d   : > { %v3175_v40 = vpop.f32.mrb[44].mxu1 }
 0x90e   : > { %v3176_v21 = vadd.f32 %v3175_v40, %v2739_v1  ;;  %v3177_v56 = vpop.f32.mrb[45].mxu1 }
 0x90f   : > { %v8366_v32 = vadd.f32 %v3177_v56, %v2743_v39  ;;  %v3179_v5 = vpop.f32.mrb[46].mxu1 }
 0x910   : > { %v3180_v7 = vadd.f32 %v3179_v5, %v2739_v1  ;;  %v3181_v3 = vpop.f32.mrb[47].mxu1 }
 0x911   : > { %v8368_v11 = vadd.f32 %v3181_v3, %v2743_v39 }
 0x912   : > { %v3210_v12 = vpack.c.bf16 %v3180_v7, %v3176_v21 }
 0x913   : > { %v3211_v13 = vpack.c.bf16 %v8368_v11, %v8366_v32  ;;  %v6510_v11 = vld [vmem:[%s7820_s7 + $0x10] ss:$8 sps:$4 sm:$0xff]  }
 0x914   : > { %5982 = vmatpush3.bf16.msra.mxu1 %v3210_v12 }
 0x915   : > { %v3185_v15 = vpop.f32.mrb[48].mxu1  ;;  %5993 = vmatprep.subr.bf16.mxu1 %v7286_v54 }
 0x916   : > { %v3186_v16 = vadd.f32 %v3185_v15, %v2739_v1  ;;  %v3187_v35 = vpop.f32.mrb[49].mxu1 }
 0x917   : > { %v8373_v17 = vadd.f32 %v3187_v35, %v2743_v39  ;;  %v3189_v18 = vpop.f32.mrb[50].mxu1 }
 0x918   : > { %v3190_v47 = vadd.f32 %v3189_v18, %v2739_v1  ;;  %v3191_v46 = vpop.f32.mrb[51].mxu1 }
 0x919   : > { %v8375_v14 = vadd.f32 %v3191_v46, %v2743_v39 }
 0x91a   : > { %v3212_v28 = vpack.c.bf16 %v3190_v47, %v3186_v16 }
 0x91b   : > { %v3213_v6 = vpack.c.bf16 %v8375_v14, %v8373_v17  ;;  %v6513_v17 = vld [vmem:[%s7820_s7 + $0x20] ss:$8 sps:$4 sm:$0xff]   ;;  %v6518_v14 = vld [vmem:[%s7820_s7 + $0x34] ss:$8 sps:$4 sm:$0xff]  }
 0x91c   : > { %5988 = vmatpush3.bf16.msra.mxu0 %v3212_v28 }
 0x91d   : > { %5999 = vmatprep.subr.bf16.mxu0 %v7286_v54 }
 0x9a9   : > { %v3248_v9 = vpop.f32.mrb[36].mxu0 }
 0x9aa   : > { %v5961_v22 = vpop.f32.mrb[37].mxu0  ;;  %v3330_v29 = vpop.f32.mrb[52].mxu1  ;;  %v3378_v60 = vsel %vm1763_vm1, %v3248_v9, -inf }
 0x9ab   : > { %3379 = vmax.xlane.f32.xlu0 %v3378_v60  ;;  %v3251_v0 = vpop.f32.mrb[38].mxu0  ;;  %v5973_v31 = vpop.f32.mrb[53].mxu1  ;;  %v3390_v38 = vsel %vm1763_vm1, %v3330_v29, -inf }
 0x9ac   : > { %v5962_v33 = vpop.f32.mrb[39].mxu0  ;;  %v3333_v34 = vpop.f32.mrb[54].mxu1  ;;  %v3381_v20 = vsel %vm1763_vm1, %v3251_v0, -inf }
 0x9ad   : > { %3382 = vmax.xlane.f32.xlu1 %v3381_v20  ;;  %v5974_v8 = vpop.f32.mrb[55].mxu1  ;;  %v3393_v41 = vsel %vm1763_vm1, %v3333_v34, -inf }
 0x9af   : > { %3391 = vmax.xlane.f32.xlu0 %v3390_v38 }
 0x9b1   : > { %3394 = vmax.xlane.f32.xlu1 %v3393_v41  ;;  %v3289_v42 = vpop.f32.mrb[40].mxu0 }
 0x9b2   : > { %v5967_v43 = vpop.f32.mrb[41].mxu0  ;;  %v3384_v19 = vsel %vm1763_vm1, %v3289_v42, -inf }
 0x9b3   : > { %3385 = vmax.xlane.f32.xlu0 %v3384_v19  ;;  %v3292_v26 = vpop.f32.mrb[42].mxu0 }
 0x9b4   : > { %v5968_v44 = vpop.f32.mrb[43].mxu0  ;;  %v3387_v45 = vsel %vm1763_vm1, %v3292_v26, -inf }
 0x9b5   : > { %3388 = vmax.xlane.f32.xlu1 %v3387_v45 }
 0x9b9   : > { %v3371_v27 = vpop.f32.mrb[44].mxu0 }
 0x9ba   : > { %v5979_v30 = vpop.f32.mrb[45].mxu0  ;;  %v3396_v48 = vsel %vm1763_vm1, %v3371_v27, -inf }
 0x9bb   : > { %3397 = vmax.xlane.f32.xlu0 %v3396_v48  ;;  %v3374_v52 = vpop.f32.mrb[46].mxu0 }
 0x9bc   : > { %v5980_v2 = vpop.f32.mrb[47].mxu0  ;;  %v3399_v55 = vsel %vm1763_vm1, %v3374_v52, -inf }
 0x9bd   : > { %3400 = vmax.xlane.f32.xlu1 %v3399_v55 }
 0xa38   : > { %v3380_v4 = vpop.xlane.xlu0 %3379 }
 0xa39   : > { %v3402_v36 = vsub.f32 %v3248_v9, %v3380_v4 }
 0xa3a   : > { %v3383_v58 = vpop.xlane.xlu1 %3382 }
 0xa3b   : > { %v3410_v59 = vmul.f32 1.442695, %v3402_v36  ;;  %v3403_v63 = vsub.f32 %v3251_v0, %v3383_v58 }
 0xa3c   : > { %v3392_v1 = vpop.xlane.xlu0 %3391 }
 0xa3d   : > { %6787 = vpow2.f32 %v3410_v59  ;;  %v3412_v39 = vmul.f32 1.442695, %v3403_v63  ;;  %v3406_v40 = vsub.f32 %v3330_v29, %v3392_v1 }
 0xa3e   : > { %v3395_v21 = vpop.xlane.xlu1 %3394 }
 0xa3f   : > { %6789 = vpow2.f32 %v3412_v39  ;;  %v3418_v56 = vmul.f32 1.442695, %v3406_v40  ;;  %v3407_v5 = vsub.f32 %v3333_v34, %v3395_v21  ;;  %v6509_v40 = vld [vmem:[%s7820_s7 + $0x4] ss:$8 sps:$4 sm:$0xff]  }
 0xa40   : > { %v3386_v7 = vpop.xlane.xlu0 %3385 }
 0xa41   : > { %6791 = vpow2.f32 %v3418_v56  ;;  %v3420_v3 = vmul.f32 1.442695, %v3407_v5  ;;  %v3404_v12 = vsub.f32 %v3289_v42, %v3386_v7 }
 0xa42   : > { %v3389_v15 = vpop.xlane.xlu1 %3388 }
 0xa43   : > { %6793 = vpow2.f32 %v3420_v3  ;;  %v3414_v16 = vmul.f32 1.442695, %v3404_v12  ;;  %v3405_v35 = vsub.f32 %v3292_v26, %v3389_v15 }
 0xa45   : > { %6795 = vpow2.f32 %v3414_v16  ;;  %v3416_v18 = vmul.f32 1.442695, %v3405_v35 }
 0xa47   : > { %v6788_v47 = vpop.eup %6787  ;;  %6797 = vpow2.f32 %v3416_v18 }
 0xa48   : > { %v3398_v46 = vpop.xlane.xlu0 %3397  ;;  %v3426_v28 = vsel %vm1763_vm1, %v6788_v47, 0.0 }
 0xa49   : > { %v6790_v9 = vpop.eup %6789  ;;  %v3408_v22 = vsub.f32 %v3371_v27, %v3398_v46  ;;  %3427 = vadd.xlane.f32.xlu0 %v3426_v28  ;;  %v6507_v46 = vld [vmem:[%s7820_s7] ss:$8 sps:$4 sm:$0xff]   ;;  %v6512_v28 = vld [vmem:[%s7820_s7 + $0x14] ss:$8 sps:$4 sm:$0xff]  }
 0xa4a   : > { %v3401_v29 = vpop.xlane.xlu1 %3400  ;;  %v3429_v60 = vsel %vm1763_vm1, %v6790_v9, 0.0 }
 0xa4b   : > { %v6792_v0 = vpop.eup %6791  ;;  %v3422_v31 = vmul.f32 1.442695, %v3408_v22  ;;  %v3409_v33 = vsub.f32 %v3374_v52, %v3401_v29  ;;  %3430 = vadd.xlane.f32.xlu1 %v3429_v60 }
 0xa4c   : > { %v3438_v34 = vsel %vm1763_vm1, %v6792_v0, 0.0 }
 0xa4d   : > { %v6794_v20 = vpop.eup %6793  ;;  %6799 = vpow2.f32 %v3422_v31  ;;  %v3424_v8 = vmul.f32 1.442695, %v3409_v33  ;;  %3439 = vadd.xlane.f32.xlu0 %v3438_v34  ;;  %v6524_v31 = vld [vmem:[%s7820_s7 + $0x54] ss:$8 sps:$4 sm:$0xff]   ;;  %v6522_v33 = vld [vmem:[%s7820_s7 + $0x50] ss:$8 sps:$4 sm:$0xff]  }
 0xa4e   : > { %v3441_v38 = vsel %vm1763_vm1, %v6794_v20, 0.0  ;;  %v6527_v34 = vld [vmem:[%s7820_s7 + $0x64] ss:$8 sps:$4 sm:$0xff]  }
 0xa4f   : > { %v6796_v41 = vpop.eup %6795  ;;  %6801 = vpow2.f32 %v3424_v8  ;;  %3442 = vadd.xlane.f32.xlu1 %v3441_v38  ;;  %v6530_v8 = vld [vmem:[%s7820_s7 + $0x74] ss:$8 sps:$4 sm:$0xff]   ;;  %v6528_v38 = vld [vmem:[%s7820_s7 + $0x70] ss:$8 sps:$4 sm:$0xff]  }
 0xa50   : > { %v3432_v42 = vsel %vm1763_vm1, %v6796_v41, 0.0 }
 0xa51   : > { %v6798_v43 = vpop.eup %6797  ;;  %3433 = vadd.xlane.f32.xlu0 %v3432_v42  ;;  %v6531_v42 = vld [vmem:[%s7820_s7 + $0x80] ss:$8 sps:$4 sm:$0xff]  }
 0xa52   : > { %v3435_v19 = vsel %vm1763_vm1, %v6798_v43, 0.0 }
 0xa53   : > { %3436 = vadd.xlane.f32.xlu1 %v3435_v19  ;;  %v6534_v19 = vld [vmem:[%s7820_s7 + $0x90] ss:$8 sps:$4 sm:$0xff]  }
 0xa57   : > { %v6800_v26 = vpop.eup %6799 }
 0xa58   : > { %v3444_v44 = vsel %vm1763_vm1, %v6800_v26, 0.0 }
 0xa59   : > { %v6802_v45 = vpop.eup %6801  ;;  %3445 = vadd.xlane.f32.xlu0 %v3444_v44  ;;  %v6537_v44 = vld [vmem:[%s7820_s7 + $0xa0] ss:$8 sps:$4 sm:$0xff]  }
 0xa5a   : > { %v3447_v27 = vsel %vm1763_vm1, %v6802_v45, 0.0 }
 0xa5b   : > { %3448 = vadd.xlane.f32.xlu1 %v3447_v27  ;;  %v6540_v27 = vld [vmem:[%s7820_s7 + $0xb0] ss:$8 sps:$4 sm:$0xff]  }
 0xad6   : > { %v3428_v30 = vpop.xlane.xlu0 %3427 }
 0xad7   : > { %6803 = vrcp.f32 %v3428_v30  ;;  %v6545_v30 = vld [vmem:[%s7820_s7 + $0xc4] ss:$8 sps:$4 sm:$0xff]  }
 0xad8   : > { %v3431_v48 = vpop.xlane.xlu1 %3430 }
 0xad9   : > { %6805 = vrcp.f32 %v3431_v48  ;;  %v6543_v48 = vld [vmem:[%s7820_s7 + $0xc0] ss:$8 sps:$4 sm:$0xff]  }
 0xada   : > { %v3440_v52 = vpop.xlane.xlu0 %3439 }
 0xadc   : > { %v3443_v2 = vpop.xlane.xlu1 %3442 }
 0xadd   : > { %6807 = vrcp.f32 %v3443_v2  ;;  %v6546_v2 = vld [vmem:[%s7820_s7 + $0xd0] ss:$8 sps:$4 sm:$0xff]  }
 0xade   : > { %6809 = vrcp.f32 %v3440_v52  ;;  %v3434_v55 = vpop.xlane.xlu0 %3433  ;;  %v6548_v52 = vld [vmem:[%s7820_s7 + $0xd4] ss:$8 sps:$4 sm:$0xff]  }
 0xadf   : > { %6811 = vrcp.f32 %v3434_v55  ;;  %v6551_v55 = vld [vmem:[%s7820_s7 + $0xe4] ss:$8 sps:$4 sm:$0xff]  }
 0xae0   : > { %v3437_v4 = vpop.xlane.xlu1 %3436 }
 0xae1   : > { %v6804_v36 = vpop.eup %6803  ;;  %6813 = vrcp.f32 %v3437_v4  ;;  %v6549_v4 = vld [vmem:[%s7820_s7 + $0xe0] ss:$8 sps:$4 sm:$0xff]  }
 0xae2   : > { %v3458_v59 = vmul.f32 %v6804_v36, %v6788_v47  ;;  %v6554_v36 = vld [vmem:[%s7820_s7 + $0xf4] ss:$8 sps:$4 sm:$0xff]  }
 0xae3   : > { %v6806_v58 = vpop.eup %6805 }
 0xae4   : > { %v3459_v63 = vmul.f32 %v6806_v58, %v6790_v9  ;;  %v6515_v9 = vld [vmem:[%s7820_s7 + $0x24] ss:$8 sps:$4 sm:$0xff]   ;;  %v6552_v58 = vld [vmem:[%s7820_s7 + $0xf0] ss:$8 sps:$4 sm:$0xff]  }
 0xae6   : > { %v3446_v1 = vpop.xlane.xlu0 %3445  ;;  %v3466_v39 = vpack.c.bf16 %v3459_v63, %v3458_v59 }
 0xae7   : > { %v6808_v21 = vpop.eup %6807  ;;  %6815 = vrcp.f32 %v3446_v1 }
 0xae8   : > { %v6810_v56 = vpop.eup %6809  ;;  %v3449_v5 = vpop.xlane.xlu1 %3448  ;;  %5984 = vmatmul.mubr.msk.bf16.vlgmr.msra.gmra.mrb[56].mxu1 %vm1763_vm1, %v3466_v39  ;;  %v3463_v3 = vmul.f32 %v6808_v21, %v6794_v20  ;;  %v6525_v20 = vld [vmem:[%s7820_s7 + $0x60] ss:$8 sps:$4 sm:$0xff]  }
 0xae9   : > { %v6812_v7 = vpop.eup %6811  ;;  %6817 = vrcp.f32 %v3449_v5  ;;  %5994 = vmatpush3.bf16.msra.mxu1 %v3211_v13  ;;  %5995 = vmatprep.mubr.msk.bf16.mxu1 %vm7287_vm0, %v7286_v54  ;;  %v3462_v15 = vmul.f32 %v6810_v56, %v6792_v0  ;;  %v6519_v0 = vld [vmem:[%s7820_s7 + $0x40] ss:$8 sps:$4 sm:$0xff]  }
 0xaea   : > { %3853 = vmatprep.subr.bf16.mxu1 %v6509_v40  ;;  %v3460_v16 = vmul.f32 %v6812_v7, %v6796_v41  ;;  %v6533_v41 = vld [vmem:[%s7820_s7 + $0x84] ss:$8 sps:$4 sm:$0xff]  }
 0xaeb   : > { %v6814_v12 = vpop.eup %6813  ;;  %v3468_v47 = vpack.c.bf16 %v3463_v3, %v3462_v15 }
 0xaec   : > { %v3461_v35 = vmul.f32 %v6814_v12, %v6798_v43  ;;  %v6536_v43 = vld [vmem:[%s7820_s7 + $0x94] ss:$8 sps:$4 sm:$0xff]  }
 0xaee   : > { %v3467_v18 = vpack.c.bf16 %v3461_v35, %v3460_v16 }
 0xaf0   : > { %5990 = vmatmul.mubr.msk.bf16.vlgmr.msra.gmra.mrb[48].mxu0 %vm1763_vm1, %v3467_v18  ;;  %5996 = vmatmul.mubr.msk.bf16.vlgmr.msra.gmra.mrb[60].mxu1 %vm1763_vm1, %v3468_v47 }
 0xaf1   : > { %v6816_v32 = vpop.eup %6815  ;;  %6000 = vmatpush3.bf16.msra.mxu0 %v3213_v6  ;;  %6001 = vmatprep.mubr.msk.bf16.mxu0 %vm7287_vm0, %v7286_v54  ;;  %v6516_v54 = vld [vmem:[%s7820_s7 + $0x30] ss:$8 sps:$4 sm:$0xff]   ;;  %v6521_v6 = vld [vmem:[%s7820_s7 + $0x44] ss:$8 sps:$4 sm:$0xff]  }
 0xaf2   : > { %3854 = vmatpush1.bf16.msra.mxu1 %v6507_v46  ;;  %v3464_v22 = vmul.f32 %v6816_v32, %v6800_v26  ;;  %v6539_v26 = vld [vmem:[%s7820_s7 + $0xa4] ss:$8 sps:$4 sm:$0xff]  }
 0xaf3   : > { %v6818_v13 = vpop.eup %6817  ;;  %3855 = vmatprep.subr.bf16.mxu1 %v6512_v28 }
 0xaf4   : > { %v3465_v29 = vmul.f32 %v6818_v13, %v6802_v45  ;;  %v6542_v45 = vld [vmem:[%s7820_s7 + $0xb4] ss:$8 sps:$4 sm:$0xff]   ;;  %v776_v13 = vld [vmem:[%s7834_s29 + $0xe] sm:$0x3] }
 0xaf6   : > { %v3469_v60 = vpack.c.bf16 %v3465_v29, %v3464_v22  ;;  %3856 = vmatpush1.bf16.msra.mxu1 %v6510_v11  ;;  %v3690_v22 = vrot.slane %v776_v13, %v7968_v57 }
 0xaf7   : > { %3857 = vmatprep.subr.bf16.mxu1 %v6515_v9  ;;  %v3686_v9 = vrot.slane %v776_v13, %v7962_v51  ;;  %v6602_v13 = vld [vmem:[%s7826_s11 + $0xec] ss:$16 sps:$4 sm:$0xff]  }
 0xaf8   : > { %6002 = vmatmul.mubr.msk.bf16.vlgmr.msra.gmra.mrb[52].mxu0 %vm1763_vm1, %v3469_v60 }
 0xafa   : > { %3858 = vmatpush1.bf16.msra.mxu1 %v6513_v17 }
 0xafb   : > { %3859 = vmatprep.subr.bf16.mxu1 %v6518_v14 }
 0xafe   : > { %3860 = vmatpush1.bf16.msra.mxu1 %v6516_v54 }
 0xaff   : > { %3861 = vmatprep.subr.bf16.mxu1 %v6521_v6 }
 0xb02   : > { %3862 = vmatpush1.bf16.msra.mxu1 %v6519_v0 }
 0xb03   : > { %3863 = vmatprep.subr.bf16.mxu1 %v6524_v31 }
 0xb06   : > { %3864 = vmatpush1.bf16.msra.mxu1 %v6522_v33 }
 0xb07   : > { %3865 = vmatprep.subr.bf16.mxu1 %v6527_v34 }
 0xb0a   : > { %3866 = vmatpush1.bf16.msra.mxu1 %v6525_v20 }
 0xb0b   : > { %3867 = vmatprep.subr.bf16.mxu1 %v6530_v8 }
 0xb0e   : > { %3868 = vmatpush1.bf16.msra.mxu1 %v6528_v38 }
 0xb0f   : > { %3869 = vmatprep.subr.bf16.mxu1 %v6533_v41 }
 0xb12   : > { %3870 = vmatpush1.bf16.msra.mxu1 %v6531_v42 }
 0xb13   : > { %3871 = vmatprep.subr.bf16.mxu1 %v6536_v43 }
 0xb16   : > { %3872 = vmatpush1.bf16.msra.mxu1 %v6534_v19 }
 0xb17   : > { %3873 = vmatprep.subr.bf16.mxu1 %v6539_v26 }
 0xb1a   : > { %3874 = vmatpush1.bf16.msra.mxu1 %v6537_v44 }
 0xb1b   : > { %3875 = vmatprep.subr.bf16.mxu1 %v6542_v45 }
 0xb1e   : > { %3876 = vmatpush1.bf16.msra.mxu1 %v6540_v27 }
 0xb1f   : > { %3877 = vmatprep.subr.bf16.mxu1 %v6545_v30 }
 0xb22   : > { %3878 = vmatpush1.bf16.msra.mxu1 %v6543_v48 }
 0xb23   : > { %3879 = vmatprep.subr.bf16.mxu1 %v6548_v52  ;;  %v6557_v52 = vld [vmem:[%s7826_s11 + $0x4] ss:$16 sps:$4 sm:$0xff]  }
 0xb24   : > { %4425 = vmatprep.subr.bf16.mxu0 %v6557_v52 }
 0xb26   : > { %3880 = vmatpush1.bf16.msra.mxu1 %v6546_v2  ;;  %v6558_v2 = vld [vmem:[%s7826_s11 + $0x8] ss:$16 sps:$4 sm:$0xff]  }
 0xb27   : > { %3881 = vmatprep.subr.bf16.mxu1 %v6551_v55  ;;  %v6563_v55 = vld [vmem:[%s7826_s11 + $0x24] ss:$16 sps:$4 sm:$0xff]  }
 0xb2a   : > { %3882 = vmatpush1.bf16.msra.mxu1 %v6549_v4  ;;  %v6561_v4 = vld [vmem:[%s7826_s11 + $0x20] ss:$16 sps:$4 sm:$0xff]  }
 0xb2b   : > { %3883 = vmatprep.subr.bf16.mxu1 %v6554_v36  ;;  %v6564_v36 = vld [vmem:[%s7826_s11 + $0x28] ss:$16 sps:$4 sm:$0xff]  }
 0xb2e   : > { %3884 = vmatpush1.bf16.msra.mxu1 %v6552_v58  ;;  %v6569_v58 = vld [vmem:[%s7826_s11 + $0x44] ss:$16 sps:$4 sm:$0xff]  }
 0xbbb   : > { %v3507_v59 = vpop.f32.mrb[56].mxu1 }
 0xbbc   : > { %v5985_v63 = vpop.f32.mrb[57].mxu1 }
 0xbbd   : > { %v3510_v1 = vpop.f32.mrb[58].mxu1  ;;  %v6567_v63 = vld [vmem:[%s7826_s11 + $0x40] ss:$16 sps:$4 sm:$0xff]  }
 0xbbe   : > { %v3646_v39 = vpack.c.bf16 %v3510_v1, %v3507_v59  ;;  %v5986_v40 = vpop.f32.mrb[59].mxu1  ;;  %v6572_v59 = vld [vmem:[%s7826_s11 + $0x4c] ss:$16 sps:$4 sm:$0xff]   ;;  %v6570_v1 = vld [vmem:[%s7826_s11 + $0x48] ss:$16 sps:$4 sm:$0xff]  }
 0xbbf   : > { %v6578_v40 = vld [vmem:[%s7826_s11 + $0x6c] ss:$16 sps:$4 sm:$0xff]  }
 0xbc3   : > { %v3551_v21 = vpop.f32.mrb[48].mxu0  ;;  %v3595_v56 = vpop.f32.mrb[60].mxu1 }
 0xbc4   : > { %v5991_v5 = vpop.f32.mrb[49].mxu0  ;;  %v5997_v7 = vpop.f32.mrb[61].mxu1 }
 0xbc5   : > { %v3554_v3 = vpop.f32.mrb[50].mxu0  ;;  %v3598_v12 = vpop.f32.mrb[62].mxu1  ;;  %v6581_v5 = vld [vmem:[%s7826_s11 + $0x84] ss:$16 sps:$4 sm:$0xff]   ;;  %v6584_v7 = vld [vmem:[%s7826_s11 + $0x8c] ss:$16 sps:$4 sm:$0xff]  }
 0xbc6   : > { %v3648_v15 = vpack.c.bf16 %v3554_v3, %v3551_v21  ;;  %v3647_v16 = vpack.c.bf16 %v3598_v12, %v3595_v56  ;;  %v5992_v35 = vpop.f32.mrb[51].mxu0  ;;  %v5998_v18 = vpop.f32.mrb[63].mxu1  ;;  %v6573_v21 = vld [vmem:[%s7826_s11 + $0x60] ss:$16 sps:$4 sm:$0xff]   ;;  %v6576_v56 = vld [vmem:[%s7826_s11 + $0x68] ss:$16 sps:$4 sm:$0xff]  }
 0xbc7   : > { %v6579_v3 = vld [vmem:[%s7826_s11 + $0x80] ss:$16 sps:$4 sm:$0xff]   ;;  %v6582_v12 = vld [vmem:[%s7826_s11 + $0x88] ss:$16 sps:$4 sm:$0xff]  }
 0xbc8   : > { %3885 = vmatprep.mubr.bf16.mxu1 %v3647_v16  ;;  %v6590_v16 = vld [vmem:[%s7826_s11 + $0xac] ss:$16 sps:$4 sm:$0xff]   ;;  %v6585_v35 = vld [vmem:[%s7826_s11 + $0xa0] ss:$16 sps:$4 sm:$0xff]   ;;  %v6588_v18 = vld [vmem:[%s7826_s11 + $0xa8] ss:$16 sps:$4 sm:$0xff]  }
 0xbc9   : > { %3886 = vmatmul.mubr.bf16.vlgmr.msra.gmra.mrb[64].mxu1 %v3646_v39  ;;  %v6575_v39 = vld [vmem:[%s7826_s11 + $0x64] ss:$16 sps:$4 sm:$0xff]  }
 0xbcb   : > { %v3639_v47 = vpop.f32.mrb[52].mxu0 }
 0xbcc   : > { %v6003_v46 = vpop.f32.mrb[53].mxu0 }
 0xbcd   : > { %v3642_v28 = vpop.f32.mrb[54].mxu0  ;;  %v6596_v46 = vld [vmem:[%s7826_s11 + $0xcc] ss:$16 sps:$4 sm:$0xff]  }
 0xbce   : > { %v3649_v32 = vpack.c.bf16 %v3642_v28, %v3639_v47  ;;  %v6004_v11 = vpop.f32.mrb[55].mxu0  ;;  %v6593_v47 = vld [vmem:[%s7826_s11 + $0xc4] ss:$16 sps:$4 sm:$0xff]   ;;  %v6591_v28 = vld [vmem:[%s7826_s11 + $0xc0] ss:$16 sps:$4 sm:$0xff]  }
 0xbcf   : > { %v6599_v11 = vld [vmem:[%s7826_s11 + $0xe4] ss:$16 sps:$4 sm:$0xff]  }
 0xbd0   : > { %3895 = vmatprep.mubr.bf16.mxu1 %v3649_v32  ;;  %v6594_v32 = vld [vmem:[%s7826_s11 + $0xc8] ss:$16 sps:$4 sm:$0xff]  }
 0xbd1   : > { %3896 = vmatmul.mubr.bf16.gmra.mrb[68].mxu1 %v3648_v15  ;;  %v6587_v15 = vld [vmem:[%s7826_s11 + $0xa4] ss:$16 sps:$4 sm:$0xff]  }
 0xc9c   : > { %v3887_v29 = vpop.f32.mrb[64].mxu1 }
 0xc9d   : > { %v3888_v60 = vadd.f32 %v3887_v29, %v3686_v9  ;;  %v3889_v17 = vpop.f32.mrb[65].mxu1  ;;  %v6605_v29 = vld [vmem:[%s7826_s11 + $0x104] ss:$16 sps:$4 sm:$0xff]  }
 0xc9e   : > { %v3890_v14 = vadd.f32 %v3889_v17, %v3690_v22  ;;  %v3891_v54 = vpop.f32.mrb[66].mxu1  ;;  %v6603_v17 = vld [vmem:[%s7826_s11 + $0x100] ss:$16 sps:$4 sm:$0xff]  }
 0xc9f   : > { %v8446_v6 = vadd.f32 %v3888_v60, %v8278_v37  ;;  %v3892_v0 = vadd.f32 %v3891_v54, %v3686_v9  ;;  %v3893_v31 = vpop.f32.mrb[67].mxu1  ;;  %v6608_v60 = vld [vmem:[%s7826_s11 + $0x10c] ss:$16 sps:$4 sm:$0xff]   ;;  %v6611_v54 = vld [vmem:[%s7826_s11 + $0x124] ss:$16 sps:$4 sm:$0xff]  }
 0xca0   : > { %v8449_v33 = vadd.f32 %v3890_v14, %v8274_v61  ;;  %v3894_v34 = vadd.f32 %v3893_v31, %v3690_v22  ;;  %v6606_v14 = vld [vmem:[%s7826_s11 + $0x108] ss:$16 sps:$4 sm:$0xff]   ;;  %v6609_v31 = vld [vmem:[%s7826_s11 + $0x120] ss:$16 sps:$4 sm:$0xff]  }
 0xca1   : > { %v8452_v20 = vadd.f32 %v3892_v0, %v8280_v62  ;;  %v6614_v0 = vld [vmem:[%s7826_s11 + $0x12c] ss:$16 sps:$4 sm:$0xff]  }
 0xca2   : > { %v8455_v8 = vadd.f32 %v3894_v34, %v8276_v10  ;;  %v3914_v38 = vadd.f32 %v8449_v33, %v8446_v6  ;;  %v6612_v34 = vld [vmem:[%s7826_s11 + $0x128] ss:$16 sps:$4 sm:$0xff]  }
 0xca4   : > { %3915 = vadd.xlane.f32.xlu0 %v3914_v38  ;;  %v3897_v41 = vpop.f32.mrb[68].mxu1  ;;  %v3917_v37 = vadd.f32 %v8455_v8, %v8452_v20 }
 0xca5   : > { %v3898_v42 = vadd.f32 %v3897_v41, %v3686_v9  ;;  %v3899_v43 = vpop.f32.mrb[69].mxu1 }
 0xca6   : > { %v3900_v61 = vadd.f32 %v3899_v43, %v3690_v22  ;;  %3918 = vadd.xlane.f32.xlu1 %v3917_v37  ;;  %v3901_v62 = vpop.f32.mrb[70].mxu1 }
 0xca7   : > { %v8462_v10 = vadd.f32 %v3898_v42, %v8298_v50  ;;  %v3902_v19 = vadd.f32 %v3901_v62, %v3686_v9  ;;  %v3903_v26 = vpop.f32.mrb[71].mxu1  ;;  %v6597_v9 = vld [vmem:[%s7826_s11 + $0xe0] ss:$16 sps:$4 sm:$0xff]  }
 0xca8   : > { %v8465_v44 = vadd.f32 %v3900_v61, %v8294_v23  ;;  %v3904_v45 = vadd.f32 %v3903_v26, %v3690_v22  ;;  %v6555_v23 = vld [vmem:[%s7826_s11] ss:$16 sps:$4 sm:$0xff]   ;;  %v6600_v22 = vld [vmem:[%s7826_s11 + $0xe8] ss:$16 sps:$4 sm:$0xff]  }
 0xca9   : > { %v8468_v27 = vadd.f32 %v3902_v19, %v8300_v49  ;;  %v6560_v49 = vld [vmem:[%s7826_s11 + $0xc] ss:$16 sps:$4 sm:$0xff]   ;;  %4426 = vmatpush1.bf16.msra.mxu0 %v6555_v23 }
 0xcaa   : > { %v8471_v30 = vadd.f32 %v3904_v45, %v8296_v53  ;;  %v3920_v48 = vadd.f32 %v8465_v44, %v8462_v10  ;;  %v6566_v53 = vld [vmem:[%s7826_s11 + $0x2c] ss:$16 sps:$4 sm:$0xff]   ;;  %4478 = vmatprep.subr.bf16.mxu1 %v6560_v49  ;;  %4427 = vmatprep.subr.bf16.mxu0 %v6563_v55 }
 0xcab   : > { %4479 = vmatpush1.bf16.msra.mxu1 %v6558_v2 }
 0xcac   : > { %3921 = vadd.xlane.f32.xlu0 %v3920_v48  ;;  %v3923_v50 = vadd.f32 %v8471_v30, %v8468_v27  ;;  %4480 = vmatprep.subr.bf16.mxu1 %v6566_v53 }
 0xcad   : > { %4428 = vmatpush1.bf16.msra.mxu0 %v6561_v4 }
 0xcae   : > { %3924 = vadd.xlane.f32.xlu1 %v3923_v50  ;;  %4429 = vmatprep.subr.bf16.mxu0 %v6569_v58  ;;  %v6617_v58 = vld [vmem:[%s7826_s11 + $0x144] ss:$16 sps:$4 sm:$0xff]  }
 0xcaf   : > { %4481 = vmatpush1.bf16.msra.mxu1 %v6564_v36 }
 0xcb0   : > { %4482 = vmatprep.subr.bf16.mxu1 %v6572_v59  ;;  %v6620_v59 = vld [vmem:[%s7826_s11 + $0x14c] ss:$16 sps:$4 sm:$0xff]  }
 0xcb1   : > { %4430 = vmatpush1.bf16.msra.mxu0 %v6567_v63  ;;  %v6615_v63 = vld [vmem:[%s7826_s11 + $0x140] ss:$16 sps:$4 sm:$0xff]  }
 0xcb2   : > { %4431 = vmatprep.subr.bf16.mxu0 %v6575_v39  ;;  %v6623_v39 = vld [vmem:[%s7826_s11 + $0x164] ss:$16 sps:$4 sm:$0xff]  }
 0xcb3   : > { %4483 = vmatpush1.bf16.msra.mxu1 %v6570_v1  ;;  %v6618_v1 = vld [vmem:[%s7826_s11 + $0x148] ss:$16 sps:$4 sm:$0xff]  }
 0xcb4   : > { %4484 = vmatprep.subr.bf16.mxu1 %v6578_v40  ;;  %v6626_v40 = vld [vmem:[%s7826_s11 + $0x16c] ss:$16 sps:$4 sm:$0xff]  }
 0xcb5   : > { %4432 = vmatpush1.bf16.msra.mxu0 %v6573_v21  ;;  %v6621_v21 = vld [vmem:[%s7826_s11 + $0x160] ss:$16 sps:$4 sm:$0xff]  }
 0xcb6   : > { %4433 = vmatprep.subr.bf16.mxu0 %v6581_v5  ;;  %v6629_v5 = vld [vmem:[%s7826_s11 + $0x184] ss:$16 sps:$4 sm:$0xff]  }
 0xcb7   : > { %4485 = vmatpush1.bf16.msra.mxu1 %v6576_v56  ;;  %v6624_v56 = vld [vmem:[%s7826_s11 + $0x168] ss:$16 sps:$4 sm:$0xff]  }
 0xcb8   : > { %4486 = vmatprep.subr.bf16.mxu1 %v6584_v7  ;;  %v6632_v7 = vld [vmem:[%s7826_s11 + $0x18c] ss:$16 sps:$4 sm:$0xff]  }
 0xcb9   : > { %4434 = vmatpush1.bf16.msra.mxu0 %v6579_v3  ;;  %v6627_v3 = vld [vmem:[%s7826_s11 + $0x180] ss:$16 sps:$4 sm:$0xff]  }
 0xcba   : > { %4435 = vmatprep.subr.bf16.mxu0 %v6587_v15  ;;  %v6635_v15 = vld [vmem:[%s7826_s11 + $0x1a4] ss:$16 sps:$4 sm:$0xff]  }
 0xcbb   : > { %4487 = vmatpush1.bf16.msra.mxu1 %v6582_v12  ;;  %v6630_v12 = vld [vmem:[%s7826_s11 + $0x188] ss:$16 sps:$4 sm:$0xff]  }
 0xcbc   : > { %4488 = vmatprep.subr.bf16.mxu1 %v6590_v16  ;;  %v6638_v16 = vld [vmem:[%s7826_s11 + $0x1ac] ss:$16 sps:$4 sm:$0xff]  }
 0xcbd   : > { %4436 = vmatpush1.bf16.msra.mxu0 %v6585_v35  ;;  %v6633_v35 = vld [vmem:[%s7826_s11 + $0x1a0] ss:$16 sps:$4 sm:$0xff]  }
 0xcbe   : > { %4437 = vmatprep.subr.bf16.mxu0 %v6593_v47  ;;  %v6639_v47 = vld [vmem:[%s7826_s11 + $0x1c0] ss:$16 sps:$4 sm:$0xff]  }
 0xcbf   : > { %4489 = vmatpush1.bf16.msra.mxu1 %v6588_v18  ;;  %v6636_v18 = vld [vmem:[%s7826_s11 + $0x1a8] ss:$16 sps:$4 sm:$0xff]  }
 0xcc0   : > { %4490 = vmatprep.subr.bf16.mxu1 %v6596_v46  ;;  %v6641_v46 = vld [vmem:[%s7826_s11 + $0x1c4] ss:$16 sps:$4 sm:$0xff]  }
 0xcc1   : > { %4438 = vmatpush1.bf16.msra.mxu0 %v6591_v28  ;;  %v6642_v28 = vld [vmem:[%s7826_s11 + $0x1c8] ss:$16 sps:$4 sm:$0xff]  }
 0xcc2   : > { %4439 = vmatprep.subr.bf16.mxu0 %v6599_v11  ;;  %v6647_v11 = vld [vmem:[%s7826_s11 + $0x1e4] ss:$16 sps:$4 sm:$0xff]  }
 0xcc3   : > { %4491 = vmatpush1.bf16.msra.mxu1 %v6594_v32  ;;  %v6644_v32 = vld [vmem:[%s7826_s11 + $0x1cc] ss:$16 sps:$4 sm:$0xff]  }
 0xcc4   : > { %4492 = vmatprep.subr.bf16.mxu1 %v6602_v13  ;;  %v6650_v13 = vld [vmem:[%s7826_s11 + $0x1ec] ss:$16 sps:$4 sm:$0xff]  }
 0xcc5   : > { %4440 = vmatpush1.bf16.msra.mxu0 %v6597_v9  ;;  %v6645_v9 = vld [vmem:[%s7826_s11 + $0x1e0] ss:$16 sps:$4 sm:$0xff]  }
 0xcc6   : > { %4441 = vmatprep.subr.bf16.mxu0 %v6605_v29  ;;  %v6653_v29 = vld [vmem:[%s7828_s27 + $0x4] ss:$8 sps:$4 sm:$0xff]  }
 0xcc7   : > { %4493 = vmatpush1.bf16.msra.mxu1 %v6600_v22  ;;  %v6648_v22 = vld [vmem:[%s7826_s11 + $0x1e8] ss:$16 sps:$4 sm:$0xff]  }
 0xcc8   : > { %4494 = vmatprep.subr.bf16.mxu1 %v6608_v60 }
 0xcc9   : > { %4442 = vmatpush1.bf16.msra.mxu0 %v6603_v17 }
 0xcca   : > { %4443 = vmatprep.subr.bf16.mxu0 %v6611_v54 }
 0xccb   : > { %4495 = vmatpush1.bf16.msra.mxu1 %v6606_v14 }
 0xccc   : > { %4496 = vmatprep.subr.bf16.mxu1 %v6614_v0 }
 0xccd   : > { %4444 = vmatpush1.bf16.msra.mxu0 %v6609_v31 }
 0xcce   : > { %4445 = vmatprep.subr.bf16.mxu0 %v6617_v58 }
 0xccf   : > { %4497 = vmatpush1.bf16.msra.mxu1 %v6612_v34 }
 0xcd0   : > { %4498 = vmatprep.subr.bf16.mxu1 %v6620_v59 }
 0xcd1   : > { %4446 = vmatpush1.bf16.msra.mxu0 %v6615_v63 }
 0xcd2   : > { %4447 = vmatprep.subr.bf16.mxu0 %v6623_v39 }
 0xcd3   : > { %4499 = vmatpush1.bf16.msra.mxu1 %v6618_v1 }
 0xcd4   : > { %4500 = vmatprep.subr.bf16.mxu1 %v6626_v40 }
 0xcd5   : > { %4448 = vmatpush1.bf16.msra.mxu0 %v6621_v21  ;;  %v6651_v21 = vld [vmem:[%s7828_s27] ss:$8 sps:$4 sm:$0xff]  }
 0xcd6   : > { %4449 = vmatprep.subr.bf16.mxu0 %v6629_v5  ;;  %v6656_v5 = vld [vmem:[%s7828_s27 + $0x14] ss:$8 sps:$4 sm:$0xff]  }
 0xcd7   : > { %4501 = vmatpush1.bf16.msra.mxu1 %v6624_v56 }
 0xcd8   : > { %4502 = vmatprep.subr.bf16.mxu1 %v6632_v7 }
 0xcd9   : > { %4450 = vmatpush1.bf16.msra.mxu0 %v6627_v3 }
 0xcda   : > { %4451 = vmatprep.subr.bf16.mxu0 %v6635_v15 }
 0xcdb   : > { %4503 = vmatpush1.bf16.msra.mxu1 %v6630_v12 }
 0xcdc   : > { %4504 = vmatprep.subr.bf16.mxu1 %v6638_v16 }
 0xcdd   : > { %4452 = vmatpush1.bf16.msra.mxu0 %v6633_v35  ;;  %v6659_v35 = vld [vmem:[%s7828_s27 + $0x24] ss:$8 sps:$4 sm:$0xff]  }
 0xcde   : > { %4453 = vmatprep.subr.bf16.mxu0 %v6641_v46 }
 0xcdf   : > { %4505 = vmatpush1.bf16.msra.mxu1 %v6636_v18 }
 0xce0   : > { %4506 = vmatprep.subr.bf16.mxu1 %v6644_v32  ;;  %v6657_v32 = vld [vmem:[%s7828_s27 + $0x20] ss:$8 sps:$4 sm:$0xff]  }
 0xce1   : > { %4454 = vmatpush1.bf16.msra.mxu0 %v6639_v47 }
 0xce2   : > { %4455 = vmatprep.subr.bf16.mxu0 %v6647_v11  ;;  %v6662_v11 = vld [vmem:[%s7828_s27 + $0x34] ss:$8 sps:$4 sm:$0xff]  }
 0xce3   : > { %4507 = vmatpush1.bf16.msra.mxu1 %v6642_v28 }
 0xce4   : > { %4508 = vmatprep.subr.bf16.mxu1 %v6650_v13  ;;  %v6660_v13 = vld [vmem:[%s7828_s27 + $0x30] ss:$8 sps:$4 sm:$0xff]  }
 0xce5   : > { %4456 = vmatpush1.bf16.msra.mxu0 %v6645_v9  ;;  %v6665_v9 = vld [vmem:[%s7828_s27 + $0x44] ss:$8 sps:$4 sm:$0xff]  }
 0xce6   : > { %4950 = vmatprep.subr.bf16.mxu0 %v6653_v29  ;;  %v6668_v29 = vld [vmem:[%s7828_s27 + $0x54] ss:$8 sps:$4 sm:$0xff]  }
 0xce7   : > { %4509 = vmatpush1.bf16.msra.mxu1 %v6648_v22  ;;  %v6663_v22 = vld [vmem:[%s7828_s27 + $0x40] ss:$8 sps:$4 sm:$0xff]  }
 0xd31   : > { %v3916_v38 = vpop.xlane.xlu0 %3915 }
 0xd32   : > { %v3926_v41 = vmul.f32 0.00390625, %v3916_v38 }
 0xd33   : > { %v3919_v37 = vpop.xlane.xlu1 %3918 }
 0xd34   : > { %v8518_v42 = vsub.f32 %v8446_v6, %v3926_v41  ;;  %v8521_v43 = vsub.f32 %v8449_v33, %v3926_v41  ;;  %v3927_v61 = vmul.f32 0.00390625, %v3919_v37 }
 0xd36   : > { %v8524_v62 = vsub.f32 %v8452_v20, %v3927_v61  ;;  %v8527_v19 = vsub.f32 %v8455_v8, %v3927_v61  ;;  %v3938_v26 = vmul.f32 %v8518_v42, %v8518_v42  ;;  %v3939_v45 = vmul.f32 %v8521_v43, %v8521_v43 }
 0xd38   : > { %v3946_v48 = vadd.f32 %v3939_v45, %v3938_v26  ;;  %v3940_v6 = vmul.f32 %v8524_v62, %v8524_v62  ;;  %v3941_v33 = vmul.f32 %v8527_v19, %v8527_v19  ;;  %v781_v26 = vld [vmem:[%s7834_s29 + $0x1a] sm:$0x3] }
 0xd39   : > { %v3922_v50 = vpop.xlane.xlu0 %3921 }
 0xd3a   : > { %v3928_v23 = vmul.f32 0.00390625, %v3922_v50  ;;  %3947 = vadd.xlane.f32.xlu0 %v3946_v48  ;;  %v3949_v20 = vadd.f32 %v3941_v33, %v3940_v6  ;;  %v782_v48 = vld [vmem:[%s7834_s29 + $0x1c] sm:$0x3]  ;;  %v3982_v6 = vrot.slane %v781_v26, %v7962_v51  ;;  %v3986_v33 = vrot.slane %v781_v26, %v7968_v57 }
 0xd3b   : > { %v3925_v8 = vpop.xlane.xlu1 %3924  ;;  %v6686_v26 = vld [vmem:[%s7828_s27 + $0xb4] ss:$8 sps:$4 sm:$0xff]  }
 0xd3c   : > { %v8538_v52 = vsub.f32 %v8462_v10, %v3928_v23  ;;  %v8541_v2 = vsub.f32 %v8465_v44, %v3928_v23  ;;  %v3929_v49 = vmul.f32 0.00390625, %v3925_v8  ;;  %3950 = vadd.xlane.f32.xlu1 %v3949_v20 }
 0xd3e   : > { %v8544_v55 = vsub.f32 %v8468_v27, %v3929_v49  ;;  %v8547_v53 = vsub.f32 %v8471_v30, %v3929_v49  ;;  %v3942_v4 = vmul.f32 %v8538_v52, %v8538_v52  ;;  %v3943_v10 = vmul.f32 %v8541_v2, %v8541_v2 }
 0xd3f   : > { %v4001_v49 = vrot.slane %v782_v48, %v7962_v51 }
 0xd40   : > { %v3952_v36 = vadd.f32 %v3943_v10, %v3942_v4  ;;  %v3944_v44 = vmul.f32 %v8544_v55, %v8544_v55  ;;  %v3945_v27 = vmul.f32 %v8547_v53, %v8547_v53  ;;  %v4005_v4 = vrot.slane %v782_v48, %v7968_v57  ;;  %v6689_v48 = vld [vmem:[%s7828_s27 + $0xc4] ss:$8 sps:$4 sm:$0xff]  }
 0xd42   : > { %3953 = vadd.xlane.f32.xlu0 %v3952_v36  ;;  %v3955_v30 = vadd.f32 %v3945_v27, %v3944_v44 }
 0xd44   : > { %3956 = vadd.xlane.f32.xlu1 %v3955_v30 }
 0xdc7   : > { %v3948_v60 = vpop.xlane.xlu0 %3947 }
 0xdc8   : > { %v3958_v17 = vmul.f32 0.00390625, %v3948_v60  ;;  %v6666_v60 = vld [vmem:[%s7828_s27 + $0x50] ss:$8 sps:$4 sm:$0xff]  }
 0xdc9   : > { %v3951_v14 = vpop.xlane.xlu1 %3950 }
 0xdca   : > { %v3962_v54 = vadd.f32 1e-05, %v3958_v17  ;;  %v3959_v0 = vmul.f32 0.00390625, %v3951_v14  ;;  %v6671_v17 = vld [vmem:[%s7828_s27 + $0x64] ss:$8 sps:$4 sm:$0xff]  }
 0xdcb   : > { %v6669_v14 = vld [vmem:[%s7828_s27 + $0x60] ss:$8 sps:$4 sm:$0xff]  }
 0xdcc   : > { %6819 = vrsqrt.f32 %v3962_v54  ;;  %v3963_v31 = vadd.f32 1e-05, %v3959_v0  ;;  %v6674_v54 = vld [vmem:[%s7828_s27 + $0x74] ss:$8 sps:$4 sm:$0xff]   ;;  %v6672_v0 = vld [vmem:[%s7828_s27 + $0x70] ss:$8 sps:$4 sm:$0xff]  }
 0xdce   : > { %6821 = vrsqrt.f32 %v3963_v31  ;;  %v6677_v31 = vld [vmem:[%s7828_s27 + $0x84] ss:$8 sps:$4 sm:$0xff]  }
 0xdcf   : > { %v3954_v34 = vpop.xlane.xlu0 %3953 }
 0xdd0   : > { %v3960_v38 = vmul.f32 0.00390625, %v3954_v34  ;;  %v6675_v34 = vld [vmem:[%s7828_s27 + $0x80] ss:$8 sps:$4 sm:$0xff]  }
 0xdd1   : > { %v3957_v41 = vpop.xlane.xlu1 %3956 }
 0xdd2   : > { %v3964_v37 = vadd.f32 1e-05, %v3960_v38  ;;  %v3961_v61 = vmul.f32 0.00390625, %v3957_v41  ;;  %v6680_v38 = vld [vmem:[%s7828_s27 + $0x94] ss:$8 sps:$4 sm:$0xff]  }
 0xdd3   : > { %v6678_v41 = vld [vmem:[%s7828_s27 + $0x90] ss:$8 sps:$4 sm:$0xff]  }
 0xdd4   : > { %6823 = vrsqrt.f32 %v3964_v37  ;;  %v3965_v45 = vadd.f32 1e-05, %v3961_v61  ;;  %v6683_v37 = vld [vmem:[%s7828_s27 + $0xa4] ss:$8 sps:$4 sm:$0xff]   ;;  %v6681_v61 = vld [vmem:[%s7828_s27 + $0xa0] ss:$8 sps:$4 sm:$0xff]  }
 0xdd6   : > { %v6820_v50 = vpop.eup %6819  ;;  %6825 = vrsqrt.f32 %v3965_v45  ;;  %v6684_v45 = vld [vmem:[%s7828_s27 + $0xb0] ss:$8 sps:$4 sm:$0xff]  }
 0xdd7   : > { %v3970_v23 = vmul.f32 %v6820_v50, %v8518_v42  ;;  %v3971_v20 = vmul.f32 %v6820_v50, %v8521_v43  ;;  %v6690_v50 = vld [vmem:[%s7828_s27 + $0xd0] ss:$8 sps:$4 sm:$0xff]  }
 0xdd8   : > { %v6822_v8 = vpop.eup %6821 }
 0xdd9   : > { %v3972_v10 = vmul.f32 %v6822_v8, %v8524_v62  ;;  %v3973_v36 = vmul.f32 %v6822_v8, %v8527_v19  ;;  %v3990_v44 = vmul.f32 %v3986_v33, %v3971_v20  ;;  %v3989_v27 = vmul.f32 %v3982_v6, %v3970_v23  ;;  %v6695_v23 = vld [vmem:[%s7828_s27 + $0xe4] ss:$8 sps:$4 sm:$0xff]   ;;  %v6693_v20 = vld [vmem:[%s7828_s27 + $0xe0] ss:$8 sps:$4 sm:$0xff]   ;;  %v6698_v8 = vld [vmem:[%s7828_s27 + $0xf4] ss:$8 sps:$4 sm:$0xff]  }
 0xddb   : > { %v3992_v30 = vmul.f32 %v3986_v33, %v3973_v36  ;;  %v3991_v58 = vmul.f32 %v3982_v6, %v3972_v10  ;;  %v8592_v59 = vadd.f32 %v4005_v4, %v3990_v44  ;;  %v8596_v43 = vadd.f32 %v4001_v49, %v3989_v27  ;;  %v777_v10 = vld [vmem:[%s7834_s29 + $0x10] sm:$0xf] }
 0xddc   : > { %v4088_v36 = vrot.slane %v777_v10, %v7962_v51  ;;  %v4096_v44 = vrot.slane %v777_v10, %v7975_v24  ;;  %v4092_v27 = vrot.slane %v777_v10, %v7968_v57 }
 0xddd   : > { %v8594_v42 = vadd.f32 %v4005_v4, %v3992_v30  ;;  %v8598_v63 = vadd.f32 %v4001_v49, %v3991_v58  ;;  %v4100_v30 = vrot.slane %v777_v10, %v7978_v25 }
 0xdde   : > { %v6824_v1 = vpop.eup %6823 }
 0xddf   : > { %v4017_v39 = vpack.c.bf16 %v8594_v42, %v8592_v59  ;;  %v4016_v62 = vpack.c.bf16 %v8598_v63, %v8596_v43  ;;  %v3975_v19 = vmul.f32 %v6824_v1, %v8541_v2  ;;  %v3974_v40 = vmul.f32 %v6824_v1, %v8538_v52  ;;  %v6654_v52 = vld [vmem:[%s7828_s27 + $0x10] ss:$8 sps:$4 sm:$0xff]  }
 0xde0   : > { %v6826_v56 = vpop.eup %6825 }
 0xde1   : > { %4457 = vmatprep.mubr.bf16.mxu0 %v4017_v39  ;;  %4510 = vmatprep.mubr.bf16.mxu1 %v4017_v39  ;;  %v3977_v7 = vmul.f32 %v6826_v56, %v8547_v53  ;;  %v3994_v3 = vmul.f32 %v3986_v33, %v3975_v19  ;;  %v3976_v12 = vmul.f32 %v6826_v56, %v8544_v55 }
 0xde2   : > { %4458 = vmatmul.mubr.bf16.vlgmr.msra.gmra.mrb[56].mxu0 %v4016_v62  ;;  %4511 = vmatmul.mubr.bf16.vlgmr.msra.gmra.mrb[72].mxu1 %v4016_v62  ;;  %v3993_v15 = vmul.f32 %v3982_v6, %v3974_v40 }
 0xde3   : > { %v3996_v2 = vmul.f32 %v3986_v33, %v3977_v7  ;;  %v3995_v16 = vmul.f32 %v3982_v6, %v3976_v12  ;;  %4951 = vmatpush1.bf16.msra.mxu0 %v6651_v21  ;;  %v8612_v18 = vadd.f32 %v4005_v4, %v3994_v3  ;;  %v6687_v6 = vld [vmem:[%s7828_s27 + $0xc0] ss:$8 sps:$4 sm:$0xff]   ;;  %v6692_v33 = vld [vmem:[%s7828_s27 + $0xd4] ss:$8 sps:$4 sm:$0xff]  }
 0xde4   : > { %4952 = vmatprep.subr.bf16.mxu0 %v6656_v5  ;;  %v8616_v53 = vadd.f32 %v4001_v49, %v3993_v15 }
 0xde5   : > { %v8614_v47 = vadd.f32 %v4005_v4, %v3996_v2  ;;  %v8618_v55 = vadd.f32 %v4001_v49, %v3995_v16  ;;  %v6696_v49 = vld [vmem:[%s7828_s27 + $0xf0] ss:$8 sps:$4 sm:$0xff]   ;;  %v6701_v4 = vld [vmem:[%s7828_s27 + $0x104] ss:$8 sps:$4 sm:$0xff]  }
 0xde7   : > { %v4019_v46 = vpack.c.bf16 %v8614_v47, %v8612_v18  ;;  %v4018_v28 = vpack.c.bf16 %v8618_v55, %v8616_v53  ;;  %4953 = vmatpush1.bf16.msra.mxu0 %v6654_v52 }
 0xde8   : > { %4954 = vmatprep.subr.bf16.mxu0 %v6659_v35 }
 0xde9   : > { %4467 = vmatprep.mubr.bf16.mxu0 %v4019_v46  ;;  %4520 = vmatprep.mubr.bf16.mxu1 %v4019_v46 }
 0xdea   : > { %4468 = vmatmul.mubr.bf16.gmra.mrb[60].mxu0 %v4018_v28  ;;  %4521 = vmatmul.mubr.bf16.gmra.mrb[76].mxu1 %v4018_v28 }
 0xdeb   : > { %4955 = vmatpush1.bf16.msra.mxu0 %v6657_v32 }
 0xdec   : > { %4956 = vmatprep.subr.bf16.mxu0 %v6662_v11 }
 0xdef   : > { %4957 = vmatpush1.bf16.msra.mxu0 %v6660_v13 }
 0xdf0   : > { %4958 = vmatprep.subr.bf16.mxu0 %v6665_v9 }
 0xdf3   : > { %4959 = vmatpush1.bf16.msra.mxu0 %v6663_v22 }
 0xdf4   : > { %4960 = vmatprep.subr.bf16.mxu0 %v6668_v29 }
 0xdf7   : > { %4961 = vmatpush1.bf16.msra.mxu0 %v6666_v60 }
 0xdf8   : > { %4962 = vmatprep.subr.bf16.mxu0 %v6671_v17 }
 0xdfb   : > { %4963 = vmatpush1.bf16.msra.mxu0 %v6669_v14 }
 0xdfc   : > { %4964 = vmatprep.subr.bf16.mxu0 %v6674_v54  ;;  %v6699_v54 = vld [vmem:[%s7828_s27 + $0x100] ss:$8 sps:$4 sm:$0xff]  }
 0xdff   : > { %4965 = vmatpush1.bf16.msra.mxu0 %v6672_v0 }
 0xe00   : > { %4966 = vmatprep.subr.bf16.mxu0 %v6677_v31 }
 0xe03   : > { %4967 = vmatpush1.bf16.msra.mxu0 %v6675_v34 }
 0xe04   : > { %4968 = vmatprep.subr.bf16.mxu0 %v6680_v38 }
 0xe07   : > { %4969 = vmatpush1.bf16.msra.mxu0 %v6678_v41  ;;  %v6704_v41 = vld [vmem:[%s7828_s27 + $0x114] ss:$8 sps:$4 sm:$0xff]  }
 0xe08   : > { %4970 = vmatprep.subr.bf16.mxu0 %v6683_v37 }
 0xe0b   : > { %4971 = vmatpush1.bf16.msra.mxu0 %v6681_v61 }
 0xe0c   : > { %4972 = vmatprep.subr.bf16.mxu0 %v6686_v26 }
 0xe0f   : > { %4973 = vmatpush1.bf16.msra.mxu0 %v6684_v45 }
 0xe10   : > { %4974 = vmatprep.subr.bf16.mxu0 %v6689_v48 }
 0xe13   : > { %4975 = vmatpush1.bf16.msra.mxu0 %v6687_v6 }
 0xe14   : > { %4976 = vmatprep.subr.bf16.mxu0 %v6692_v33 }
 0xe17   : > { %4977 = vmatpush1.bf16.msra.mxu0 %v6690_v50 }
 0xe18   : > { %4978 = vmatprep.subr.bf16.mxu0 %v6695_v23 }
 0xe1b   : > { %4979 = vmatpush1.bf16.msra.mxu0 %v6693_v20 }
 0xe1c   : > { %4980 = vmatprep.subr.bf16.mxu0 %v6698_v8  ;;  %v6702_v8 = vld [vmem:[%s7828_s27 + $0x110] ss:$8 sps:$4 sm:$0xff]  }
 0xe1f   : > { %4981 = vmatpush1.bf16.msra.mxu0 %v6696_v49 }
 0xe20   : > { %5003 = vmatprep.subr.bf16.mxu0 %v6701_v4 }
 0xeb5   : > { %v4459_v58 = vpop.f32.mrb[56].mxu0  ;;  %v4512_v1 = vpop.f32.mrb[72].mxu1 }
 0xeb6   : > { %v4460_v39 = vadd.f32 %v4459_v58, %v4088_v36  ;;  %v4513_v62 = vadd.f32 %v4512_v1, %v4096_v44  ;;  %v4461_v19 = vpop.f32.mrb[57].mxu0  ;;  %v4514_v40 = vpop.f32.mrb[73].mxu1  ;;  %v6707_v1 = vld [vmem:[%s7828_s27 + $0x124] ss:$8 sps:$4 sm:$0xff]  }
 0xeb7   : > { %v4462_v21 = vadd.f32 %v4461_v19, %v4092_v27  ;;  %v4515_v56 = vadd.f32 %v4514_v40, %v4100_v30  ;;  %v4463_v5 = vpop.f32.mrb[58].mxu0  ;;  %v4516_v7 = vpop.f32.mrb[74].mxu1 }
 0xeb8   : > { %v4464_v3 = vadd.f32 %v4463_v5, %v4088_v36  ;;  %v4517_v12 = vadd.f32 %v4516_v7, %v4096_v44  ;;  %v4465_v15 = vpop.f32.mrb[59].mxu0  ;;  %v4518_v2 = vpop.f32.mrb[75].mxu1  ;;  %v4531_v52 = vmax.f32 %v4460_v39, 0.0  ;;  %v4533_v35 = vmax.f32 %v4513_v62, 0.0  ;;  %v6708_v5 = vld [vmem:[%s7828_s27 + $0x130] ss:$8 sps:$4 sm:$0xff]  }
 0xeb9   : > { %v4466_v16 = vadd.f32 %v4465_v15, %v4092_v27  ;;  %v4519_v24 = vadd.f32 %v4518_v2, %v4100_v30  ;;  %v4532_v28 = vmax.f32 %v4462_v21, 0.0  ;;  %v4534_v32 = vmax.f32 %v4515_v56, 0.0  ;;  %v6705_v21 = vld [vmem:[%s7828_s27 + $0x120] ss:$8 sps:$4 sm:$0xff]   ;;  %v6710_v56 = vld [vmem:[%s7828_s27 + $0x134] ss:$8 sps:$4 sm:$0xff]  }
 0xeba   : > { %v4535_v25 = vmax.f32 %v4464_v3, 0.0  ;;  %v4537_v46 = vmax.f32 %v4517_v12, 0.0  ;;  %v6713_v7 = vld [vmem:[%s7828_s27 + $0x144] ss:$8 sps:$4 sm:$0xff]   ;;  %v6711_v3 = vld [vmem:[%s7828_s27 + $0x140] ss:$8 sps:$4 sm:$0xff]  }
 0xebb   : > { %v4536_v11 = vmax.f32 %v4466_v16, 0.0  ;;  %v4538_v13 = vmax.f32 %v4519_v24, 0.0  ;;  %v6716_v12 = vld [vmem:[%s7828_s27 + $0x154] ss:$8 sps:$4 sm:$0xff]   ;;  %v6714_v15 = vld [vmem:[%s7828_s27 + $0x150] ss:$8 sps:$4 sm:$0xff]  }
 0xebc   : > { %v4547_v9 = vpack.c.bf16 %v4535_v25, %v4531_v52  ;;  %v8657_v22 = vpack.c.bf16 %v4537_v46, %v4533_v35  ;;  %v6719_v2 = vld [vmem:[%s7828_s27 + $0x164] ss:$8 sps:$4 sm:$0xff]   ;;  %v6717_v16 = vld [vmem:[%s7828_s27 + $0x160] ss:$8 sps:$4 sm:$0xff]   ;;  %v6722_v24 = vld [vmem:[%s7828_s27 + $0x174] ss:$8 sps:$4 sm:$0xff]  }
 0xebd   : > { %v4548_v29 = vpack.c.bf16 %v4536_v11, %v4532_v28  ;;  %v4550_v60 = vpack.c.bf16 %v4538_v13, %v4534_v32  ;;  %v4469_v17 = vpop.f32.mrb[60].mxu0  ;;  %v4522_v14 = vpop.f32.mrb[76].mxu1  ;;  %v6720_v52 = vld [vmem:[%s7828_s27 + $0x170] ss:$8 sps:$4 sm:$0xff]   ;;  %v6725_v35 = vld [vmem:[%s7828_s27 + $0x184] ss:$8 sps:$4 sm:$0xff]  }
 0xebe   : > { %v4470_v0 = vadd.f32 %v4469_v17, %v4088_v36  ;;  %v4523_v31 = vadd.f32 %v4522_v14, %v4096_v44  ;;  %v4471_v34 = vpop.f32.mrb[61].mxu0  ;;  %v4524_v38 = vpop.f32.mrb[77].mxu1  ;;  %v6723_v25 = vld [vmem:[%s7828_s27 + $0x180] ss:$8 sps:$4 sm:$0xff]   ;;  %v6728_v46 = vld [vmem:[%s7828_s27 + $0x194] ss:$8 sps:$4 sm:$0xff]  }
 0xebf   : > { %v4472_v37 = vadd.f32 %v4471_v34, %v4092_v27  ;;  %v4525_v61 = vadd.f32 %v4524_v38, %v4100_v30  ;;  %v4473_v26 = vpop.f32.mrb[62].mxu0  ;;  %v4526_v45 = vpop.f32.mrb[78].mxu1  ;;  %4982 = vmatprep.mubr.bf16.mxu0 %v4548_v29  ;;  %v6726_v28 = vld [vmem:[%s7828_s27 + $0x190] ss:$8 sps:$4 sm:$0xff]   ;;  %v6731_v32 = vld [vmem:[%s7828_s27 + $0x1a4] ss:$8 sps:$4 sm:$0xff]  }
 0xec0   : > { %v4474_v48 = vadd.f32 %v4473_v26, %v4088_v36  ;;  %v4527_v6 = vadd.f32 %v4526_v45, %v4096_v44  ;;  %v4475_v33 = vpop.f32.mrb[63].mxu0  ;;  %v4528_v50 = vpop.f32.mrb[79].mxu1  ;;  %4983 = vmatmul.mubr.bf16.vlgmr.msra.gmra.mrb[64].mxu0 %v4547_v9  ;;  %v4539_v49 = vmax.f32 %v4470_v0, 0.0  ;;  %v4541_v4 = vmax.f32 %v4523_v31, 0.0  ;;  %v6729_v11 = vld [vmem:[%s7828_s27 + $0x1a0] ss:$8 sps:$4 sm:$0xff]  }
 0xec1   : > { %v4476_v23 = vadd.f32 %v4475_v33, %v4092_v27  ;;  %v4529_v20 = vadd.f32 %v4528_v50, %v4100_v30  ;;  %5004 = vmatpush1.bf16.msra.mxu0 %v6699_v54  ;;  %v4540_v39 = vmax.f32 %v4472_v37, 0.0  ;;  %v4542_v62 = vmax.f32 %v4525_v61, 0.0  ;;  %v6734_v13 = vld [vmem:[%s7828_s27 + $0x1b4] ss:$8 sps:$4 sm:$0xff]   ;;  %v6732_v9 = vld [vmem:[%s7828_s27 + $0x1b0] ss:$8 sps:$4 sm:$0xff]  }
 0xec2   : > { %v4543_v10 = vmax.f32 %v4474_v48, 0.0  ;;  %v4545_v58 = vmax.f32 %v4527_v6, 0.0  ;;  %5005 = vmatprep.subr.bf16.mxu0 %v6704_v41  ;;  %v6737_v29 = vld [vmem:[%s7828_s27 + $0x1c4] ss:$8 sps:$4 sm:$0xff]   ;;  %v6740_v17 = vld [vmem:[%s7828_s27 + $0x1d4] ss:$8 sps:$4 sm:$0xff]  }
 0xec3   : > { %v4544_v36 = vmax.f32 %v4476_v23, 0.0  ;;  %v4546_v44 = vmax.f32 %v4529_v20, 0.0  ;;  %v6738_v14 = vld [vmem:[%s7828_s27 + $0x1d0] ss:$8 sps:$4 sm:$0xff]   ;;  %v6743_v54 = vld [vmem:[%s7828_s27 + $0x1e4] ss:$8 sps:$4 sm:$0xff]  }
 0xec4   : > { %v4551_v19 = vpack.c.bf16 %v4543_v10, %v4539_v49  ;;  %v8663_v27 = vpack.c.bf16 %v4545_v58, %v4541_v4  ;;  %v6741_v0 = vld [vmem:[%s7828_s27 + $0x1e0] ss:$8 sps:$4 sm:$0xff]   ;;  %v6746_v31 = vld [vmem:[%s7828_s27 + $0x1f4] ss:$8 sps:$4 sm:$0xff]   ;;  %v6744_v34 = vld [vmem:[%s7828_s27 + $0x1f0] ss:$8 sps:$4 sm:$0xff]  }
 0xec5   : > { %v4552_v30 = vpack.c.bf16 %v4544_v36, %v4540_v39  ;;  %v4554_v40 = vpack.c.bf16 %v4546_v44, %v4542_v62  ;;  %5006 = vmatpush1.bf16.msra.mxu0 %v6702_v8  ;;  %v778_v38 = vld [vmem:[%s7834_s29 + $0x14] sm:$0x3] }
 0xec6   : > { %5007 = vmatprep.subr.bf16.mxu0 %v6707_v1  ;;  %v4623_v41 = vrot.slane %v778_v38, %v7962_v51  ;;  %v4627_v37 = vrot.slane %v778_v38, %v7968_v57 }
 0xec7   : > { %4992 = vmatprep.mubr.bf16.mxu0 %v4552_v30 }
 0xec8   : > { %4993 = vmatmul.mubr.bf16.gmra.mrb[68].mxu0 %v4551_v19 }
 0xec9   : > { %5008 = vmatpush1.bf16.msra.mxu0 %v6705_v21  ;;  %5035 = vmatprep.mubr.bf16.mxu0 %v4550_v60  ;;  %v6735_v60 = vld [vmem:[%s7828_s27 + $0x1c0] ss:$8 sps:$4 sm:$0xff]  }
 0xeca   : > { %5009 = vmatprep.subr.bf16.mxu0 %v6710_v56 }
 0xecd   : > { %5010 = vmatpush1.bf16.msra.mxu0 %v6708_v5 }
 0xece   : > { %5011 = vmatprep.subr.bf16.mxu0 %v6713_v7 }
 0xed1   : > { %5012 = vmatpush1.bf16.msra.mxu0 %v6711_v3 }
 0xed2   : > { %5013 = vmatprep.subr.bf16.mxu0 %v6716_v12 }
 0xed5   : > { %5014 = vmatpush1.bf16.msra.mxu0 %v6714_v15 }
 0xed6   : > { %5015 = vmatprep.subr.bf16.mxu0 %v6719_v2 }
 0xed9   : > { %5016 = vmatpush1.bf16.msra.mxu0 %v6717_v16 }
 0xeda   : > { %5017 = vmatprep.subr.bf16.mxu0 %v6722_v24 }
 0xedd   : > { %5018 = vmatpush1.bf16.msra.mxu0 %v6720_v52 }
 0xede   : > { %5019 = vmatprep.subr.bf16.mxu0 %v6725_v35 }
 0xee1   : > { %5020 = vmatpush1.bf16.msra.mxu0 %v6723_v25 }
 0xee2   : > { %5021 = vmatprep.subr.bf16.mxu0 %v6728_v46 }
 0xee5   : > { %5022 = vmatpush1.bf16.msra.mxu0 %v6726_v28 }
 0xee6   : > { %5023 = vmatprep.subr.bf16.mxu0 %v6731_v32 }
 0xee9   : > { %5024 = vmatpush1.bf16.msra.mxu0 %v6729_v11 }
 0xeea   : > { %5025 = vmatprep.subr.bf16.mxu0 %v6734_v13 }
 0xeed   : > { %5026 = vmatpush1.bf16.msra.mxu0 %v6732_v9 }
 0xeee   : > { %5027 = vmatprep.subr.bf16.mxu0 %v6737_v29 }
 0xef1   : > { %5028 = vmatpush1.bf16.msra.mxu0 %v6735_v60 }
 0xef2   : > { %5029 = vmatprep.subr.bf16.mxu0 %v6740_v17 }
 0xef5   : > { %5030 = vmatpush1.bf16.msra.mxu0 %v6738_v14 }
 0xef6   : > { %5031 = vmatprep.subr.bf16.mxu0 %v6743_v54 }
 0xef9   : > { %5032 = vmatpush1.bf16.msra.mxu0 %v6741_v0 }
 0xefa   : > { %5033 = vmatprep.subr.bf16.mxu0 %v6746_v31 }
 0xefd   : > { %5034 = vmatpush1.bf16.msra.mxu0 %v6744_v34 }
 0xf00   : > { %5036 = vmatmul.mubr.bf16.vlgmr.msra.gmra.mrb[64].mxu0 %v8657_v22 }
 0xf01   : > { %5045 = vmatprep.mubr.bf16.mxu0 %v4554_v40 }
 0xf08   : > { %5046 = vmatmul.mubr.bf16.gmra.mrb[68].mxu0 %v8663_v27 }
 0xfd3   : > { %v5037_v61 = vpop.f32.mrb[64].mxu0 }
 0xfd4   : > { %v6005_v26 = vadd.f32 %v5037_v61, %v4623_v41  ;;  %v5039_v45 = vpop.f32.mrb[65].mxu0 }
 0xfd5   : > { %v6006_v48 = vadd.f32 %v5039_v45, %v4627_v37  ;;  %v5041_v6 = vpop.f32.mrb[66].mxu0 }
 0xfd6   : > { %v5056_v33 = vadd.f32 %v6005_v26, %v8596_v43  ;;  %v6007_v50 = vadd.f32 %v5041_v6, %v4623_v41  ;;  %v5043_v23 = vpop.f32.mrb[67].mxu0 }
 0xfd7   : > { %v5057_v20 = vadd.f32 %v6006_v48, %v8592_v59  ;;  %v6008_v22 = vadd.f32 %v5043_v23, %v4627_v37  ;;  %v783_v48 = vld [vmem:[%s7834_s29 + $0x1e] sm:$0x3] }
 0xfd8   : > { %v5058_v8 = vadd.f32 %v6007_v50, %v8598_v63  ;;  %v784_v50 = vld [vmem:[%s7834_s29 + $0x20] sm:$0x3] }
 0xfd9   : > { %v5059_v49 = vadd.f32 %v6008_v22, %v8594_v42  ;;  %v5064_v4 = vadd.f32 %v5057_v20, %v5056_v33  ;;  %v5136_v22 = vrot.slane %v783_v48, %v7968_v57 }
 0xfdb   : > { %v5047_v10 = vpop.f32.mrb[68].mxu0  ;;  %5065 = vadd.xlane.f32.xlu0 %v5064_v4  ;;  %v5067_v58 = vadd.f32 %v5059_v49, %v5058_v8  ;;  %v5155_v4 = vrot.slane %v784_v50, %v7968_v57 }
 0xfdc   : > { %v6009_v1 = vadd.f32 %v5047_v10, %v4623_v41  ;;  %v5049_v39 = vpop.f32.mrb[69].mxu0 }
 0xfdd   : > { %v6010_v62 = vadd.f32 %v5049_v39, %v4627_v37  ;;  %v5051_v36 = vpop.f32.mrb[70].mxu0  ;;  %5068 = vadd.xlane.f32.xlu1 %v5067_v58 }
 0xfde   : > { %v5060_v43 = vadd.f32 %v6009_v1, %v8616_v53  ;;  %v6011_v44 = vadd.f32 %v5051_v36, %v4623_v41  ;;  %v5053_v19 = vpop.f32.mrb[71].mxu0 }
 0xfdf   : > { %v5061_v59 = vadd.f32 %v6010_v62, %v8612_v18  ;;  %v6012_v27 = vadd.f32 %v5053_v19, %v4627_v37 }
 0xfe0   : > { %v5062_v63 = vadd.f32 %v6011_v44, %v8618_v55 }
 0xfe1   : > { %v5063_v42 = vadd.f32 %v6012_v27, %v8614_v47  ;;  %v5070_v30 = vadd.f32 %v5061_v59, %v5060_v43 }
 0xfe3   : > { %5071 = vadd.xlane.f32.xlu0 %v5070_v30  ;;  %v5073_v40 = vadd.f32 %v5063_v42, %v5062_v63 }
 0xfe5   : > { %5074 = vadd.xlane.f32.xlu1 %v5073_v40 }
0x1068   : > { %v5066_v21 = vpop.xlane.xlu0 %5065 }
0x1069   : > { %v5076_v56 = vmul.f32 0.00390625, %v5066_v21 }
0x106a   : > { %v5069_v5 = vpop.xlane.xlu1 %5068 }
0x106b   : > { %v5080_v7 = vsub.f32 %v5056_v33, %v5076_v56  ;;  %v5081_v3 = vsub.f32 %v5057_v20, %v5076_v56  ;;  %v5077_v12 = vmul.f32 0.00390625, %v5069_v5  ;;  %v5132_v20 = vrot.slane %v783_v48, %v7962_v51 }
0x106d   : > { %v5082_v53 = vsub.f32 %v5058_v8, %v5077_v12  ;;  %v5083_v15 = vsub.f32 %v5059_v49, %v5077_v12  ;;  %v5088_v2 = vmul.f32 %v5080_v7, %v5080_v7  ;;  %v5089_v16 = vmul.f32 %v5081_v3, %v5081_v3 }
0x106e   : > { %v5151_v49 = vrot.slane %v784_v50, %v7962_v51 }
0x106f   : > { %v5096_v18 = vadd.f32 %v5089_v16, %v5088_v2  ;;  %v5090_v24 = vmul.f32 %v5082_v53, %v5082_v53  ;;  %v5091_v52 = vmul.f32 %v5083_v15, %v5083_v15 }
0x1070   : > { %v5072_v55 = vpop.xlane.xlu0 %5071 }
0x1071   : > { %v5078_v35 = vmul.f32 0.00390625, %v5072_v55  ;;  %5097 = vadd.xlane.f32.xlu0 %v5096_v18  ;;  %v5099_v47 = vadd.f32 %v5091_v52, %v5090_v24 }
0x1072   : > { %v5075_v25 = vpop.xlane.xlu1 %5074 }
0x1073   : > { %v5084_v46 = vsub.f32 %v5060_v43, %v5078_v35  ;;  %v5085_v28 = vsub.f32 %v5061_v59, %v5078_v35  ;;  %v5079_v32 = vmul.f32 0.00390625, %v5075_v25  ;;  %5100 = vadd.xlane.f32.xlu1 %v5099_v47 }
0x1075   : > { %v5086_v11 = vsub.f32 %v5062_v63, %v5079_v32  ;;  %v5087_v13 = vsub.f32 %v5063_v42, %v5079_v32  ;;  %v5092_v9 = vmul.f32 %v5084_v46, %v5084_v46  ;;  %v5093_v29 = vmul.f32 %v5085_v28, %v5085_v28 }
0x1077   : > { %v5102_v60 = vadd.f32 %v5093_v29, %v5092_v9  ;;  %v5094_v17 = vmul.f32 %v5086_v11, %v5086_v11  ;;  %v5095_v14 = vmul.f32 %v5087_v13, %v5087_v13 }
0x1079   : > { %5103 = vadd.xlane.f32.xlu0 %v5102_v60  ;;  %v5105_v54 = vadd.f32 %v5095_v14, %v5094_v17 }
0x107b   : > { %5106 = vadd.xlane.f32.xlu1 %v5105_v54 }
0x10fe   : > { %v5098_v0 = vpop.xlane.xlu0 %5097 }
0x10ff   : > { %v5108_v31 = vmul.f32 0.00390625, %v5098_v0 }
0x1100   : > { %v5101_v34 = vpop.xlane.xlu1 %5100 }
0x1101   : > { %v5112_v38 = vadd.f32 1e-05, %v5108_v31  ;;  %v5109_v41 = vmul.f32 0.00390625, %v5101_v34 }
0x1103   : > { %6827 = vrsqrt.f32 %v5112_v38  ;;  %v5113_v37 = vadd.f32 1e-05, %v5109_v41 }
0x1105   : > { %6829 = vrsqrt.f32 %v5113_v37 }
0x1106   : > { %v5104_v61 = vpop.xlane.xlu0 %5103 }
0x1107   : > { %v5110_v26 = vmul.f32 0.00390625, %v5104_v61 }
0x1108   : > { %v5107_v45 = vpop.xlane.xlu1 %5106 }
0x1109   : > { %v5114_v6 = vadd.f32 1e-05, %v5110_v26  ;;  %v5111_v33 = vmul.f32 0.00390625, %v5107_v45 }
0x110b   : > { %6831 = vrsqrt.f32 %v5114_v6  ;;  %v5115_v23 = vadd.f32 1e-05, %v5111_v33 }
0x110d   : > { %v6828_v8 = vpop.eup %6827  ;;  %6833 = vrsqrt.f32 %v5115_v23 }
0x110e   : > { %v5120_v10 = vmul.f32 %v6828_v8, %v5080_v7  ;;  %v5121_v58 = vmul.f32 %v6828_v8, %v5081_v3 }
0x110f   : > { %v6830_v1 = vpop.eup %6829 }
0x1110   : > { %v5139_v39 = vmul.f32 %v5132_v20, %v5120_v10  ;;  %v5140_v62 = vmul.f32 %v5136_v22, %v5121_v58  ;;  %v5122_v36 = vmul.f32 %v6830_v1, %v5082_v53  ;;  %v5123_v43 = vmul.f32 %v6830_v1, %v5083_v15 }
0x1112   : > { %v5158_v44 = vadd.f32 %v5151_v49, %v5139_v39  ;;  %v5159_v19 = vadd.f32 %v5155_v4, %v5140_v62  ;;  %v5141_v59 = vmul.f32 %v5132_v20, %v5122_v36  ;;  %v5142_v27 = vmul.f32 %v5136_v22, %v5123_v43 }
0x1114   : > { %5166 = vst [vmem:[#allocation20] sm:$0xff] %v5158_v44  ;;  %5167 = vst [vmem:[#allocation20 + $0x8] sm:$0xff] %v5159_v19  ;;  %v5160_v63 = vadd.f32 %v5151_v49, %v5141_v59  ;;  %v5161_v42 = vadd.f32 %v5155_v4, %v5142_v27 }
0x1115   : > { %v6832_v30 = vpop.eup %6831 }
0x1116   : > { %5168 = vst [vmem:[#allocation20 + $0x10] sm:$0xff] %v5160_v63  ;;  %5169 = vst [vmem:[#allocation20 + $0x18] sm:$0xff] %v5161_v42  ;;  %v5124_v51 = vmul.f32 %v6832_v30, %v5084_v46  ;;  %v5125_v57 = vmul.f32 %v6832_v30, %v5085_v28 }
0x1117   : > { %v6834_v40 = vpop.eup %6833 }
0x1118   : > { %v5143_v21 = vmul.f32 %v5132_v20, %v5124_v51  ;;  %v5144_v56 = vmul.f32 %v5136_v22, %v5125_v57  ;;  %v5126_v5 = vmul.f32 %v6834_v40, %v5086_v11  ;;  %v5127_v7 = vmul.f32 %v6834_v40, %v5087_v13 }
0x111a   : > { %v5162_v3 = vadd.f32 %v5151_v49, %v5143_v21  ;;  %v5163_v12 = vadd.f32 %v5155_v4, %v5144_v56  ;;  %v5145_v53 = vmul.f32 %v5132_v20, %v5126_v5  ;;  %v5146_v15 = vmul.f32 %v5136_v22, %v5127_v7 }
0x111c   : > { %5170 = vst [vmem:[#allocation20 + $0x20] sm:$0xff] %v5162_v3  ;;  %5171 = vst [vmem:[#allocation20 + $0x28] sm:$0xff] %v5163_v12  ;;  %v5164_v2 = vadd.f32 %v5151_v49, %v5145_v53  ;;  %v5165_v16 = vadd.f32 %v5155_v4, %v5146_v15 }
0x111e   : > { %5172 = vst [vmem:[#allocation20 + $0x30] sm:$0xff] %v5164_v2  ;;  %5173 = vst [vmem:[#allocation20 + $0x38] sm:$0xff] %v5165_v16 }
0x111f   : > { %7180 = shalt.err (!%p7177_p12)
}
0x1120   : > { %s8857_s25 = sld [smem:[#allocation45_spill]] }
0x1126   : > { %s7181_s19 = scalar_lea.hbm %s8857_s25, 1024 }
0x1127   : > { %p7182_p0 = scmp.ne.s32.totalorder %s8857_s25, %s7181_s19  ;;  %p7187_p7 = scmp.lt.u32.totalorder %s7181_s19, %s8857_s25 }
0x1129   : > { %p7183_p2 = pnand %p7182_p0, %p6101_p3 }
0x112b   : > { %p7184_p6 = pneg %p7183_p2 }
0x112d   : > { %p7189_p8 = pnand %p7187_p7, %p7184_p6 }
0x112f   : > { %7192 = shalt.err (!%p7189_p8)
}
0x1130   : > { %s7289_s17 = smov 256   ;;  %s7290_s10 = smov 16  }
0x1131   : > { %6056 = dma.vmem_to_hbm [thread:$0]  (%p6101_p3), %s5185_s22, 1024, %s8857_s25, [#allocation4], %s7289_s17, %s7289_s17, %s7290_s10  }
0x1132   : > { %7242 = dma.done.wait (%p6101_p3), [#allocation4], 1024  }
0x1133   : > { %7244 = vsyncadd (%p6101_p3), [#allocation4], 4294966272 }
0x1134 PF: > { %s8858_s20 = sld [smem:[#allocation32_spill]]  ;;  %s8859_s17 = sld [smem:[#allocation28_spill]] }
0x1135   : > { %s8860_s18 = sld [smem:[#allocation29_spill]]  ;;  %s8861_s19 = sld [smem:[#allocation38_spill]] }
0x1136   : > { %s8863_s21 = sld [smem:[#allocation37_spill]] }
0x113a   : > { %s36_s22 = sadd.s32 1, %s8858_s20   ;;  %s8862_s20 = sld [smem:[#allocation31_spill]] }
0x113b   : > { %p33_p10 = scmp.ge.s32.totalorder %s36_s22, 4  }
0x113d   :  { %35 = sbr.rel (!%p33_p10) target bundleno = 21 (0x15), region = 205 }
0x1144   :  { %5200 = vsyncpa [#allocation3], 1 }
0x1145   :  { %5202 = vsyncpa [#allocation3 + $0x1], 1 }
0x1146   :  { %5203 = vsyncpa [#allocation6], 1 }
0x1147   :  { %5204 = vsyncpa [#allocation9], 1 }
0x1148   :  { %5206 = vsyncpa [#allocation9 + $0x1], 1 }
0x1149   :  { %5207 = vsyncpa [#allocation12], 1 }
0x114a   :  { %5209 = vsyncpa [#allocation12 + $0x1], 1 }
0x114b   :  { %5210 = vsyncpa [#allocation15], 1 }
0x114c   :  { %5212 = vsyncpa [#allocation15 + $0x1], 1 }
0x114d   :  { %5213 = vsyncpa [#allocation18], 1 }
0x114e   :  { %5215 = vsyncpa [#allocation18 + $0x1], 1 }
0x114f   :  { %5216 = vsyncpa [#allocation4], 1 }
0x1150   :  { %5218 = vsyncpa [#allocation4 + $0x1], 1 }

</bundles_post_ra>
